<compile_context>
chip_gen: v7x
topology: tpu7x:2x2x1
jax: 0.10.0
libtpu: 0.0.40
codegen_flags: <defaults>
</compile_context>

<pallas_src>
import math
import jax
import jax.numpy as jnp
from jax.experimental import pallas as pl
from jax.experimental.pallas import tpu as pltpu

# ---------------- configuration (module hyper-parameters) -----------------
NUM_LAYERS = 2
EMB_SIZE = 32
NHEAD = 4
DIM_FEEDFORWARD = 64
DROPOUT = 0.1          # eval mode -> all dropouts are identity
VOCAB = 10             # len(SOURCE_TOKENS)
PAD_ID = 0             # get_source_id(SOURCE_PAD_TOKEN)
MAX_SOURCE_LEN = 32
HEAD_DIM = EMB_SIZE // NHEAD
LN_EPS = 1e-5
NEG_INF = -1e30        # additive key-padding mask value (== -inf after exp)


# ---------------- elementwise helpers (used inside kernels) ---------------
def _erf_f32(x):
    # Eigen/XLA float32 rational erf approximation (matches torch.erf to f32 precision).
    x = jnp.clip(x, -4.0, 4.0)
    x2 = x * x
    a = jnp.float32(-2.72614225801306e-10)
    a = a * x2 + jnp.float32(2.77068142495902e-08)
    a = a * x2 + jnp.float32(-2.10102402082508e-06)
    a = a * x2 + jnp.float32(-5.69250639462346e-05)
    a = a * x2 + jnp.float32(-7.34990630326855e-04)
    a = a * x2 + jnp.float32(-2.95459980854025e-03)
    a = a * x2 + jnp.float32(-1.60960333262415e-02)
    p = x * a
    b = jnp.float32(-1.45660718464996e-05)
    b = b * x2 + jnp.float32(-2.13374055278905e-04)
    b = b * x2 + jnp.float32(-1.68282697438203e-03)
    b = b * x2 + jnp.float32(-7.37332916720468e-03)
    b = b * x2 + jnp.float32(-1.42647390514189e-02)
    return p / b


def _gelu_exact(x):
    # F.gelu (exact, erf based) as used by TransformerEncoderLayer(activation='gelu')
    return 0.5 * x * (1.0 + _erf_f32(x * jnp.float32(1.0 / math.sqrt(2.0))))


def _layernorm(x, gamma, beta):
    mu = jnp.mean(x, axis=-1, keepdims=True)
    xc = x - mu
    var = jnp.mean(xc * xc, axis=-1, keepdims=True)
    return xc * jax.lax.rsqrt(var + jnp.float32(LN_EPS)) * gamma + beta


# ---------------------------- fused Pallas kernel ---------------------------
def fused_encoder_kernel(x_ref, bias_ref,
                         wq_ref, bq_ref, wk_ref, bk_ref, wv_ref, bv_ref,
                         wo_ref, bo_ref,
                         g1_ref, be1_ref, w1_ref, b1_ref, w2_ref, b2_ref,
                         g2_ref, be2_ref, gf_ref, bf_ref,
                         o_ref):
    """Whole BaseEncoder transformer stack for one batch chunk.

    x_ref   : (BB*S, E)  token embeddings (rows = batch-major flatten of chunk)
    bias_ref: (BB, H, S, S) distance bias + key-padding additive mask
    weights : stacked over layers (leading dim NUM_LAYERS), per-head pre-split,
              attention scale already folded into wq/bq.
    """
    BB, H, S, _ = bias_ref.shape
    x = x_ref[...]                                       # (BB*S, E) f32

    for l in range(NUM_LAYERS):
        # --- multi-head self-attention (post-norm layer) ---
        blocks = []
        for b in range(BB):
            xb = x[b * S:(b + 1) * S, :]                 # (S, E), sublane-aligned slice
            attn_b = jnp.zeros((S, EMB_SIZE), jnp.float32)
            for h in range(H):
                qh = jnp.dot(xb, wq_ref[l, h], preferred_element_type=jnp.float32) + bq_ref[l, h]
                kh = jnp.dot(xb, wk_ref[l, h], preferred_element_type=jnp.float32) + bk_ref[l, h]
                vh = jnp.dot(xb, wv_ref[l, h], preferred_element_type=jnp.float32) + bv_ref[l, h]
                s = jax.lax.dot_general(qh, kh, (((1,), (1,)), ((), ())),
                                        preferred_element_type=jnp.float32)      # (S, S)
                s = s + bias_ref[b, h]
                m = jnp.max(s, axis=-1, keepdims=True)
                p = jnp.exp(s - m)
                p = p / jnp.sum(p, axis=-1, keepdims=True)
                oh = jnp.dot(p, vh, preferred_element_type=jnp.float32)           # (S, HEAD_DIM)
                # concat(heads) @ Wout^T  ==  sum_h  oh @ Wout^T[head-rows]
                attn_b = attn_b + jnp.dot(oh, wo_ref[l, h], preferred_element_type=jnp.float32)
            blocks.append(attn_b)
        attn = blocks[0] if BB == 1 else jnp.concatenate(blocks, axis=0)           # (BB*S, E)

        x = x + attn + bo_ref[l]                          # dropout = identity (eval)
        x = _layernorm(x, g1_ref[l], be1_ref[l])

        # --- feed-forward (gelu) ---
        h1 = jnp.dot(x, w1_ref[l], preferred_element_type=jnp.float32) + b1_ref[l]
        h1 = _gelu_exact(h1)
        h2 = jnp.dot(h1, w2_ref[l], preferred_element_type=jnp.float32) + b2_ref[l]
        x = x + h2                                        # dropout = identity (eval)
        x = _layernorm(x, g2_ref[l], be2_ref[l])

    # --- final encoder LayerNorm (fused, no extra pallas_call) ---
    o_ref[...] = _layernorm(x, gf_ref[...], bf_ref[...])


# ------------------------- host-side parameter repack ------------------------
def pack_params(params):
    """Stack per-layer weights, pre-split QKV per head, fold attention scale."""
    L, E, H, D, F = NUM_LAYERS, EMB_SIZE, NHEAD, HEAD_DIM, DIM_FEEDFORWARD
    scale = jnp.float32(1.0 / math.sqrt(D))

    def stack(name):
        return jnp.stack([lp[name] for lp in params["layers"]], axis=0)

    wqkv = stack("wqkv_t")                                # (L, E, 3E)
    bqkv = stack("bqkv")                                  # (L, 1, 3E)

    def split_heads_w(w):                                 # (L, E, E) -> (L, H, E, D)
        return w.reshape(L, E, H, D).transpose(0, 2, 1, 3)

    def split_heads_b(b):                                 # (L, 1, E) -> (L, H, 1, D)
        return b.reshape(L, 1, H, D).transpose(0, 2, 1, 3)

    packed = {
        "wq": split_heads_w(wqkv[:, :, 0:E]) * scale,     # scale folded into Q proj
        "bq": split_heads_b(bqkv[:, :, 0:E]) * scale,
        "wk": split_heads_w(wqkv[:, :, E:2 * E]),
        "bk": split_heads_b(bqkv[:, :, E:2 * E]),
        "wv": split_heads_w(wqkv[:, :, 2 * E:3 * E]),
        "bv": split_heads_b(bqkv[:, :, 2 * E:3 * E]),
        "wo": stack("wo_t").reshape(L, H, D, E),          # per-head row blocks of Wout^T
        "bo": stack("bo"),                                # (L, 1, E)
        "g1": stack("g1"), "be1": stack("be1"),
        "w1": stack("w1_t"), "b1": stack("b1"),
        "w2": stack("w2_t"), "b2": stack("b2"),
        "g2": stack("g2"), "be2": stack("be2"),
        "gf": params["gf"], "bf": params["bf"],
    }
    return packed


def _full_spec(arr):
    nd = arr.ndim
    return pl.BlockSpec(arr.shape, lambda c, _nd=nd: (0,) * _nd)


# ------------------------------- forward wrapper ------------------------------
def base_encoder_forward(params, sequences, distance_squares):
    """Forward of BaseEncoder. Returns (memory, key_padding_mask).
    memory: (S, B, E) f32 (same layout as the PyTorch module's output)."""
    B, S = sequences.shape
    E, H = EMB_SIZE, NHEAD

    # TokenEmbedding: emb lookup * sqrt(emb_size)   (gather = glue)
    x = params["tok_emb"][sequences].astype(jnp.float32) * jnp.float32(math.sqrt(E))
    # input_dropout: identity (eval mode)
    # TODO(synk): train-mode stochastic dropout masking not emitted (eval identity).

    key_padding_mask = sequences == PAD_ID
    # distance embedding -> (B, H, S, S) additive bias, with key-padding mask pre-added
    bias = jnp.transpose(params["dist_emb"][distance_squares], (0, 3, 1, 2)).astype(jnp.float32)
    bias = bias + jnp.where(key_padding_mask, jnp.float32(NEG_INF), jnp.float32(0.0))[:, None, None, :]

    packed = pack_params(params)

    # grid: 2 parallel chunks over batch (keeps v7x's 2nd TensorCore busy);
    # each step processes its whole chunk as a flat (BB*S, E) row slab.
    NC = 2 if (B % 2 == 0 and B >= 2) else 1
    BB = B // NC
    x_flat = x.reshape(B * S, E)

    weight_order = ["wq", "bq", "wk", "bk", "wv", "bv", "wo", "bo",
                    "g1", "be1", "w1", "b1", "w2", "b2", "g2", "be2", "gf", "bf"]
    weight_args = [packed[k] for k in weight_order]

    in_specs = [
        pl.BlockSpec((BB * S, E), lambda c: (c, 0)),            # activations (lane-dense rows)
        pl.BlockSpec((BB, H, S, S), lambda c: (c, 0, 0, 0)),    # distance + key-pad bias
    ] + [_full_spec(w) for w in weight_args]

    out_flat = pl.pallas_call(
        fused_encoder_kernel,
        out_shape=jax.ShapeDtypeStruct((B * S, E), jnp.float32),
        grid=(NC,),
        in_specs=in_specs,
        out_specs=pl.BlockSpec((BB * S, E), lambda c: (c, 0)),
        compiler_params=pltpu.CompilerParams(dimension_semantics=("parallel",)),
    )(x_flat, bias, *weight_args)

    memory = jnp.transpose(out_flat.reshape(B, S, E), (1, 0, 2))   # seq-first (S, B, E)
    return memory, key_padding_mask


# ---------------------------- pure-JAX reference ----------------------------
def _ref_forward(params, sequences, distance_squares):
    E = EMB_SIZE
    x = params["tok_emb"][sequences].astype(jnp.float32) * jnp.float32(math.sqrt(E))
    bias = jnp.transpose(params["dist_emb"][distance_squares], (0, 3, 1, 2)).astype(jnp.float32)
    add = jnp.where(sequences == PAD_ID, jnp.float32(NEG_INF), 0.0)[:, None, None, :]
    B, S = sequences.shape
    for lp in params["layers"]:
        qkv = x @ lp["wqkv_t"] + lp["bqkv"]
        q, k, v = qkv[..., :E], qkv[..., E:2 * E], qkv[..., 2 * E:]
        qh = q.reshape(B, S, NHEAD, HEAD_DIM).transpose(0, 2, 1, 3)
        kh = k.reshape(B, S, NHEAD, HEAD_DIM).transpose(0, 2, 1, 3)
        vh = v.reshape(B, S, NHEAD, HEAD_DIM).transpose(0, 2, 1, 3)
        s = jnp.einsum("bhqd,bhkd->bhqk", qh, kh) / math.sqrt(HEAD_DIM) + bias + add
        m = s.max(-1, keepdims=True)
        p = jnp.exp(s - m)
        p = p / p.sum(-1, keepdims=True)
        o = jnp.einsum("bhqk,bhkd->bhqd", p, vh).transpose(0, 2, 1, 3).reshape(B, S, E)
        x = _layernorm(x + o @ lp["wo_t"] + lp["bo"], lp["g1"], lp["be1"])
        h1 = _gelu_exact(x @ lp["w1_t"] + lp["b1"])
        x = _layernorm(x + h1 @ lp["w2_t"] + lp["b2"], lp["g2"], lp["be2"])
    return _layernorm(x, params["gf"], params["bf"])


# ---------------------------- parameter init --------------------------------
def init_params(key):
    E, F = EMB_SIZE, DIM_FEEDFORWARD
    ks = jax.random.split(key, 2 + NUM_LAYERS)
    params = {
        "tok_emb": jax.random.normal(ks[0], (VOCAB, E), jnp.float32),
        "dist_emb": jax.random.normal(ks[1], (MAX_SOURCE_LEN, NHEAD), jnp.float32) * 0.5,
        "gf": jnp.ones((1, E), jnp.float32),
        "bf": jnp.zeros((1, E), jnp.float32),
        "layers": [],
    }
    sc = 0.1
    for l in range(NUM_LAYERS):
        k = jax.random.split(ks[2 + l], 8)
        params["layers"].append({
            # weights stored pre-transposed (x @ W^T == x @ W_t)
            "wqkv_t": jax.random.normal(k[0], (E, 3 * E), jnp.float32) * sc,
            "bqkv":   jax.random.normal(k[1], (1, 3 * E), jnp.float32) * sc,
            "wo_t":   jax.random.normal(k[2], (E, E), jnp.float32) * sc,
            "bo":     jax.random.normal(k[3], (1, E), jnp.float32) * sc,
            "w1_t":   jax.random.normal(k[4], (E, F), jnp.float32) * sc,
            "b1":     jax.random.normal(k[5], (1, F), jnp.float32) * sc,
            "w2_t":   jax.random.normal(k[6], (F, E), jnp.float32) * sc,
            "b2":     jax.random.normal(k[7], (1, E), jnp.float32) * sc,
            "g1": jnp.ones((1, E), jnp.float32), "be1": jnp.zeros((1, E), jnp.float32),
            "g2": jnp.ones((1, E), jnp.float32), "be2": jnp.zeros((1, E), jnp.float32),
        })
    return params


# ------------------------------------ main -----------------------------------
if __name__ == "__main__":
    key = jax.random.PRNGKey(0)
    pk, sk, dk = jax.random.split(key, 3)
    params = init_params(pk)

    B, S = 2, 8
    sequences = jax.random.randint(sk, (B, S), 1, VOCAB)
    sequences = sequences.at[1, 5:].set(PAD_ID)              # some padded keys
    distance_squares = jax.random.randint(dk, (B, S, S), 0, MAX_SOURCE_LEN)

    memory, key_padding_mask = base_encoder_forward(params, sequences, distance_squares)
    memory = jax.block_until_ready(memory)

    ref_memory = jnp.transpose(_ref_forward(params, sequences, distance_squares), (1, 0, 2))
    assert memory.shape == (S, B, EMB_SIZE)
    assert key_padding_mask.shape == (B, S)
    err = float(jnp.max(jnp.abs(memory - ref_memory)))
    assert jnp.allclose(memory, ref_memory, atol=1e-4, rtol=1e-4), f"max abs err {err}"
    print("KERNEL_OK")
</pallas_src>

<mosaic_0001>
module attributes {stable_mosaic.version = 11 : i64} {
  func.func @fused_encoder_kernel(%arg0: i32, %arg1: memref<8x32xf32, #tpu.memory_space<vmem>>, %arg2: memref<1x4x8x8xf32, #tpu.memory_space<vmem>>, %arg3: memref<2x4x32x8xf32, #tpu.memory_space<vmem>>, %arg4: memref<2x4x1x8xf32, #tpu.memory_space<vmem>>, %arg5: memref<2x4x32x8xf32, #tpu.memory_space<vmem>>, %arg6: memref<2x4x1x8xf32, #tpu.memory_space<vmem>>, %arg7: memref<2x4x32x8xf32, #tpu.memory_space<vmem>>, %arg8: memref<2x4x1x8xf32, #tpu.memory_space<vmem>>, %arg9: memref<2x4x8x32xf32, #tpu.memory_space<vmem>>, %arg10: memref<2x1x32xf32, #tpu.memory_space<vmem>>, %arg11: memref<2x1x32xf32, #tpu.memory_space<vmem>>, %arg12: memref<2x1x32xf32, #tpu.memory_space<vmem>>, %arg13: memref<2x32x64xf32, #tpu.memory_space<vmem>>, %arg14: memref<2x1x64xf32, #tpu.memory_space<vmem>>, %arg15: memref<2x64x32xf32, #tpu.memory_space<vmem>>, %arg16: memref<2x1x32xf32, #tpu.memory_space<vmem>>, %arg17: memref<2x1x32xf32, #tpu.memory_space<vmem>>, %arg18: memref<2x1x32xf32, #tpu.memory_space<vmem>>, %arg19: memref<1x32xf32, #tpu.memory_space<vmem>>, %arg20: memref<1x32xf32, #tpu.memory_space<vmem>>, %arg21: memref<8x32xf32, #tpu.memory_space<vmem>>) attributes {dimension_semantics = [#tpu.dimension_semantics<parallel>], iteration_bounds = array<i64: 2>, scalar_prefetch = 0 : i64, scratch_operands = 0 : i64, tpu.core_type = #tpu.core_type<tc>, window_params = [{transform_indices = @transform_0, window_bounds = array<i64: 8, 32>}, {transform_indices = @transform_1, window_bounds = array<i64: 1, 4, 8, 8>}, {pipeline_mode = #tpu.pipeline_mode<synchronous>, transform_indices = @transform_2, window_bounds = array<i64: 2, 4, 32, 8>}, {pipeline_mode = #tpu.pipeline_mode<synchronous>, transform_indices = @transform_3, window_bounds = array<i64: 2, 4, 1, 8>}, {pipeline_mode = #tpu.pipeline_mode<synchronous>, transform_indices = @transform_4, window_bounds = array<i64: 2, 4, 32, 8>}, {pipeline_mode = #tpu.pipeline_mode<synchronous>, transform_indices = @transform_5, window_bounds = array<i64: 2, 4, 1, 8>}, {pipeline_mode = #tpu.pipeline_mode<synchronous>, transform_indices = @transform_6, window_bounds = array<i64: 2, 4, 32, 8>}, {pipeline_mode = #tpu.pipeline_mode<synchronous>, transform_indices = @transform_7, window_bounds = array<i64: 2, 4, 1, 8>}, {pipeline_mode = #tpu.pipeline_mode<synchronous>, transform_indices = @transform_8, window_bounds = array<i64: 2, 4, 8, 32>}, {pipeline_mode = #tpu.pipeline_mode<synchronous>, transform_indices = @transform_9, window_bounds = array<i64: 2, 1, 32>}, {pipeline_mode = #tpu.pipeline_mode<synchronous>, transform_indices = @transform_10, window_bounds = array<i64: 2, 1, 32>}, {pipeline_mode = #tpu.pipeline_mode<synchronous>, transform_indices = @transform_11, window_bounds = array<i64: 2, 1, 32>}, {pipeline_mode = #tpu.pipeline_mode<synchronous>, transform_indices = @transform_12, window_bounds = array<i64: 2, 32, 64>}, {pipeline_mode = #tpu.pipeline_mode<synchronous>, transform_indices = @transform_13, window_bounds = array<i64: 2, 1, 64>}, {pipeline_mode = #tpu.pipeline_mode<synchronous>, transform_indices = @transform_14, window_bounds = array<i64: 2, 64, 32>}, {pipeline_mode = #tpu.pipeline_mode<synchronous>, transform_indices = @transform_15, window_bounds = array<i64: 2, 1, 32>}, {pipeline_mode = #tpu.pipeline_mode<synchronous>, transform_indices = @transform_16, window_bounds = array<i64: 2, 1, 32>}, {pipeline_mode = #tpu.pipeline_mode<synchronous>, transform_indices = @transform_17, window_bounds = array<i64: 2, 1, 32>}, {pipeline_mode = #tpu.pipeline_mode<synchronous>, transform_indices = @transform_18, window_bounds = array<i64: 1, 32>}, {pipeline_mode = #tpu.pipeline_mode<synchronous>, transform_indices = @transform_19, window_bounds = array<i64: 1, 32>}, {transform_indices = @transform_20, window_bounds = array<i64: 8, 32>}]} {
    %c0 = arith.constant 0 : index
    %c0_0 = arith.constant 0 : index
    %0 = vector.load %arg1[%c0, %c0_0] : memref<8x32xf32, #tpu.memory_space<vmem>>, vector<8x32xf32>
    %cst = arith.constant 0.000000e+00 : f32
    %1 = vector.broadcast %cst : f32 to vector<8x32xf32>
    %c0_1 = arith.constant 0 : index
    %c0_2 = arith.constant 0 : index
    %c0_3 = arith.constant 0 : index
    %c0_4 = arith.constant 0 : index
    %2 = vector.load %arg3[%c0_1, %c0_2, %c0_3, %c0_4] : memref<2x4x32x8xf32, #tpu.memory_space<vmem>>, vector<1x1x32x8xf32>
    %3 = vector.shape_cast %2 : vector<1x1x32x8xf32> to vector<32x8xf32>
    %cst_5 = arith.constant dense<0.000000e+00> : vector<8x8xf32>
    %4 = tpu.matmul %0, %3, %cst_5 {dimension_numbers = #tpu.dot_dimension_numbers<[1], [0], [0], [1], [0, 0, 1, 1], [], []>} : vector<8x32xf32>, vector<32x8xf32>, vector<8x8xf32> -> vector<8x8xf32>
    %c0_6 = arith.constant 0 : index
    %c0_7 = arith.constant 0 : index
    %c0_8 = arith.constant 0 : index
    %c0_9 = arith.constant 0 : index
    %5 = vector.load %arg4[%c0_6, %c0_7, %c0_8, %c0_9] : memref<2x4x1x8xf32, #tpu.memory_space<vmem>>, vector<1x1x1x8xf32>
    %6 = vector.shape_cast %5 : vector<1x1x1x8xf32> to vector<1x8xf32>
    %7 = vector.broadcast %6 : vector<1x8xf32> to vector<8x8xf32>
    %8 = arith.addf %4, %7 : vector<8x8xf32>
    %c0_10 = arith.constant 0 : index
    %c0_11 = arith.constant 0 : index
    %c0_12 = arith.constant 0 : index
    %c0_13 = arith.constant 0 : index
    %9 = vector.load %arg5[%c0_10, %c0_11, %c0_12, %c0_13] : memref<2x4x32x8xf32, #tpu.memory_space<vmem>>, vector<1x1x32x8xf32>
    %10 = vector.shape_cast %9 : vector<1x1x32x8xf32> to vector<32x8xf32>
    %cst_14 = arith.constant dense<0.000000e+00> : vector<8x8xf32>
    %11 = tpu.matmul %0, %10, %cst_14 {dimension_numbers = #tpu.dot_dimension_numbers<[1], [0], [0], [1], [0, 0, 1, 1], [], []>} : vector<8x32xf32>, vector<32x8xf32>, vector<8x8xf32> -> vector<8x8xf32>
    %c0_15 = arith.constant 0 : index
    %c0_16 = arith.constant 0 : index
    %c0_17 = arith.constant 0 : index
    %c0_18 = arith.constant 0 : index
    %12 = vector.load %arg6[%c0_15, %c0_16, %c0_17, %c0_18] : memref<2x4x1x8xf32, #tpu.memory_space<vmem>>, vector<1x1x1x8xf32>
    %13 = vector.shape_cast %12 : vector<1x1x1x8xf32> to vector<1x8xf32>
    %14 = vector.broadcast %13 : vector<1x8xf32> to vector<8x8xf32>
    %15 = arith.addf %11, %14 : vector<8x8xf32>
    %c0_19 = arith.constant 0 : index
    %c0_20 = arith.constant 0 : index
    %c0_21 = arith.constant 0 : index
    %c0_22 = arith.constant 0 : index
    %16 = vector.load %arg7[%c0_19, %c0_20, %c0_21, %c0_22] : memref<2x4x32x8xf32, #tpu.memory_space<vmem>>, vector<1x1x32x8xf32>
    %17 = vector.shape_cast %16 : vector<1x1x32x8xf32> to vector<32x8xf32>
    %cst_23 = arith.constant dense<0.000000e+00> : vector<8x8xf32>
    %18 = tpu.matmul %0, %17, %cst_23 {dimension_numbers = #tpu.dot_dimension_numbers<[1], [0], [0], [1], [0, 0, 1, 1], [], []>} : vector<8x32xf32>, vector<32x8xf32>, vector<8x8xf32> -> vector<8x8xf32>
    %c0_24 = arith.constant 0 : index
    %c0_25 = arith.constant 0 : index
    %c0_26 = arith.constant 0 : index
    %c0_27 = arith.constant 0 : index
    %19 = vector.load %arg8[%c0_24, %c0_25, %c0_26, %c0_27] : memref<2x4x1x8xf32, #tpu.memory_space<vmem>>, vector<1x1x1x8xf32>
    %20 = vector.shape_cast %19 : vector<1x1x1x8xf32> to vector<1x8xf32>
    %21 = vector.broadcast %20 : vector<1x8xf32> to vector<8x8xf32>
    %22 = arith.addf %18, %21 : vector<8x8xf32>
    %cst_28 = arith.constant dense<0.000000e+00> : vector<8x8xf32>
    %23 = tpu.matmul %8, %15, %cst_28 {dimension_numbers = #tpu.dot_dimension_numbers<[1], [1], [0], [0], [0, 0, 1, 0], [], []>} : vector<8x8xf32>, vector<8x8xf32>, vector<8x8xf32> -> vector<8x8xf32>
    %c0_29 = arith.constant 0 : index
    %c0_30 = arith.constant 0 : index
    %c0_31 = arith.constant 0 : index
    %c0_32 = arith.constant 0 : index
    %24 = vector.load %arg2[%c0_29, %c0_30, %c0_31, %c0_32] : memref<1x4x8x8xf32, #tpu.memory_space<vmem>>, vector<1x1x8x8xf32>
    %25 = vector.shape_cast %24 : vector<1x1x8x8xf32> to vector<8x8xf32>
    %26 = arith.addf %23, %25 : vector<8x8xf32>
    %cst_33 = arith.constant dense<0xFF800000> : vector<8xf32>
    %27 = vector.multi_reduction <maximumf>, %26, %cst_33 [1] : vector<8x8xf32> to vector<8xf32>
    %28 = vector.shape_cast %27 : vector<8xf32> to vector<8x1xf32>
    %29 = vector.broadcast %28 : vector<8x1xf32> to vector<8x8xf32>
    %30 = arith.subf %26, %29 : vector<8x8xf32>
    %31 = math.exp %30 : vector<8x8xf32>
    %cst_34 = arith.constant dense<0.000000e+00> : vector<8xf32>
    %32 = vector.multi_reduction <add>, %31, %cst_34 [1] : vector<8x8xf32> to vector<8xf32>
    %33 = vector.shape_cast %32 : vector<8xf32> to vector<8x1xf32>
    %34 = vector.broadcast %33 : vector<8x1xf32> to vector<8x8xf32>
    %35 = arith.divf %31, %34 : vector<8x8xf32>
    %cst_35 = arith.constant dense<0.000000e+00> : vector<8x8xf32>
    %36 = tpu.matmul %35, %22, %cst_35 {dimension_numbers = #tpu.dot_dimension_numbers<[1], [0], [0], [1], [0, 0, 1, 1], [], []>} : vector<8x8xf32>, vector<8x8xf32>, vector<8x8xf32> -> vector<8x8xf32>
    %c0_36 = arith.constant 0 : index
    %c0_37 = arith.constant 0 : index
    %c0_38 = arith.constant 0 : index
    %c0_39 = arith.constant 0 : index
    %37 = vector.load %arg9[%c0_36, %c0_37, %c0_38, %c0_39] : memref<2x4x8x32xf32, #tpu.memory_space<vmem>>, vector<1x1x8x32xf32>
    %38 = vector.shape_cast %37 : vector<1x1x8x32xf32> to vector<8x32xf32>
    %cst_40 = arith.constant dense<0.000000e+00> : vector<8x32xf32>
    %39 = tpu.matmul %36, %38, %cst_40 {dimension_numbers = #tpu.dot_dimension_numbers<[1], [0], [0], [1], [0, 0, 1, 1], [], []>} : vector<8x8xf32>, vector<8x32xf32>, vector<8x32xf32> -> vector<8x32xf32>
    %40 = arith.addf %1, %39 : vector<8x32xf32>
    %c0_41 = arith.constant 0 : index
    %c1 = arith.constant 1 : index
    %c0_42 = arith.constant 0 : index
    %c0_43 = arith.constant 0 : index
    %41 = vector.load %arg3[%c0_41, %c1, %c0_42, %c0_43] : memref<2x4x32x8xf32, #tpu.memory_space<vmem>>, vector<1x1x32x8xf32>
    %42 = vector.shape_cast %41 : vector<1x1x32x8xf32> to vector<32x8xf32>
    %cst_44 = arith.constant dense<0.000000e+00> : vector<8x8xf32>
    %43 = tpu.matmul %0, %42, %cst_44 {dimension_numbers = #tpu.dot_dimension_numbers<[1], [0], [0], [1], [0, 0, 1, 1], [], []>} : vector<8x32xf32>, vector<32x8xf32>, vector<8x8xf32> -> vector<8x8xf32>
    %c0_45 = arith.constant 0 : index
    %c1_46 = arith.constant 1 : index
    %c0_47 = arith.constant 0 : index
    %c0_48 = arith.constant 0 : index
    %44 = vector.load %arg4[%c0_45, %c1_46, %c0_47, %c0_48] : memref<2x4x1x8xf32, #tpu.memory_space<vmem>>, vector<1x1x1x8xf32>
    %45 = vector.shape_cast %44 : vector<1x1x1x8xf32> to vector<1x8xf32>
    %46 = vector.broadcast %45 : vector<1x8xf32> to vector<8x8xf32>
    %47 = arith.addf %43, %46 : vector<8x8xf32>
    %c0_49 = arith.constant 0 : index
    %c1_50 = arith.constant 1 : index
    %c0_51 = arith.constant 0 : index
    %c0_52 = arith.constant 0 : index
    %48 = vector.load %arg5[%c0_49, %c1_50, %c0_51, %c0_52] : memref<2x4x32x8xf32, #tpu.memory_space<vmem>>, vector<1x1x32x8xf32>
    %49 = vector.shape_cast %48 : vector<1x1x32x8xf32> to vector<32x8xf32>
    %cst_53 = arith.constant dense<0.000000e+00> : vector<8x8xf32>
    %50 = tpu.matmul %0, %49, %cst_53 {dimension_numbers = #tpu.dot_dimension_numbers<[1], [0], [0], [1], [0, 0, 1, 1], [], []>} : vector<8x32xf32>, vector<32x8xf32>, vector<8x8xf32> -> vector<8x8xf32>
    %c0_54 = arith.constant 0 : index
    %c1_55 = arith.constant 1 : index
    %c0_56 = arith.constant 0 : index
    %c0_57 = arith.constant 0 : index
    %51 = vector.load %arg6[%c0_54, %c1_55, %c0_56, %c0_57] : memref<2x4x1x8xf32, #tpu.memory_space<vmem>>, vector<1x1x1x8xf32>
    %52 = vector.shape_cast %51 : vector<1x1x1x8xf32> to vector<1x8xf32>
    %53 = vector.broadcast %52 : vector<1x8xf32> to vector<8x8xf32>
    %54 = arith.addf %50, %53 : vector<8x8xf32>
    %c0_58 = arith.constant 0 : index
    %c1_59 = arith.constant 1 : index
    %c0_60 = arith.constant 0 : index
    %c0_61 = arith.constant 0 : index
    %55 = vector.load %arg7[%c0_58, %c1_59, %c0_60, %c0_61] : memref<2x4x32x8xf32, #tpu.memory_space<vmem>>, vector<1x1x32x8xf32>
    %56 = vector.shape_cast %55 : vector<1x1x32x8xf32> to vector<32x8xf32>
    %cst_62 = arith.constant dense<0.000000e+00> : vector<8x8xf32>
    %57 = tpu.matmul %0, %56, %cst_62 {dimension_numbers = #tpu.dot_dimension_numbers<[1], [0], [0], [1], [0, 0, 1, 1], [], []>} : vector<8x32xf32>, vector<32x8xf32>, vector<8x8xf32> -> vector<8x8xf32>
    %c0_63 = arith.constant 0 : index
    %c1_64 = arith.constant 1 : index
    %c0_65 = arith.constant 0 : index
    %c0_66 = arith.constant 0 : index
    %58 = vector.load %arg8[%c0_63, %c1_64, %c0_65, %c0_66] : memref<2x4x1x8xf32, #tpu.memory_space<vmem>>, vector<1x1x1x8xf32>
    %59 = vector.shape_cast %58 : vector<1x1x1x8xf32> to vector<1x8xf32>
    %60 = vector.broadcast %59 : vector<1x8xf32> to vector<8x8xf32>
    %61 = arith.addf %57, %60 : vector<8x8xf32>
    %cst_67 = arith.constant dense<0.000000e+00> : vector<8x8xf32>
    %62 = tpu.matmul %47, %54, %cst_67 {dimension_numbers = #tpu.dot_dimension_numbers<[1], [1], [0], [0], [0, 0, 1, 0], [], []>} : vector<8x8xf32>, vector<8x8xf32>, vector<8x8xf32> -> vector<8x8xf32>
    %c0_68 = arith.constant 0 : index
    %c1_69 = arith.constant 1 : index
    %c0_70 = arith.constant 0 : index
    %c0_71 = arith.constant 0 : index
    %63 = vector.load %arg2[%c0_68, %c1_69, %c0_70, %c0_71] : memref<1x4x8x8xf32, #tpu.memory_space<vmem>>, vector<1x1x8x8xf32>
    %64 = vector.shape_cast %63 : vector<1x1x8x8xf32> to vector<8x8xf32>
    %65 = arith.addf %62, %64 : vector<8x8xf32>
    %cst_72 = arith.constant dense<0xFF800000> : vector<8xf32>
    %66 = vector.multi_reduction <maximumf>, %65, %cst_72 [1] : vector<8x8xf32> to vector<8xf32>
    %67 = vector.shape_cast %66 : vector<8xf32> to vector<8x1xf32>
    %68 = vector.broadcast %67 : vector<8x1xf32> to vector<8x8xf32>
    %69 = arith.subf %65, %68 : vector<8x8xf32>
    %70 = math.exp %69 : vector<8x8xf32>
    %cst_73 = arith.constant dense<0.000000e+00> : vector<8xf32>
    %71 = vector.multi_reduction <add>, %70, %cst_73 [1] : vector<8x8xf32> to vector<8xf32>
    %72 = vector.shape_cast %71 : vector<8xf32> to vector<8x1xf32>
    %73 = vector.broadcast %72 : vector<8x1xf32> to vector<8x8xf32>
    %74 = arith.divf %70, %73 : vector<8x8xf32>
    %cst_74 = arith.constant dense<0.000000e+00> : vector<8x8xf32>
    %75 = tpu.matmul %74, %61, %cst_74 {dimension_numbers = #tpu.dot_dimension_numbers<[1], [0], [0], [1], [0, 0, 1, 1], [], []>} : vector<8x8xf32>, vector<8x8xf32>, vector<8x8xf32> -> vector<8x8xf32>
    %c0_75 = arith.constant 0 : index
    %c1_76 = arith.constant 1 : index
    %c0_77 = arith.constant 0 : index
    %c0_78 = arith.constant 0 : index
    %76 = vector.load %arg9[%c0_75, %c1_76, %c0_77, %c0_78] : memref<2x4x8x32xf32, #tpu.memory_space<vmem>>, vector<1x1x8x32xf32>
    %77 = vector.shape_cast %76 : vector<1x1x8x32xf32> to vector<8x32xf32>
    %cst_79 = arith.constant dense<0.000000e+00> : vector<8x32xf32>
    %78 = tpu.matmul %75, %77, %cst_79 {dimension_numbers = #tpu.dot_dimension_numbers<[1], [0], [0], [1], [0, 0, 1, 1], [], []>} : vector<8x8xf32>, vector<8x32xf32>, vector<8x32xf32> -> vector<8x32xf32>
    %79 = arith.addf %40, %78 : vector<8x32xf32>
    %c0_80 = arith.constant 0 : index
    %c2 = arith.constant 2 : index
    %c0_81 = arith.constant 0 : index
    %c0_82 = arith.constant 0 : index
    %80 = vector.load %arg3[%c0_80, %c2, %c0_81, %c0_82] : memref<2x4x32x8xf32, #tpu.memory_space<vmem>>, vector<1x1x32x8xf32>
    %81 = vector.shape_cast %80 : vector<1x1x32x8xf32> to vector<32x8xf32>
    %cst_83 = arith.constant dense<0.000000e+00> : vector<8x8xf32>
    %82 = tpu.matmul %0, %81, %cst_83 {dimension_numbers = #tpu.dot_dimension_numbers<[1], [0], [0], [1], [0, 0, 1, 1], [], []>} : vector<8x32xf32>, vector<32x8xf32>, vector<8x8xf32> -> vector<8x8xf32>
    %c0_84 = arith.constant 0 : index
    %c2_85 = arith.constant 2 : index
    %c0_86 = arith.constant 0 : index
    %c0_87 = arith.constant 0 : index
    %83 = vector.load %arg4[%c0_84, %c2_85, %c0_86, %c0_87] : memref<2x4x1x8xf32, #tpu.memory_space<vmem>>, vector<1x1x1x8xf32>
    %84 = vector.shape_cast %83 : vector<1x1x1x8xf32> to vector<1x8xf32>
    %85 = vector.broadcast %84 : vector<1x8xf32> to vector<8x8xf32>
    %86 = arith.addf %82, %85 : vector<8x8xf32>
    %c0_88 = arith.constant 0 : index
    %c2_89 = arith.constant 2 : index
    %c0_90 = arith.constant 0 : index
    %c0_91 = arith.constant 0 : index
    %87 = vector.load %arg5[%c0_88, %c2_89, %c0_90, %c0_91] : memref<2x4x32x8xf32, #tpu.memory_space<vmem>>, vector<1x1x32x8xf32>
    %88 = vector.shape_cast %87 : vector<1x1x32x8xf32> to vector<32x8xf32>
    %cst_92 = arith.constant dense<0.000000e+00> : vector<8x8xf32>
    %89 = tpu.matmul %0, %88, %cst_92 {dimension_numbers = #tpu.dot_dimension_numbers<[1], [0], [0], [1], [0, 0, 1, 1], [], []>} : vector<8x32xf32>, vector<32x8xf32>, vector<8x8xf32> -> vector<8x8xf32>
    %c0_93 = arith.constant 0 : index
    %c2_94 = arith.constant 2 : index
    %c0_95 = arith.constant 0 : index
    %c0_96 = arith.constant 0 : index
    %90 = vector.load %arg6[%c0_93, %c2_94, %c0_95, %c0_96] : memref<2x4x1x8xf32, #tpu.memory_space<vmem>>, vector<1x1x1x8xf32>
    %91 = vector.shape_cast %90 : vector<1x1x1x8xf32> to vector<1x8xf32>
    %92 = vector.broadcast %91 : vector<1x8xf32> to vector<8x8xf32>
    %93 = arith.addf %89, %92 : vector<8x8xf32>
    %c0_97 = arith.constant 0 : index
    %c2_98 = arith.constant 2 : index
    %c0_99 = arith.constant 0 : index
    %c0_100 = arith.constant 0 : index
    %94 = vector.load %arg7[%c0_97, %c2_98, %c0_99, %c0_100] : memref<2x4x32x8xf32, #tpu.memory_space<vmem>>, vector<1x1x32x8xf32>
    %95 = vector.shape_cast %94 : vector<1x1x32x8xf32> to vector<32x8xf32>
    %cst_101 = arith.constant dense<0.000000e+00> : vector<8x8xf32>
    %96 = tpu.matmul %0, %95, %cst_101 {dimension_numbers = #tpu.dot_dimension_numbers<[1], [0], [0], [1], [0, 0, 1, 1], [], []>} : vector<8x32xf32>, vector<32x8xf32>, vector<8x8xf32> -> vector<8x8xf32>
    %c0_102 = arith.constant 0 : index
    %c2_103 = arith.constant 2 : index
    %c0_104 = arith.constant 0 : index
    %c0_105 = arith.constant 0 : index
    %97 = vector.load %arg8[%c0_102, %c2_103, %c0_104, %c0_105] : memref<2x4x1x8xf32, #tpu.memory_space<vmem>>, vector<1x1x1x8xf32>
    %98 = vector.shape_cast %97 : vector<1x1x1x8xf32> to vector<1x8xf32>
    %99 = vector.broadcast %98 : vector<1x8xf32> to vector<8x8xf32>
    %100 = arith.addf %96, %99 : vector<8x8xf32>
    %cst_106 = arith.constant dense<0.000000e+00> : vector<8x8xf32>
    %101 = tpu.matmul %86, %93, %cst_106 {dimension_numbers = #tpu.dot_dimension_numbers<[1], [1], [0], [0], [0, 0, 1, 0], [], []>} : vector<8x8xf32>, vector<8x8xf32>, vector<8x8xf32> -> vector<8x8xf32>
    %c0_107 = arith.constant 0 : index
    %c2_108 = arith.constant 2 : index
    %c0_109 = arith.constant 0 : index
    %c0_110 = arith.constant 0 : index
    %102 = vector.load %arg2[%c0_107, %c2_108, %c0_109, %c0_110] : memref<1x4x8x8xf32, #tpu.memory_space<vmem>>, vector<1x1x8x8xf32>
    %103 = vector.shape_cast %102 : vector<1x1x8x8xf32> to vector<8x8xf32>
    %104 = arith.addf %101, %103 : vector<8x8xf32>
    %cst_111 = arith.constant dense<0xFF800000> : vector<8xf32>
    %105 = vector.multi_reduction <maximumf>, %104, %cst_111 [1] : vector<8x8xf32> to vector<8xf32>
    %106 = vector.shape_cast %105 : vector<8xf32> to vector<8x1xf32>
    %107 = vector.broadcast %106 : vector<8x1xf32> to vector<8x8xf32>
    %108 = arith.subf %104, %107 : vector<8x8xf32>
    %109 = math.exp %108 : vector<8x8xf32>
    %cst_112 = arith.constant dense<0.000000e+00> : vector<8xf32>
    %110 = vector.multi_reduction <add>, %109, %cst_112 [1] : vector<8x8xf32> to vector<8xf32>
    %111 = vector.shape_cast %110 : vector<8xf32> to vector<8x1xf32>
    %112 = vector.broadcast %111 : vector<8x1xf32> to vector<8x8xf32>
    %113 = arith.divf %109, %112 : vector<8x8xf32>
    %cst_113 = arith.constant dense<0.000000e+00> : vector<8x8xf32>
    %114 = tpu.matmul %113, %100, %cst_113 {dimension_numbers = #tpu.dot_dimension_numbers<[1], [0], [0], [1], [0, 0, 1, 1], [], []>} : vector<8x8xf32>, vector<8x8xf32>, vector<8x8xf32> -> vector<8x8xf32>
    %c0_114 = arith.constant 0 : index
    %c2_115 = arith.constant 2 : index
    %c0_116 = arith.constant 0 : index
    %c0_117 = arith.constant 0 : index
    %115 = vector.load %arg9[%c0_114, %c2_115, %c0_116, %c0_117] : memref<2x4x8x32xf32, #tpu.memory_space<vmem>>, vector<1x1x8x32xf32>
    %116 = vector.shape_cast %115 : vector<1x1x8x32xf32> to vector<8x32xf32>
    %cst_118 = arith.constant dense<0.000000e+00> : vector<8x32xf32>
    %117 = tpu.matmul %114, %116, %cst_118 {dimension_numbers = #tpu.dot_dimension_numbers<[1], [0], [0], [1], [0, 0, 1, 1], [], []>} : vector<8x8xf32>, vector<8x32xf32>, vector<8x32xf32> -> vector<8x32xf32>
    %118 = arith.addf %79, %117 : vector<8x32xf32>
    %c0_119 = arith.constant 0 : index
    %c3 = arith.constant 3 : index
    %c0_120 = arith.constant 0 : index
    %c0_121 = arith.constant 0 : index
    %119 = vector.load %arg3[%c0_119, %c3, %c0_120, %c0_121] : memref<2x4x32x8xf32, #tpu.memory_space<vmem>>, vector<1x1x32x8xf32>
    %120 = vector.shape_cast %119 : vector<1x1x32x8xf32> to vector<32x8xf32>
    %cst_122 = arith.constant dense<0.000000e+00> : vector<8x8xf32>
    %121 = tpu.matmul %0, %120, %cst_122 {dimension_numbers = #tpu.dot_dimension_numbers<[1], [0], [0], [1], [0, 0, 1, 1], [], []>} : vector<8x32xf32>, vector<32x8xf32>, vector<8x8xf32> -> vector<8x8xf32>
    %c0_123 = arith.constant 0 : index
    %c3_124 = arith.constant 3 : index
    %c0_125 = arith.constant 0 : index
    %c0_126 = arith.constant 0 : index
    %122 = vector.load %arg4[%c0_123, %c3_124, %c0_125, %c0_126] : memref<2x4x1x8xf32, #tpu.memory_space<vmem>>, vector<1x1x1x8xf32>
    %123 = vector.shape_cast %122 : vector<1x1x1x8xf32> to vector<1x8xf32>
    %124 = vector.broadcast %123 : vector<1x8xf32> to vector<8x8xf32>
    %125 = arith.addf %121, %124 : vector<8x8xf32>
    %c0_127 = arith.constant 0 : index
    %c3_128 = arith.constant 3 : index
    %c0_129 = arith.constant 0 : index
    %c0_130 = arith.constant 0 : index
    %126 = vector.load %arg5[%c0_127, %c3_128, %c0_129, %c0_130] : memref<2x4x32x8xf32, #tpu.memory_space<vmem>>, vector<1x1x32x8xf32>
    %127 = vector.shape_cast %126 : vector<1x1x32x8xf32> to vector<32x8xf32>
    %cst_131 = arith.constant dense<0.000000e+00> : vector<8x8xf32>
    %128 = tpu.matmul %0, %127, %cst_131 {dimension_numbers = #tpu.dot_dimension_numbers<[1], [0], [0], [1], [0, 0, 1, 1], [], []>} : vector<8x32xf32>, vector<32x8xf32>, vector<8x8xf32> -> vector<8x8xf32>
    %c0_132 = arith.constant 0 : index
    %c3_133 = arith.constant 3 : index
    %c0_134 = arith.constant 0 : index
    %c0_135 = arith.constant 0 : index
    %129 = vector.load %arg6[%c0_132, %c3_133, %c0_134, %c0_135] : memref<2x4x1x8xf32, #tpu.memory_space<vmem>>, vector<1x1x1x8xf32>
    %130 = vector.shape_cast %129 : vector<1x1x1x8xf32> to vector<1x8xf32>
    %131 = vector.broadcast %130 : vector<1x8xf32> to vector<8x8xf32>
    %132 = arith.addf %128, %131 : vector<8x8xf32>
    %c0_136 = arith.constant 0 : index
    %c3_137 = arith.constant 3 : index
    %c0_138 = arith.constant 0 : index
    %c0_139 = arith.constant 0 : index
    %133 = vector.load %arg7[%c0_136, %c3_137, %c0_138, %c0_139] : memref<2x4x32x8xf32, #tpu.memory_space<vmem>>, vector<1x1x32x8xf32>
    %134 = vector.shape_cast %133 : vector<1x1x32x8xf32> to vector<32x8xf32>
    %cst_140 = arith.constant dense<0.000000e+00> : vector<8x8xf32>
    %135 = tpu.matmul %0, %134, %cst_140 {dimension_numbers = #tpu.dot_dimension_numbers<[1], [0], [0], [1], [0, 0, 1, 1], [], []>} : vector<8x32xf32>, vector<32x8xf32>, vector<8x8xf32> -> vector<8x8xf32>
    %c0_141 = arith.constant 0 : index
    %c3_142 = arith.constant 3 : index
    %c0_143 = arith.constant 0 : index
    %c0_144 = arith.constant 0 : index
    %136 = vector.load %arg8[%c0_141, %c3_142, %c0_143, %c0_144] : memref<2x4x1x8xf32, #tpu.memory_space<vmem>>, vector<1x1x1x8xf32>
    %137 = vector.shape_cast %136 : vector<1x1x1x8xf32> to vector<1x8xf32>
    %138 = vector.broadcast %137 : vector<1x8xf32> to vector<8x8xf32>
    %139 = arith.addf %135, %138 : vector<8x8xf32>
    %cst_145 = arith.constant dense<0.000000e+00> : vector<8x8xf32>
    %140 = tpu.matmul %125, %132, %cst_145 {dimension_numbers = #tpu.dot_dimension_numbers<[1], [1], [0], [0], [0, 0, 1, 0], [], []>} : vector<8x8xf32>, vector<8x8xf32>, vector<8x8xf32> -> vector<8x8xf32>
    %c0_146 = arith.constant 0 : index
    %c3_147 = arith.constant 3 : index
    %c0_148 = arith.constant 0 : index
    %c0_149 = arith.constant 0 : index
    %141 = vector.load %arg2[%c0_146, %c3_147, %c0_148, %c0_149] : memref<1x4x8x8xf32, #tpu.memory_space<vmem>>, vector<1x1x8x8xf32>
    %142 = vector.shape_cast %141 : vector<1x1x8x8xf32> to vector<8x8xf32>
    %143 = arith.addf %140, %142 : vector<8x8xf32>
    %cst_150 = arith.constant dense<0xFF800000> : vector<8xf32>
    %144 = vector.multi_reduction <maximumf>, %143, %cst_150 [1] : vector<8x8xf32> to vector<8xf32>
    %145 = vector.shape_cast %144 : vector<8xf32> to vector<8x1xf32>
    %146 = vector.broadcast %145 : vector<8x1xf32> to vector<8x8xf32>
    %147 = arith.subf %143, %146 : vector<8x8xf32>
    %148 = math.exp %147 : vector<8x8xf32>
    %cst_151 = arith.constant dense<0.000000e+00> : vector<8xf32>
    %149 = vector.multi_reduction <add>, %148, %cst_151 [1] : vector<8x8xf32> to vector<8xf32>
    %150 = vector.shape_cast %149 : vector<8xf32> to vector<8x1xf32>
    %151 = vector.broadcast %150 : vector<8x1xf32> to vector<8x8xf32>
    %152 = arith.divf %148, %151 : vector<8x8xf32>
    %cst_152 = arith.constant dense<0.000000e+00> : vector<8x8xf32>
    %153 = tpu.matmul %152, %139, %cst_152 {dimension_numbers = #tpu.dot_dimension_numbers<[1], [0], [0], [1], [0, 0, 1, 1], [], []>} : vector<8x8xf32>, vector<8x8xf32>, vector<8x8xf32> -> vector<8x8xf32>
    %c0_153 = arith.constant 0 : index
    %c3_154 = arith.constant 3 : index
    %c0_155 = arith.constant 0 : index
    %c0_156 = arith.constant 0 : index
    %154 = vector.load %arg9[%c0_153, %c3_154, %c0_155, %c0_156] : memref<2x4x8x32xf32, #tpu.memory_space<vmem>>, vector<1x1x8x32xf32>
    %155 = vector.shape_cast %154 : vector<1x1x8x32xf32> to vector<8x32xf32>
    %cst_157 = arith.constant dense<0.000000e+00> : vector<8x32xf32>
    %156 = tpu.matmul %153, %155, %cst_157 {dimension_numbers = #tpu.dot_dimension_numbers<[1], [0], [0], [1], [0, 0, 1, 1], [], []>} : vector<8x8xf32>, vector<8x32xf32>, vector<8x32xf32> -> vector<8x32xf32>
    %157 = arith.addf %118, %156 : vector<8x32xf32>
    %158 = arith.addf %0, %157 : vector<8x32xf32>
    %c0_158 = arith.constant 0 : index
    %c0_159 = arith.constant 0 : index
    %c0_160 = arith.constant 0 : index
    %159 = vector.load %arg10[%c0_158, %c0_159, %c0_160] : memref<2x1x32xf32, #tpu.memory_space<vmem>>, vector<1x1x32xf32>
    %160 = vector.shape_cast %159 : vector<1x1x32xf32> to vector<1x32xf32>
    %161 = vector.broadcast %160 : vector<1x32xf32> to vector<8x32xf32>
    %162 = arith.addf %158, %161 : vector<8x32xf32>
    %c0_161 = arith.constant 0 : index
    %c0_162 = arith.constant 0 : index
    %c0_163 = arith.constant 0 : index
    %163 = vector.load %arg11[%c0_161, %c0_162, %c0_163] : memref<2x1x32xf32, #tpu.memory_space<vmem>>, vector<1x1x32xf32>
    %164 = vector.shape_cast %163 : vector<1x1x32xf32> to vector<1x32xf32>
    %c0_164 = arith.constant 0 : index
    %c0_165 = arith.constant 0 : index
    %c0_166 = arith.constant 0 : index
    %165 = vector.load %arg12[%c0_164, %c0_165, %c0_166] : memref<2x1x32xf32, #tpu.memory_space<vmem>>, vector<1x1x32xf32>
    %166 = vector.shape_cast %165 : vector<1x1x32xf32> to vector<1x32xf32>
    %cst_167 = arith.constant dense<0.000000e+00> : vector<8xf32>
    %167 = vector.multi_reduction <add>, %162, %cst_167 [1] : vector<8x32xf32> to vector<8xf32>
    %168 = vector.shape_cast %167 : vector<8xf32> to vector<8x1xf32>
    %cst_168 = arith.constant 3.200000e+01 : f32
    %169 = vector.broadcast %cst_168 : f32 to vector<8x1xf32>
    %170 = arith.divf %168, %169 : vector<8x1xf32>
    %171 = vector.broadcast %170 : vector<8x1xf32> to vector<8x32xf32>
    %172 = arith.subf %162, %171 : vector<8x32xf32>
    %173 = arith.mulf %172, %172 : vector<8x32xf32>
    %cst_169 = arith.constant dense<0.000000e+00> : vector<8xf32>
    %174 = vector.multi_reduction <add>, %173, %cst_169 [1] : vector<8x32xf32> to vector<8xf32>
    %175 = vector.shape_cast %174 : vector<8xf32> to vector<8x1xf32>
    %cst_170 = arith.constant 3.200000e+01 : f32
    %176 = vector.broadcast %cst_170 : f32 to vector<8x1xf32>
    %177 = arith.divf %175, %176 : vector<8x1xf32>
    %cst_171 = arith.constant 9.99999974E-6 : f32
    %178 = vector.broadcast %cst_171 : f32 to vector<8x1xf32>
    %179 = arith.addf %177, %178 : vector<8x1xf32>
    %180 = math.rsqrt %179 : vector<8x1xf32>
    %181 = vector.broadcast %180 : vector<8x1xf32> to vector<8x32xf32>
    %182 = arith.mulf %172, %181 : vector<8x32xf32>
    %183 = vector.broadcast %164 : vector<1x32xf32> to vector<8x32xf32>
    %184 = arith.mulf %182, %183 : vector<8x32xf32>
    %185 = vector.broadcast %166 : vector<1x32xf32> to vector<8x32xf32>
    %186 = arith.addf %184, %185 : vector<8x32xf32>
    %c0_172 = arith.constant 0 : index
    %c0_173 = arith.constant 0 : index
    %c0_174 = arith.constant 0 : index
    %187 = vector.load %arg13[%c0_172, %c0_173, %c0_174] : memref<2x32x64xf32, #tpu.memory_space<vmem>>, vector<1x32x64xf32>
    %188 = vector.shape_cast %187 : vector<1x32x64xf32> to vector<32x64xf32>
    %cst_175 = arith.constant dense<0.000000e+00> : vector<8x64xf32>
    %189 = tpu.matmul %186, %188, %cst_175 {dimension_numbers = #tpu.dot_dimension_numbers<[1], [0], [0], [1], [0, 0, 1, 1], [], []>} : vector<8x32xf32>, vector<32x64xf32>, vector<8x64xf32> -> vector<8x64xf32>
    %c0_176 = arith.constant 0 : index
    %c0_177 = arith.constant 0 : index
    %c0_178 = arith.constant 0 : index
    %190 = vector.load %arg14[%c0_176, %c0_177, %c0_178] : memref<2x1x64xf32, #tpu.memory_space<vmem>>, vector<1x1x64xf32>
    %191 = vector.shape_cast %190 : vector<1x1x64xf32> to vector<1x64xf32>
    %192 = vector.broadcast %191 : vector<1x64xf32> to vector<8x64xf32>
    %193 = arith.addf %189, %192 : vector<8x64xf32>
    %cst_179 = arith.constant 5.000000e-01 : f32
    %194 = vector.broadcast %cst_179 : f32 to vector<8x64xf32>
    %195 = arith.mulf %194, %193 : vector<8x64xf32>
    %cst_180 = arith.constant 0.707106769 : f32
    %196 = vector.broadcast %cst_180 : f32 to vector<8x64xf32>
    %197 = arith.mulf %193, %196 : vector<8x64xf32>
    %cst_181 = arith.constant -4.000000e+00 : f32
    %cst_182 = arith.constant 4.000000e+00 : f32
    %198 = vector.broadcast %cst_181 : f32 to vector<8x64xf32>
    %199 = arith.maximumf %198, %197 : vector<8x64xf32>
    %200 = vector.broadcast %cst_182 : f32 to vector<8x64xf32>
    %201 = arith.minimumf %200, %199 : vector<8x64xf32>
    %202 = arith.mulf %201, %201 : vector<8x64xf32>
    %cst_183 = arith.constant -2.72614237E-10 : f32
    %203 = vector.broadcast %cst_183 : f32 to vector<8x64xf32>
    %204 = arith.mulf %203, %202 : vector<8x64xf32>
    %cst_184 = arith.constant 2.77068146E-8 : f32
    %205 = vector.broadcast %cst_184 : f32 to vector<8x64xf32>
    %206 = arith.addf %204, %205 : vector<8x64xf32>
    %207 = arith.mulf %206, %202 : vector<8x64xf32>
    %cst_185 = arith.constant -2.10102394E-6 : f32
    %208 = vector.broadcast %cst_185 : f32 to vector<8x64xf32>
    %209 = arith.addf %207, %208 : vector<8x64xf32>
    %210 = arith.mulf %209, %202 : vector<8x64xf32>
    %cst_186 = arith.constant -5.69250624E-5 : f32
    %211 = vector.broadcast %cst_186 : f32 to vector<8x64xf32>
    %212 = arith.addf %210, %211 : vector<8x64xf32>
    %213 = arith.mulf %212, %202 : vector<8x64xf32>
    %cst_187 = arith.constant -7.34990637E-4 : f32
    %214 = vector.broadcast %cst_187 : f32 to vector<8x64xf32>
    %215 = arith.addf %213, %214 : vector<8x64xf32>
    %216 = arith.mulf %215, %202 : vector<8x64xf32>
    %cst_188 = arith.constant -2.954600e-03 : f32
    %217 = vector.broadcast %cst_188 : f32 to vector<8x64xf32>
    %218 = arith.addf %216, %217 : vector<8x64xf32>
    %219 = arith.mulf %218, %202 : vector<8x64xf32>
    %cst_189 = arith.constant -0.0160960332 : f32
    %220 = vector.broadcast %cst_189 : f32 to vector<8x64xf32>
    %221 = arith.addf %219, %220 : vector<8x64xf32>
    %222 = arith.mulf %201, %221 : vector<8x64xf32>
    %cst_190 = arith.constant -1.45660715E-5 : f32
    %223 = vector.broadcast %cst_190 : f32 to vector<8x64xf32>
    %224 = arith.mulf %223, %202 : vector<8x64xf32>
    %cst_191 = arith.constant -2.13374049E-4 : f32
    %225 = vector.broadcast %cst_191 : f32 to vector<8x64xf32>
    %226 = arith.addf %224, %225 : vector<8x64xf32>
    %227 = arith.mulf %226, %202 : vector<8x64xf32>
    %cst_192 = arith.constant -0.00168282702 : f32
    %228 = vector.broadcast %cst_192 : f32 to vector<8x64xf32>
    %229 = arith.addf %227, %228 : vector<8x64xf32>
    %230 = arith.mulf %229, %202 : vector<8x64xf32>
    %cst_193 = arith.constant -0.00737332925 : f32
    %231 = vector.broadcast %cst_193 : f32 to vector<8x64xf32>
    %232 = arith.addf %230, %231 : vector<8x64xf32>
    %233 = arith.mulf %232, %202 : vector<8x64xf32>
    %cst_194 = arith.constant -0.0142647391 : f32
    %234 = vector.broadcast %cst_194 : f32 to vector<8x64xf32>
    %235 = arith.addf %233, %234 : vector<8x64xf32>
    %236 = arith.divf %222, %235 : vector<8x64xf32>
    %cst_195 = arith.constant 1.000000e+00 : f32
    %237 = vector.broadcast %cst_195 : f32 to vector<8x64xf32>
    %238 = arith.addf %237, %236 : vector<8x64xf32>
    %239 = arith.mulf %195, %238 : vector<8x64xf32>
    %c0_196 = arith.constant 0 : index
    %c0_197 = arith.constant 0 : index
    %c0_198 = arith.constant 0 : index
    %240 = vector.load %arg15[%c0_196, %c0_197, %c0_198] : memref<2x64x32xf32, #tpu.memory_space<vmem>>, vector<1x64x32xf32>
    %241 = vector.shape_cast %240 : vector<1x64x32xf32> to vector<64x32xf32>
    %cst_199 = arith.constant dense<0.000000e+00> : vector<8x32xf32>
    %242 = tpu.matmul %239, %241, %cst_199 {dimension_numbers = #tpu.dot_dimension_numbers<[1], [0], [0], [1], [0, 0, 1, 1], [], []>} : vector<8x64xf32>, vector<64x32xf32>, vector<8x32xf32> -> vector<8x32xf32>
    %c0_200 = arith.constant 0 : index
    %c0_201 = arith.constant 0 : index
    %c0_202 = arith.constant 0 : index
    %243 = vector.load %arg16[%c0_200, %c0_201, %c0_202] : memref<2x1x32xf32, #tpu.memory_space<vmem>>, vector<1x1x32xf32>
    %244 = vector.shape_cast %243 : vector<1x1x32xf32> to vector<1x32xf32>
    %245 = vector.broadcast %244 : vector<1x32xf32> to vector<8x32xf32>
    %246 = arith.addf %242, %245 : vector<8x32xf32>
    %247 = arith.addf %186, %246 : vector<8x32xf32>
    %c0_203 = arith.constant 0 : index
    %c0_204 = arith.constant 0 : index
    %c0_205 = arith.constant 0 : index
    %248 = vector.load %arg17[%c0_203, %c0_204, %c0_205] : memref<2x1x32xf32, #tpu.memory_space<vmem>>, vector<1x1x32xf32>
    %249 = vector.shape_cast %248 : vector<1x1x32xf32> to vector<1x32xf32>
    %c0_206 = arith.constant 0 : index
    %c0_207 = arith.constant 0 : index
    %c0_208 = arith.constant 0 : index
    %250 = vector.load %arg18[%c0_206, %c0_207, %c0_208] : memref<2x1x32xf32, #tpu.memory_space<vmem>>, vector<1x1x32xf32>
    %251 = vector.shape_cast %250 : vector<1x1x32xf32> to vector<1x32xf32>
    %cst_209 = arith.constant dense<0.000000e+00> : vector<8xf32>
    %252 = vector.multi_reduction <add>, %247, %cst_209 [1] : vector<8x32xf32> to vector<8xf32>
    %253 = vector.shape_cast %252 : vector<8xf32> to vector<8x1xf32>
    %cst_210 = arith.constant 3.200000e+01 : f32
    %254 = vector.broadcast %cst_210 : f32 to vector<8x1xf32>
    %255 = arith.divf %253, %254 : vector<8x1xf32>
    %256 = vector.broadcast %255 : vector<8x1xf32> to vector<8x32xf32>
    %257 = arith.subf %247, %256 : vector<8x32xf32>
    %258 = arith.mulf %257, %257 : vector<8x32xf32>
    %cst_211 = arith.constant dense<0.000000e+00> : vector<8xf32>
    %259 = vector.multi_reduction <add>, %258, %cst_211 [1] : vector<8x32xf32> to vector<8xf32>
    %260 = vector.shape_cast %259 : vector<8xf32> to vector<8x1xf32>
    %cst_212 = arith.constant 3.200000e+01 : f32
    %261 = vector.broadcast %cst_212 : f32 to vector<8x1xf32>
    %262 = arith.divf %260, %261 : vector<8x1xf32>
    %cst_213 = arith.constant 9.99999974E-6 : f32
    %263 = vector.broadcast %cst_213 : f32 to vector<8x1xf32>
    %264 = arith.addf %262, %263 : vector<8x1xf32>
    %265 = math.rsqrt %264 : vector<8x1xf32>
    %266 = vector.broadcast %265 : vector<8x1xf32> to vector<8x32xf32>
    %267 = arith.mulf %257, %266 : vector<8x32xf32>
    %268 = vector.broadcast %249 : vector<1x32xf32> to vector<8x32xf32>
    %269 = arith.mulf %267, %268 : vector<8x32xf32>
    %270 = vector.broadcast %251 : vector<1x32xf32> to vector<8x32xf32>
    %271 = arith.addf %269, %270 : vector<8x32xf32>
    %cst_214 = arith.constant 0.000000e+00 : f32
    %272 = vector.broadcast %cst_214 : f32 to vector<8x32xf32>
    %c1_215 = arith.constant 1 : index
    %c0_216 = arith.constant 0 : index
    %c0_217 = arith.constant 0 : index
    %c0_218 = arith.constant 0 : index
    %273 = vector.load %arg3[%c1_215, %c0_216, %c0_217, %c0_218] : memref<2x4x32x8xf32, #tpu.memory_space<vmem>>, vector<1x1x32x8xf32>
    %274 = vector.shape_cast %273 : vector<1x1x32x8xf32> to vector<32x8xf32>
    %cst_219 = arith.constant dense<0.000000e+00> : vector<8x8xf32>
    %275 = tpu.matmul %271, %274, %cst_219 {dimension_numbers = #tpu.dot_dimension_numbers<[1], [0], [0], [1], [0, 0, 1, 1], [], []>} : vector<8x32xf32>, vector<32x8xf32>, vector<8x8xf32> -> vector<8x8xf32>
    %c1_220 = arith.constant 1 : index
    %c0_221 = arith.constant 0 : index
    %c0_222 = arith.constant 0 : index
    %c0_223 = arith.constant 0 : index
    %276 = vector.load %arg4[%c1_220, %c0_221, %c0_222, %c0_223] : memref<2x4x1x8xf32, #tpu.memory_space<vmem>>, vector<1x1x1x8xf32>
    %277 = vector.shape_cast %276 : vector<1x1x1x8xf32> to vector<1x8xf32>
    %278 = vector.broadcast %277 : vector<1x8xf32> to vector<8x8xf32>
    %279 = arith.addf %275, %278 : vector<8x8xf32>
    %c1_224 = arith.constant 1 : index
    %c0_225 = arith.constant 0 : index
    %c0_226 = arith.constant 0 : index
    %c0_227 = arith.constant 0 : index
    %280 = vector.load %arg5[%c1_224, %c0_225, %c0_226, %c0_227] : memref<2x4x32x8xf32, #tpu.memory_space<vmem>>, vector<1x1x32x8xf32>
    %281 = vector.shape_cast %280 : vector<1x1x32x8xf32> to vector<32x8xf32>
    %cst_228 = arith.constant dense<0.000000e+00> : vector<8x8xf32>
    %282 = tpu.matmul %271, %281, %cst_228 {dimension_numbers = #tpu.dot_dimension_numbers<[1], [0], [0], [1], [0, 0, 1, 1], [], []>} : vector<8x32xf32>, vector<32x8xf32>, vector<8x8xf32> -> vector<8x8xf32>
    %c1_229 = arith.constant 1 : index
    %c0_230 = arith.constant 0 : index
    %c0_231 = arith.constant 0 : index
    %c0_232 = arith.constant 0 : index
    %283 = vector.load %arg6[%c1_229, %c0_230, %c0_231, %c0_232] : memref<2x4x1x8xf32, #tpu.memory_space<vmem>>, vector<1x1x1x8xf32>
    %284 = vector.shape_cast %283 : vector<1x1x1x8xf32> to vector<1x8xf32>
    %285 = vector.broadcast %284 : vector<1x8xf32> to vector<8x8xf32>
    %286 = arith.addf %282, %285 : vector<8x8xf32>
    %c1_233 = arith.constant 1 : index
    %c0_234 = arith.constant 0 : index
    %c0_235 = arith.constant 0 : index
    %c0_236 = arith.constant 0 : index
    %287 = vector.load %arg7[%c1_233, %c0_234, %c0_235, %c0_236] : memref<2x4x32x8xf32, #tpu.memory_space<vmem>>, vector<1x1x32x8xf32>
    %288 = vector.shape_cast %287 : vector<1x1x32x8xf32> to vector<32x8xf32>
    %cst_237 = arith.constant dense<0.000000e+00> : vector<8x8xf32>
    %289 = tpu.matmul %271, %288, %cst_237 {dimension_numbers = #tpu.dot_dimension_numbers<[1], [0], [0], [1], [0, 0, 1, 1], [], []>} : vector<8x32xf32>, vector<32x8xf32>, vector<8x8xf32> -> vector<8x8xf32>
    %c1_238 = arith.constant 1 : index
    %c0_239 = arith.constant 0 : index
    %c0_240 = arith.constant 0 : index
    %c0_241 = arith.constant 0 : index
    %290 = vector.load %arg8[%c1_238, %c0_239, %c0_240, %c0_241] : memref<2x4x1x8xf32, #tpu.memory_space<vmem>>, vector<1x1x1x8xf32>
    %291 = vector.shape_cast %290 : vector<1x1x1x8xf32> to vector<1x8xf32>
    %292 = vector.broadcast %291 : vector<1x8xf32> to vector<8x8xf32>
    %293 = arith.addf %289, %292 : vector<8x8xf32>
    %cst_242 = arith.constant dense<0.000000e+00> : vector<8x8xf32>
    %294 = tpu.matmul %279, %286, %cst_242 {dimension_numbers = #tpu.dot_dimension_numbers<[1], [1], [0], [0], [0, 0, 1, 0], [], []>} : vector<8x8xf32>, vector<8x8xf32>, vector<8x8xf32> -> vector<8x8xf32>
    %c0_243 = arith.constant 0 : index
    %c0_244 = arith.constant 0 : index
    %c0_245 = arith.constant 0 : index
    %c0_246 = arith.constant 0 : index
    %295 = vector.load %arg2[%c0_243, %c0_244, %c0_245, %c0_246] : memref<1x4x8x8xf32, #tpu.memory_space<vmem>>, vector<1x1x8x8xf32>
    %296 = vector.shape_cast %295 : vector<1x1x8x8xf32> to vector<8x8xf32>
    %297 = arith.addf %294, %296 : vector<8x8xf32>
    %cst_247 = arith.constant dense<0xFF800000> : vector<8xf32>
    %298 = vector.multi_reduction <maximumf>, %297, %cst_247 [1] : vector<8x8xf32> to vector<8xf32>
    %299 = vector.shape_cast %298 : vector<8xf32> to vector<8x1xf32>
    %300 = vector.broadcast %299 : vector<8x1xf32> to vector<8x8xf32>
    %301 = arith.subf %297, %300 : vector<8x8xf32>
    %302 = math.exp %301 : vector<8x8xf32>
    %cst_248 = arith.constant dense<0.000000e+00> : vector<8xf32>
    %303 = vector.multi_reduction <add>, %302, %cst_248 [1] : vector<8x8xf32> to vector<8xf32>
    %304 = vector.shape_cast %303 : vector<8xf32> to vector<8x1xf32>
    %305 = vector.broadcast %304 : vector<8x1xf32> to vector<8x8xf32>
    %306 = arith.divf %302, %305 : vector<8x8xf32>
    %cst_249 = arith.constant dense<0.000000e+00> : vector<8x8xf32>
    %307 = tpu.matmul %306, %293, %cst_249 {dimension_numbers = #tpu.dot_dimension_numbers<[1], [0], [0], [1], [0, 0, 1, 1], [], []>} : vector<8x8xf32>, vector<8x8xf32>, vector<8x8xf32> -> vector<8x8xf32>
    %c1_250 = arith.constant 1 : index
    %c0_251 = arith.constant 0 : index
    %c0_252 = arith.constant 0 : index
    %c0_253 = arith.constant 0 : index
    %308 = vector.load %arg9[%c1_250, %c0_251, %c0_252, %c0_253] : memref<2x4x8x32xf32, #tpu.memory_space<vmem>>, vector<1x1x8x32xf32>
    %309 = vector.shape_cast %308 : vector<1x1x8x32xf32> to vector<8x32xf32>
    %cst_254 = arith.constant dense<0.000000e+00> : vector<8x32xf32>
    %310 = tpu.matmul %307, %309, %cst_254 {dimension_numbers = #tpu.dot_dimension_numbers<[1], [0], [0], [1], [0, 0, 1, 1], [], []>} : vector<8x8xf32>, vector<8x32xf32>, vector<8x32xf32> -> vector<8x32xf32>
    %311 = arith.addf %272, %310 : vector<8x32xf32>
    %c1_255 = arith.constant 1 : index
    %c1_256 = arith.constant 1 : index
    %c0_257 = arith.constant 0 : index
    %c0_258 = arith.constant 0 : index
    %312 = vector.load %arg3[%c1_255, %c1_256, %c0_257, %c0_258] : memref<2x4x32x8xf32, #tpu.memory_space<vmem>>, vector<1x1x32x8xf32>
    %313 = vector.shape_cast %312 : vector<1x1x32x8xf32> to vector<32x8xf32>
    %cst_259 = arith.constant dense<0.000000e+00> : vector<8x8xf32>
    %314 = tpu.matmul %271, %313, %cst_259 {dimension_numbers = #tpu.dot_dimension_numbers<[1], [0], [0], [1], [0, 0, 1, 1], [], []>} : vector<8x32xf32>, vector<32x8xf32>, vector<8x8xf32> -> vector<8x8xf32>
    %c1_260 = arith.constant 1 : index
    %c1_261 = arith.constant 1 : index
    %c0_262 = arith.constant 0 : index
    %c0_263 = arith.constant 0 : index
    %315 = vector.load %arg4[%c1_260, %c1_261, %c0_262, %c0_263] : memref<2x4x1x8xf32, #tpu.memory_space<vmem>>, vector<1x1x1x8xf32>
    %316 = vector.shape_cast %315 : vector<1x1x1x8xf32> to vector<1x8xf32>
    %317 = vector.broadcast %316 : vector<1x8xf32> to vector<8x8xf32>
    %318 = arith.addf %314, %317 : vector<8x8xf32>
    %c1_264 = arith.constant 1 : index
    %c1_265 = arith.constant 1 : index
    %c0_266 = arith.constant 0 : index
    %c0_267 = arith.constant 0 : index
    %319 = vector.load %arg5[%c1_264, %c1_265, %c0_266, %c0_267] : memref<2x4x32x8xf32, #tpu.memory_space<vmem>>, vector<1x1x32x8xf32>
    %320 = vector.shape_cast %319 : vector<1x1x32x8xf32> to vector<32x8xf32>
    %cst_268 = arith.constant dense<0.000000e+00> : vector<8x8xf32>
    %321 = tpu.matmul %271, %320, %cst_268 {dimension_numbers = #tpu.dot_dimension_numbers<[1], [0], [0], [1], [0, 0, 1, 1], [], []>} : vector<8x32xf32>, vector<32x8xf32>, vector<8x8xf32> -> vector<8x8xf32>
    %c1_269 = arith.constant 1 : index
    %c1_270 = arith.constant 1 : index
    %c0_271 = arith.constant 0 : index
    %c0_272 = arith.constant 0 : index
    %322 = vector.load %arg6[%c1_269, %c1_270, %c0_271, %c0_272] : memref<2x4x1x8xf32, #tpu.memory_space<vmem>>, vector<1x1x1x8xf32>
    %323 = vector.shape_cast %322 : vector<1x1x1x8xf32> to vector<1x8xf32>
    %324 = vector.broadcast %323 : vector<1x8xf32> to vector<8x8xf32>
    %325 = arith.addf %321, %324 : vector<8x8xf32>
    %c1_273 = arith.constant 1 : index
    %c1_274 = arith.constant 1 : index
    %c0_275 = arith.constant 0 : index
    %c0_276 = arith.constant 0 : index
    %326 = vector.load %arg7[%c1_273, %c1_274, %c0_275, %c0_276] : memref<2x4x32x8xf32, #tpu.memory_space<vmem>>, vector<1x1x32x8xf32>
    %327 = vector.shape_cast %326 : vector<1x1x32x8xf32> to vector<32x8xf32>
    %cst_277 = arith.constant dense<0.000000e+00> : vector<8x8xf32>
    %328 = tpu.matmul %271, %327, %cst_277 {dimension_numbers = #tpu.dot_dimension_numbers<[1], [0], [0], [1], [0, 0, 1, 1], [], []>} : vector<8x32xf32>, vector<32x8xf32>, vector<8x8xf32> -> vector<8x8xf32>
    %c1_278 = arith.constant 1 : index
    %c1_279 = arith.constant 1 : index
    %c0_280 = arith.constant 0 : index
    %c0_281 = arith.constant 0 : index
    %329 = vector.load %arg8[%c1_278, %c1_279, %c0_280, %c0_281] : memref<2x4x1x8xf32, #tpu.memory_space<vmem>>, vector<1x1x1x8xf32>
    %330 = vector.shape_cast %329 : vector<1x1x1x8xf32> to vector<1x8xf32>
    %331 = vector.broadcast %330 : vector<1x8xf32> to vector<8x8xf32>
    %332 = arith.addf %328, %331 : vector<8x8xf32>
    %cst_282 = arith.constant dense<0.000000e+00> : vector<8x8xf32>
    %333 = tpu.matmul %318, %325, %cst_282 {dimension_numbers = #tpu.dot_dimension_numbers<[1], [1], [0], [0], [0, 0, 1, 0], [], []>} : vector<8x8xf32>, vector<8x8xf32>, vector<8x8xf32> -> vector<8x8xf32>
    %c0_283 = arith.constant 0 : index
    %c1_284 = arith.constant 1 : index
    %c0_285 = arith.constant 0 : index
    %c0_286 = arith.constant 0 : index
    %334 = vector.load %arg2[%c0_283, %c1_284, %c0_285, %c0_286] : memref<1x4x8x8xf32, #tpu.memory_space<vmem>>, vector<1x1x8x8xf32>
    %335 = vector.shape_cast %334 : vector<1x1x8x8xf32> to vector<8x8xf32>
    %336 = arith.addf %333, %335 : vector<8x8xf32>
    %cst_287 = arith.constant dense<0xFF800000> : vector<8xf32>
    %337 = vector.multi_reduction <maximumf>, %336, %cst_287 [1] : vector<8x8xf32> to vector<8xf32>
    %338 = vector.shape_cast %337 : vector<8xf32> to vector<8x1xf32>
    %339 = vector.broadcast %338 : vector<8x1xf32> to vector<8x8xf32>
    %340 = arith.subf %336, %339 : vector<8x8xf32>
    %341 = math.exp %340 : vector<8x8xf32>
    %cst_288 = arith.constant dense<0.000000e+00> : vector<8xf32>
    %342 = vector.multi_reduction <add>, %341, %cst_288 [1] : vector<8x8xf32> to vector<8xf32>
    %343 = vector.shape_cast %342 : vector<8xf32> to vector<8x1xf32>
    %344 = vector.broadcast %343 : vector<8x1xf32> to vector<8x8xf32>
    %345 = arith.divf %341, %344 : vector<8x8xf32>
    %cst_289 = arith.constant dense<0.000000e+00> : vector<8x8xf32>
    %346 = tpu.matmul %345, %332, %cst_289 {dimension_numbers = #tpu.dot_dimension_numbers<[1], [0], [0], [1], [0, 0, 1, 1], [], []>} : vector<8x8xf32>, vector<8x8xf32>, vector<8x8xf32> -> vector<8x8xf32>
    %c1_290 = arith.constant 1 : index
    %c1_291 = arith.constant 1 : index
    %c0_292 = arith.constant 0 : index
    %c0_293 = arith.constant 0 : index
    %347 = vector.load %arg9[%c1_290, %c1_291, %c0_292, %c0_293] : memref<2x4x8x32xf32, #tpu.memory_space<vmem>>, vector<1x1x8x32xf32>
    %348 = vector.shape_cast %347 : vector<1x1x8x32xf32> to vector<8x32xf32>
    %cst_294 = arith.constant dense<0.000000e+00> : vector<8x32xf32>
    %349 = tpu.matmul %346, %348, %cst_294 {dimension_numbers = #tpu.dot_dimension_numbers<[1], [0], [0], [1], [0, 0, 1, 1], [], []>} : vector<8x8xf32>, vector<8x32xf32>, vector<8x32xf32> -> vector<8x32xf32>
    %350 = arith.addf %311, %349 : vector<8x32xf32>
    %c1_295 = arith.constant 1 : index
    %c2_296 = arith.constant 2 : index
    %c0_297 = arith.constant 0 : index
    %c0_298 = arith.constant 0 : index
    %351 = vector.load %arg3[%c1_295, %c2_296, %c0_297, %c0_298] : memref<2x4x32x8xf32, #tpu.memory_space<vmem>>, vector<1x1x32x8xf32>
    %352 = vector.shape_cast %351 : vector<1x1x32x8xf32> to vector<32x8xf32>
    %cst_299 = arith.constant dense<0.000000e+00> : vector<8x8xf32>
    %353 = tpu.matmul %271, %352, %cst_299 {dimension_numbers = #tpu.dot_dimension_numbers<[1], [0], [0], [1], [0, 0, 1, 1], [], []>} : vector<8x32xf32>, vector<32x8xf32>, vector<8x8xf32> -> vector<8x8xf32>
    %c1_300 = arith.constant 1 : index
    %c2_301 = arith.constant 2 : index
    %c0_302 = arith.constant 0 : index
    %c0_303 = arith.constant 0 : index
    %354 = vector.load %arg4[%c1_300, %c2_301, %c0_302, %c0_303] : memref<2x4x1x8xf32, #tpu.memory_space<vmem>>, vector<1x1x1x8xf32>
    %355 = vector.shape_cast %354 : vector<1x1x1x8xf32> to vector<1x8xf32>
    %356 = vector.broadcast %355 : vector<1x8xf32> to vector<8x8xf32>
    %357 = arith.addf %353, %356 : vector<8x8xf32>
    %c1_304 = arith.constant 1 : index
    %c2_305 = arith.constant 2 : index
    %c0_306 = arith.constant 0 : index
    %c0_307 = arith.constant 0 : index
    %358 = vector.load %arg5[%c1_304, %c2_305, %c0_306, %c0_307] : memref<2x4x32x8xf32, #tpu.memory_space<vmem>>, vector<1x1x32x8xf32>
    %359 = vector.shape_cast %358 : vector<1x1x32x8xf32> to vector<32x8xf32>
    %cst_308 = arith.constant dense<0.000000e+00> : vector<8x8xf32>
    %360 = tpu.matmul %271, %359, %cst_308 {dimension_numbers = #tpu.dot_dimension_numbers<[1], [0], [0], [1], [0, 0, 1, 1], [], []>} : vector<8x32xf32>, vector<32x8xf32>, vector<8x8xf32> -> vector<8x8xf32>
    %c1_309 = arith.constant 1 : index
    %c2_310 = arith.constant 2 : index
    %c0_311 = arith.constant 0 : index
    %c0_312 = arith.constant 0 : index
    %361 = vector.load %arg6[%c1_309, %c2_310, %c0_311, %c0_312] : memref<2x4x1x8xf32, #tpu.memory_space<vmem>>, vector<1x1x1x8xf32>
    %362 = vector.shape_cast %361 : vector<1x1x1x8xf32> to vector<1x8xf32>
    %363 = vector.broadcast %362 : vector<1x8xf32> to vector<8x8xf32>
    %364 = arith.addf %360, %363 : vector<8x8xf32>
    %c1_313 = arith.constant 1 : index
    %c2_314 = arith.constant 2 : index
    %c0_315 = arith.constant 0 : index
    %c0_316 = arith.constant 0 : index
    %365 = vector.load %arg7[%c1_313, %c2_314, %c0_315, %c0_316] : memref<2x4x32x8xf32, #tpu.memory_space<vmem>>, vector<1x1x32x8xf32>
    %366 = vector.shape_cast %365 : vector<1x1x32x8xf32> to vector<32x8xf32>
    %cst_317 = arith.constant dense<0.000000e+00> : vector<8x8xf32>
    %367 = tpu.matmul %271, %366, %cst_317 {dimension_numbers = #tpu.dot_dimension_numbers<[1], [0], [0], [1], [0, 0, 1, 1], [], []>} : vector<8x32xf32>, vector<32x8xf32>, vector<8x8xf32> -> vector<8x8xf32>
    %c1_318 = arith.constant 1 : index
    %c2_319 = arith.constant 2 : index
    %c0_320 = arith.constant 0 : index
    %c0_321 = arith.constant 0 : index
    %368 = vector.load %arg8[%c1_318, %c2_319, %c0_320, %c0_321] : memref<2x4x1x8xf32, #tpu.memory_space<vmem>>, vector<1x1x1x8xf32>
    %369 = vector.shape_cast %368 : vector<1x1x1x8xf32> to vector<1x8xf32>
    %370 = vector.broadcast %369 : vector<1x8xf32> to vector<8x8xf32>
    %371 = arith.addf %367, %370 : vector<8x8xf32>
    %cst_322 = arith.constant dense<0.000000e+00> : vector<8x8xf32>
    %372 = tpu.matmul %357, %364, %cst_322 {dimension_numbers = #tpu.dot_dimension_numbers<[1], [1], [0], [0], [0, 0, 1, 0], [], []>} : vector<8x8xf32>, vector<8x8xf32>, vector<8x8xf32> -> vector<8x8xf32>
    %c0_323 = arith.constant 0 : index
    %c2_324 = arith.constant 2 : index
    %c0_325 = arith.constant 0 : index
    %c0_326 = arith.constant 0 : index
    %373 = vector.load %arg2[%c0_323, %c2_324, %c0_325, %c0_326] : memref<1x4x8x8xf32, #tpu.memory_space<vmem>>, vector<1x1x8x8xf32>
    %374 = vector.shape_cast %373 : vector<1x1x8x8xf32> to vector<8x8xf32>
    %375 = arith.addf %372, %374 : vector<8x8xf32>
    %cst_327 = arith.constant dense<0xFF800000> : vector<8xf32>
    %376 = vector.multi_reduction <maximumf>, %375, %cst_327 [1] : vector<8x8xf32> to vector<8xf32>
    %377 = vector.shape_cast %376 : vector<8xf32> to vector<8x1xf32>
    %378 = vector.broadcast %377 : vector<8x1xf32> to vector<8x8xf32>
    %379 = arith.subf %375, %378 : vector<8x8xf32>
    %380 = math.exp %379 : vector<8x8xf32>
    %cst_328 = arith.constant dense<0.000000e+00> : vector<8xf32>
    %381 = vector.multi_reduction <add>, %380, %cst_328 [1] : vector<8x8xf32> to vector<8xf32>
    %382 = vector.shape_cast %381 : vector<8xf32> to vector<8x1xf32>
    %383 = vector.broadcast %382 : vector<8x1xf32> to vector<8x8xf32>
    %384 = arith.divf %380, %383 : vector<8x8xf32>
    %cst_329 = arith.constant dense<0.000000e+00> : vector<8x8xf32>
    %385 = tpu.matmul %384, %371, %cst_329 {dimension_numbers = #tpu.dot_dimension_numbers<[1], [0], [0], [1], [0, 0, 1, 1], [], []>} : vector<8x8xf32>, vector<8x8xf32>, vector<8x8xf32> -> vector<8x8xf32>
    %c1_330 = arith.constant 1 : index
    %c2_331 = arith.constant 2 : index
    %c0_332 = arith.constant 0 : index
    %c0_333 = arith.constant 0 : index
    %386 = vector.load %arg9[%c1_330, %c2_331, %c0_332, %c0_333] : memref<2x4x8x32xf32, #tpu.memory_space<vmem>>, vector<1x1x8x32xf32>
    %387 = vector.shape_cast %386 : vector<1x1x8x32xf32> to vector<8x32xf32>
    %cst_334 = arith.constant dense<0.000000e+00> : vector<8x32xf32>
    %388 = tpu.matmul %385, %387, %cst_334 {dimension_numbers = #tpu.dot_dimension_numbers<[1], [0], [0], [1], [0, 0, 1, 1], [], []>} : vector<8x8xf32>, vector<8x32xf32>, vector<8x32xf32> -> vector<8x32xf32>
    %389 = arith.addf %350, %388 : vector<8x32xf32>
    %c1_335 = arith.constant 1 : index
    %c3_336 = arith.constant 3 : index
    %c0_337 = arith.constant 0 : index
    %c0_338 = arith.constant 0 : index
    %390 = vector.load %arg3[%c1_335, %c3_336, %c0_337, %c0_338] : memref<2x4x32x8xf32, #tpu.memory_space<vmem>>, vector<1x1x32x8xf32>
    %391 = vector.shape_cast %390 : vector<1x1x32x8xf32> to vector<32x8xf32>
    %cst_339 = arith.constant dense<0.000000e+00> : vector<8x8xf32>
    %392 = tpu.matmul %271, %391, %cst_339 {dimension_numbers = #tpu.dot_dimension_numbers<[1], [0], [0], [1], [0, 0, 1, 1], [], []>} : vector<8x32xf32>, vector<32x8xf32>, vector<8x8xf32> -> vector<8x8xf32>
    %c1_340 = arith.constant 1 : index
    %c3_341 = arith.constant 3 : index
    %c0_342 = arith.constant 0 : index
    %c0_343 = arith.constant 0 : index
    %393 = vector.load %arg4[%c1_340, %c3_341, %c0_342, %c0_343] : memref<2x4x1x8xf32, #tpu.memory_space<vmem>>, vector<1x1x1x8xf32>
    %394 = vector.shape_cast %393 : vector<1x1x1x8xf32> to vector<1x8xf32>
    %395 = vector.broadcast %394 : vector<1x8xf32> to vector<8x8xf32>
    %396 = arith.addf %392, %395 : vector<8x8xf32>
    %c1_344 = arith.constant 1 : index
    %c3_345 = arith.constant 3 : index
    %c0_346 = arith.constant 0 : index
    %c0_347 = arith.constant 0 : index
    %397 = vector.load %arg5[%c1_344, %c3_345, %c0_346, %c0_347] : memref<2x4x32x8xf32, #tpu.memory_space<vmem>>, vector<1x1x32x8xf32>
    %398 = vector.shape_cast %397 : vector<1x1x32x8xf32> to vector<32x8xf32>
    %cst_348 = arith.constant dense<0.000000e+00> : vector<8x8xf32>
    %399 = tpu.matmul %271, %398, %cst_348 {dimension_numbers = #tpu.dot_dimension_numbers<[1], [0], [0], [1], [0, 0, 1, 1], [], []>} : vector<8x32xf32>, vector<32x8xf32>, vector<8x8xf32> -> vector<8x8xf32>
    %c1_349 = arith.constant 1 : index
    %c3_350 = arith.constant 3 : index
    %c0_351 = arith.constant 0 : index
    %c0_352 = arith.constant 0 : index
    %400 = vector.load %arg6[%c1_349, %c3_350, %c0_351, %c0_352] : memref<2x4x1x8xf32, #tpu.memory_space<vmem>>, vector<1x1x1x8xf32>
    %401 = vector.shape_cast %400 : vector<1x1x1x8xf32> to vector<1x8xf32>
    %402 = vector.broadcast %401 : vector<1x8xf32> to vector<8x8xf32>
    %403 = arith.addf %399, %402 : vector<8x8xf32>
    %c1_353 = arith.constant 1 : index
    %c3_354 = arith.constant 3 : index
    %c0_355 = arith.constant 0 : index
    %c0_356 = arith.constant 0 : index
    %404 = vector.load %arg7[%c1_353, %c3_354, %c0_355, %c0_356] : memref<2x4x32x8xf32, #tpu.memory_space<vmem>>, vector<1x1x32x8xf32>
    %405 = vector.shape_cast %404 : vector<1x1x32x8xf32> to vector<32x8xf32>
    %cst_357 = arith.constant dense<0.000000e+00> : vector<8x8xf32>
    %406 = tpu.matmul %271, %405, %cst_357 {dimension_numbers = #tpu.dot_dimension_numbers<[1], [0], [0], [1], [0, 0, 1, 1], [], []>} : vector<8x32xf32>, vector<32x8xf32>, vector<8x8xf32> -> vector<8x8xf32>
    %c1_358 = arith.constant 1 : index
    %c3_359 = arith.constant 3 : index
    %c0_360 = arith.constant 0 : index
    %c0_361 = arith.constant 0 : index
    %407 = vector.load %arg8[%c1_358, %c3_359, %c0_360, %c0_361] : memref<2x4x1x8xf32, #tpu.memory_space<vmem>>, vector<1x1x1x8xf32>
    %408 = vector.shape_cast %407 : vector<1x1x1x8xf32> to vector<1x8xf32>
    %409 = vector.broadcast %408 : vector<1x8xf32> to vector<8x8xf32>
    %410 = arith.addf %406, %409 : vector<8x8xf32>
    %cst_362 = arith.constant dense<0.000000e+00> : vector<8x8xf32>
    %411 = tpu.matmul %396, %403, %cst_362 {dimension_numbers = #tpu.dot_dimension_numbers<[1], [1], [0], [0], [0, 0, 1, 0], [], []>} : vector<8x8xf32>, vector<8x8xf32>, vector<8x8xf32> -> vector<8x8xf32>
    %c0_363 = arith.constant 0 : index
    %c3_364 = arith.constant 3 : index
    %c0_365 = arith.constant 0 : index
    %c0_366 = arith.constant 0 : index
    %412 = vector.load %arg2[%c0_363, %c3_364, %c0_365, %c0_366] : memref<1x4x8x8xf32, #tpu.memory_space<vmem>>, vector<1x1x8x8xf32>
    %413 = vector.shape_cast %412 : vector<1x1x8x8xf32> to vector<8x8xf32>
    %414 = arith.addf %411, %413 : vector<8x8xf32>
    %cst_367 = arith.constant dense<0xFF800000> : vector<8xf32>
    %415 = vector.multi_reduction <maximumf>, %414, %cst_367 [1] : vector<8x8xf32> to vector<8xf32>
    %416 = vector.shape_cast %415 : vector<8xf32> to vector<8x1xf32>
    %417 = vector.broadcast %416 : vector<8x1xf32> to vector<8x8xf32>
    %418 = arith.subf %414, %417 : vector<8x8xf32>
    %419 = math.exp %418 : vector<8x8xf32>
    %cst_368 = arith.constant dense<0.000000e+00> : vector<8xf32>
    %420 = vector.multi_reduction <add>, %419, %cst_368 [1] : vector<8x8xf32> to vector<8xf32>
    %421 = vector.shape_cast %420 : vector<8xf32> to vector<8x1xf32>
    %422 = vector.broadcast %421 : vector<8x1xf32> to vector<8x8xf32>
    %423 = arith.divf %419, %422 : vector<8x8xf32>
    %cst_369 = arith.constant dense<0.000000e+00> : vector<8x8xf32>
    %424 = tpu.matmul %423, %410, %cst_369 {dimension_numbers = #tpu.dot_dimension_numbers<[1], [0], [0], [1], [0, 0, 1, 1], [], []>} : vector<8x8xf32>, vector<8x8xf32>, vector<8x8xf32> -> vector<8x8xf32>
    %c1_370 = arith.constant 1 : index
    %c3_371 = arith.constant 3 : index
    %c0_372 = arith.constant 0 : index
    %c0_373 = arith.constant 0 : index
    %425 = vector.load %arg9[%c1_370, %c3_371, %c0_372, %c0_373] : memref<2x4x8x32xf32, #tpu.memory_space<vmem>>, vector<1x1x8x32xf32>
    %426 = vector.shape_cast %425 : vector<1x1x8x32xf32> to vector<8x32xf32>
    %cst_374 = arith.constant dense<0.000000e+00> : vector<8x32xf32>
    %427 = tpu.matmul %424, %426, %cst_374 {dimension_numbers = #tpu.dot_dimension_numbers<[1], [0], [0], [1], [0, 0, 1, 1], [], []>} : vector<8x8xf32>, vector<8x32xf32>, vector<8x32xf32> -> vector<8x32xf32>
    %428 = arith.addf %389, %427 : vector<8x32xf32>
    %429 = arith.addf %271, %428 : vector<8x32xf32>
    %c1_375 = arith.constant 1 : index
    %c0_376 = arith.constant 0 : index
    %c0_377 = arith.constant 0 : index
    %430 = vector.load %arg10[%c1_375, %c0_376, %c0_377] : memref<2x1x32xf32, #tpu.memory_space<vmem>>, vector<1x1x32xf32>
    %431 = vector.shape_cast %430 : vector<1x1x32xf32> to vector<1x32xf32>
    %432 = vector.broadcast %431 : vector<1x32xf32> to vector<8x32xf32>
    %433 = arith.addf %429, %432 : vector<8x32xf32>
    %c1_378 = arith.constant 1 : index
    %c0_379 = arith.constant 0 : index
    %c0_380 = arith.constant 0 : index
    %434 = vector.load %arg11[%c1_378, %c0_379, %c0_380] : memref<2x1x32xf32, #tpu.memory_space<vmem>>, vector<1x1x32xf32>
    %435 = vector.shape_cast %434 : vector<1x1x32xf32> to vector<1x32xf32>
    %c1_381 = arith.constant 1 : index
    %c0_382 = arith.constant 0 : index
    %c0_383 = arith.constant 0 : index
    %436 = vector.load %arg12[%c1_381, %c0_382, %c0_383] : memref<2x1x32xf32, #tpu.memory_space<vmem>>, vector<1x1x32xf32>
    %437 = vector.shape_cast %436 : vector<1x1x32xf32> to vector<1x32xf32>
    %cst_384 = arith.constant dense<0.000000e+00> : vector<8xf32>
    %438 = vector.multi_reduction <add>, %433, %cst_384 [1] : vector<8x32xf32> to vector<8xf32>
    %439 = vector.shape_cast %438 : vector<8xf32> to vector<8x1xf32>
    %cst_385 = arith.constant 3.200000e+01 : f32
    %440 = vector.broadcast %cst_385 : f32 to vector<8x1xf32>
    %441 = arith.divf %439, %440 : vector<8x1xf32>
    %442 = vector.broadcast %441 : vector<8x1xf32> to vector<8x32xf32>
    %443 = arith.subf %433, %442 : vector<8x32xf32>
    %444 = arith.mulf %443, %443 : vector<8x32xf32>
    %cst_386 = arith.constant dense<0.000000e+00> : vector<8xf32>
    %445 = vector.multi_reduction <add>, %444, %cst_386 [1] : vector<8x32xf32> to vector<8xf32>
    %446 = vector.shape_cast %445 : vector<8xf32> to vector<8x1xf32>
    %cst_387 = arith.constant 3.200000e+01 : f32
    %447 = vector.broadcast %cst_387 : f32 to vector<8x1xf32>
    %448 = arith.divf %446, %447 : vector<8x1xf32>
    %cst_388 = arith.constant 9.99999974E-6 : f32
    %449 = vector.broadcast %cst_388 : f32 to vector<8x1xf32>
    %450 = arith.addf %448, %449 : vector<8x1xf32>
    %451 = math.rsqrt %450 : vector<8x1xf32>
    %452 = vector.broadcast %451 : vector<8x1xf32> to vector<8x32xf32>
    %453 = arith.mulf %443, %452 : vector<8x32xf32>
    %454 = vector.broadcast %435 : vector<1x32xf32> to vector<8x32xf32>
    %455 = arith.mulf %453, %454 : vector<8x32xf32>
    %456 = vector.broadcast %437 : vector<1x32xf32> to vector<8x32xf32>
    %457 = arith.addf %455, %456 : vector<8x32xf32>
    %c1_389 = arith.constant 1 : index
    %c0_390 = arith.constant 0 : index
    %c0_391 = arith.constant 0 : index
    %458 = vector.load %arg13[%c1_389, %c0_390, %c0_391] : memref<2x32x64xf32, #tpu.memory_space<vmem>>, vector<1x32x64xf32>
    %459 = vector.shape_cast %458 : vector<1x32x64xf32> to vector<32x64xf32>
    %cst_392 = arith.constant dense<0.000000e+00> : vector<8x64xf32>
    %460 = tpu.matmul %457, %459, %cst_392 {dimension_numbers = #tpu.dot_dimension_numbers<[1], [0], [0], [1], [0, 0, 1, 1], [], []>} : vector<8x32xf32>, vector<32x64xf32>, vector<8x64xf32> -> vector<8x64xf32>
    %c1_393 = arith.constant 1 : index
    %c0_394 = arith.constant 0 : index
    %c0_395 = arith.constant 0 : index
    %461 = vector.load %arg14[%c1_393, %c0_394, %c0_395] : memref<2x1x64xf32, #tpu.memory_space<vmem>>, vector<1x1x64xf32>
    %462 = vector.shape_cast %461 : vector<1x1x64xf32> to vector<1x64xf32>
    %463 = vector.broadcast %462 : vector<1x64xf32> to vector<8x64xf32>
    %464 = arith.addf %460, %463 : vector<8x64xf32>
    %cst_396 = arith.constant 5.000000e-01 : f32
    %465 = vector.broadcast %cst_396 : f32 to vector<8x64xf32>
    %466 = arith.mulf %465, %464 : vector<8x64xf32>
    %cst_397 = arith.constant 0.707106769 : f32
    %467 = vector.broadcast %cst_397 : f32 to vector<8x64xf32>
    %468 = arith.mulf %464, %467 : vector<8x64xf32>
    %cst_398 = arith.constant -4.000000e+00 : f32
    %cst_399 = arith.constant 4.000000e+00 : f32
    %469 = vector.broadcast %cst_398 : f32 to vector<8x64xf32>
    %470 = arith.maximumf %469, %468 : vector<8x64xf32>
    %471 = vector.broadcast %cst_399 : f32 to vector<8x64xf32>
    %472 = arith.minimumf %471, %470 : vector<8x64xf32>
    %473 = arith.mulf %472, %472 : vector<8x64xf32>
    %cst_400 = arith.constant -2.72614237E-10 : f32
    %474 = vector.broadcast %cst_400 : f32 to vector<8x64xf32>
    %475 = arith.mulf %474, %473 : vector<8x64xf32>
    %cst_401 = arith.constant 2.77068146E-8 : f32
    %476 = vector.broadcast %cst_401 : f32 to vector<8x64xf32>
    %477 = arith.addf %475, %476 : vector<8x64xf32>
    %478 = arith.mulf %477, %473 : vector<8x64xf32>
    %cst_402 = arith.constant -2.10102394E-6 : f32
    %479 = vector.broadcast %cst_402 : f32 to vector<8x64xf32>
    %480 = arith.addf %478, %479 : vector<8x64xf32>
    %481 = arith.mulf %480, %473 : vector<8x64xf32>
    %cst_403 = arith.constant -5.69250624E-5 : f32
    %482 = vector.broadcast %cst_403 : f32 to vector<8x64xf32>
    %483 = arith.addf %481, %482 : vector<8x64xf32>
    %484 = arith.mulf %483, %473 : vector<8x64xf32>
    %cst_404 = arith.constant -7.34990637E-4 : f32
    %485 = vector.broadcast %cst_404 : f32 to vector<8x64xf32>
    %486 = arith.addf %484, %485 : vector<8x64xf32>
    %487 = arith.mulf %486, %473 : vector<8x64xf32>
    %cst_405 = arith.constant -2.954600e-03 : f32
    %488 = vector.broadcast %cst_405 : f32 to vector<8x64xf32>
    %489 = arith.addf %487, %488 : vector<8x64xf32>
    %490 = arith.mulf %489, %473 : vector<8x64xf32>
    %cst_406 = arith.constant -0.0160960332 : f32
    %491 = vector.broadcast %cst_406 : f32 to vector<8x64xf32>
    %492 = arith.addf %490, %491 : vector<8x64xf32>
    %493 = arith.mulf %472, %492 : vector<8x64xf32>
    %cst_407 = arith.constant -1.45660715E-5 : f32
    %494 = vector.broadcast %cst_407 : f32 to vector<8x64xf32>
    %495 = arith.mulf %494, %473 : vector<8x64xf32>
    %cst_408 = arith.constant -2.13374049E-4 : f32
    %496 = vector.broadcast %cst_408 : f32 to vector<8x64xf32>
    %497 = arith.addf %495, %496 : vector<8x64xf32>
    %498 = arith.mulf %497, %473 : vector<8x64xf32>
    %cst_409 = arith.constant -0.00168282702 : f32
    %499 = vector.broadcast %cst_409 : f32 to vector<8x64xf32>
    %500 = arith.addf %498, %499 : vector<8x64xf32>
    %501 = arith.mulf %500, %473 : vector<8x64xf32>
    %cst_410 = arith.constant -0.00737332925 : f32
    %502 = vector.broadcast %cst_410 : f32 to vector<8x64xf32>
    %503 = arith.addf %501, %502 : vector<8x64xf32>
    %504 = arith.mulf %503, %473 : vector<8x64xf32>
    %cst_411 = arith.constant -0.0142647391 : f32
    %505 = vector.broadcast %cst_411 : f32 to vector<8x64xf32>
    %506 = arith.addf %504, %505 : vector<8x64xf32>
    %507 = arith.divf %493, %506 : vector<8x64xf32>
    %cst_412 = arith.constant 1.000000e+00 : f32
    %508 = vector.broadcast %cst_412 : f32 to vector<8x64xf32>
    %509 = arith.addf %508, %507 : vector<8x64xf32>
    %510 = arith.mulf %466, %509 : vector<8x64xf32>
    %c1_413 = arith.constant 1 : index
    %c0_414 = arith.constant 0 : index
    %c0_415 = arith.constant 0 : index
    %511 = vector.load %arg15[%c1_413, %c0_414, %c0_415] : memref<2x64x32xf32, #tpu.memory_space<vmem>>, vector<1x64x32xf32>
    %512 = vector.shape_cast %511 : vector<1x64x32xf32> to vector<64x32xf32>
    %cst_416 = arith.constant dense<0.000000e+00> : vector<8x32xf32>
    %513 = tpu.matmul %510, %512, %cst_416 {dimension_numbers = #tpu.dot_dimension_numbers<[1], [0], [0], [1], [0, 0, 1, 1], [], []>} : vector<8x64xf32>, vector<64x32xf32>, vector<8x32xf32> -> vector<8x32xf32>
    %c1_417 = arith.constant 1 : index
    %c0_418 = arith.constant 0 : index
    %c0_419 = arith.constant 0 : index
    %514 = vector.load %arg16[%c1_417, %c0_418, %c0_419] : memref<2x1x32xf32, #tpu.memory_space<vmem>>, vector<1x1x32xf32>
    %515 = vector.shape_cast %514 : vector<1x1x32xf32> to vector<1x32xf32>
    %516 = vector.broadcast %515 : vector<1x32xf32> to vector<8x32xf32>
    %517 = arith.addf %513, %516 : vector<8x32xf32>
    %518 = arith.addf %457, %517 : vector<8x32xf32>
    %c1_420 = arith.constant 1 : index
    %c0_421 = arith.constant 0 : index
    %c0_422 = arith.constant 0 : index
    %519 = vector.load %arg17[%c1_420, %c0_421, %c0_422] : memref<2x1x32xf32, #tpu.memory_space<vmem>>, vector<1x1x32xf32>
    %520 = vector.shape_cast %519 : vector<1x1x32xf32> to vector<1x32xf32>
    %c1_423 = arith.constant 1 : index
    %c0_424 = arith.constant 0 : index
    %c0_425 = arith.constant 0 : index
    %521 = vector.load %arg18[%c1_423, %c0_424, %c0_425] : memref<2x1x32xf32, #tpu.memory_space<vmem>>, vector<1x1x32xf32>
    %522 = vector.shape_cast %521 : vector<1x1x32xf32> to vector<1x32xf32>
    %cst_426 = arith.constant dense<0.000000e+00> : vector<8xf32>
    %523 = vector.multi_reduction <add>, %518, %cst_426 [1] : vector<8x32xf32> to vector<8xf32>
    %524 = vector.shape_cast %523 : vector<8xf32> to vector<8x1xf32>
    %cst_427 = arith.constant 3.200000e+01 : f32
    %525 = vector.broadcast %cst_427 : f32 to vector<8x1xf32>
    %526 = arith.divf %524, %525 : vector<8x1xf32>
    %527 = vector.broadcast %526 : vector<8x1xf32> to vector<8x32xf32>
    %528 = arith.subf %518, %527 : vector<8x32xf32>
    %529 = arith.mulf %528, %528 : vector<8x32xf32>
    %cst_428 = arith.constant dense<0.000000e+00> : vector<8xf32>
    %530 = vector.multi_reduction <add>, %529, %cst_428 [1] : vector<8x32xf32> to vector<8xf32>
    %531 = vector.shape_cast %530 : vector<8xf32> to vector<8x1xf32>
    %cst_429 = arith.constant 3.200000e+01 : f32
    %532 = vector.broadcast %cst_429 : f32 to vector<8x1xf32>
    %533 = arith.divf %531, %532 : vector<8x1xf32>
    %cst_430 = arith.constant 9.99999974E-6 : f32
    %534 = vector.broadcast %cst_430 : f32 to vector<8x1xf32>
    %535 = arith.addf %533, %534 : vector<8x1xf32>
    %536 = math.rsqrt %535 : vector<8x1xf32>
    %537 = vector.broadcast %536 : vector<8x1xf32> to vector<8x32xf32>
    %538 = arith.mulf %528, %537 : vector<8x32xf32>
    %539 = vector.broadcast %520 : vector<1x32xf32> to vector<8x32xf32>
    %540 = arith.mulf %538, %539 : vector<8x32xf32>
    %541 = vector.broadcast %522 : vector<1x32xf32> to vector<8x32xf32>
    %542 = arith.addf %540, %541 : vector<8x32xf32>
    %c0_431 = arith.constant 0 : index
    %c0_432 = arith.constant 0 : index
    %543 = vector.load %arg19[%c0_431, %c0_432] : memref<1x32xf32, #tpu.memory_space<vmem>>, vector<1x32xf32>
    %c0_433 = arith.constant 0 : index
    %c0_434 = arith.constant 0 : index
    %544 = vector.load %arg20[%c0_433, %c0_434] : memref<1x32xf32, #tpu.memory_space<vmem>>, vector<1x32xf32>
    %cst_435 = arith.constant dense<0.000000e+00> : vector<8xf32>
    %545 = vector.multi_reduction <add>, %542, %cst_435 [1] : vector<8x32xf32> to vector<8xf32>
    %546 = vector.shape_cast %545 : vector<8xf32> to vector<8x1xf32>
    %cst_436 = arith.constant 3.200000e+01 : f32
    %547 = vector.broadcast %cst_436 : f32 to vector<8x1xf32>
    %548 = arith.divf %546, %547 : vector<8x1xf32>
    %549 = vector.broadcast %548 : vector<8x1xf32> to vector<8x32xf32>
    %550 = arith.subf %542, %549 : vector<8x32xf32>
    %551 = arith.mulf %550, %550 : vector<8x32xf32>
    %cst_437 = arith.constant dense<0.000000e+00> : vector<8xf32>
    %552 = vector.multi_reduction <add>, %551, %cst_437 [1] : vector<8x32xf32> to vector<8xf32>
    %553 = vector.shape_cast %552 : vector<8xf32> to vector<8x1xf32>
    %cst_438 = arith.constant 3.200000e+01 : f32
    %554 = vector.broadcast %cst_438 : f32 to vector<8x1xf32>
    %555 = arith.divf %553, %554 : vector<8x1xf32>
    %cst_439 = arith.constant 9.99999974E-6 : f32
    %556 = vector.broadcast %cst_439 : f32 to vector<8x1xf32>
    %557 = arith.addf %555, %556 : vector<8x1xf32>
    %558 = math.rsqrt %557 : vector<8x1xf32>
    %559 = vector.broadcast %558 : vector<8x1xf32> to vector<8x32xf32>
    %560 = arith.mulf %550, %559 : vector<8x32xf32>
    %561 = vector.broadcast %543 : vector<1x32xf32> to vector<8x32xf32>
    %562 = arith.mulf %560, %561 : vector<8x32xf32>
    %563 = vector.broadcast %544 : vector<1x32xf32> to vector<8x32xf32>
    %564 = arith.addf %562, %563 : vector<8x32xf32>
    %c0_440 = arith.constant 0 : index
    %c0_441 = arith.constant 0 : index
    %565 = vector.load %arg21[%c0_440, %c0_441] : memref<8x32xf32, #tpu.memory_space<vmem>>, vector<8x32xf32>
    tpu.vector_store %arg21[%c0_440, %c0_441], %564 {strides = array<i32>} : memref<8x32xf32, #tpu.memory_space<vmem>>, vector<8x32xf32>,
    return
  }
  func.func @transform_0(%arg0: i32) -> (i32, i32) {
    %c0_i32 = arith.constant 0 : i32
    %c0_i32_0 = arith.constant 0 : i32
    return %arg0, %c0_i32 : i32, i32
  }
  func.func @transform_1(%arg0: i32) -> (i32, i32, i32, i32) {
    %c0_i32 = arith.constant 0 : i32
    %c0_i32_0 = arith.constant 0 : i32
    %c0_i32_1 = arith.constant 0 : i32
    %c0_i32_2 = arith.constant 0 : i32
    return %arg0, %c0_i32, %c0_i32_0, %c0_i32_1 : i32, i32, i32, i32
  }
  func.func @transform_2(%arg0: i32) -> (i32, i32, i32, i32) {
    %c0_i32 = arith.constant 0 : i32
    %c0_i32_0 = arith.constant 0 : i32
    %c0_i32_1 = arith.constant 0 : i32
    %c0_i32_2 = arith.constant 0 : i32
    %c0_i32_3 = arith.constant 0 : i32
    return %c0_i32, %c0_i32_0, %c0_i32_1, %c0_i32_2 : i32, i32, i32, i32
  }
  func.func @transform_3(%arg0: i32) -> (i32, i32, i32, i32) {
    %c0_i32 = arith.constant 0 : i32
    %c0_i32_0 = arith.constant 0 : i32
    %c0_i32_1 = arith.constant 0 : i32
    %c0_i32_2 = arith.constant 0 : i32
    %c0_i32_3 = arith.constant 0 : i32
    return %c0_i32, %c0_i32_0, %c0_i32_1, %c0_i32_2 : i32, i32, i32, i32
  }
  func.func @transform_4(%arg0: i32) -> (i32, i32, i32, i32) {
    %c0_i32 = arith.constant 0 : i32
    %c0_i32_0 = arith.constant 0 : i32
    %c0_i32_1 = arith.constant 0 : i32
    %c0_i32_2 = arith.constant 0 : i32
    %c0_i32_3 = arith.constant 0 : i32
    return %c0_i32, %c0_i32_0, %c0_i32_1, %c0_i32_2 : i32, i32, i32, i32
  }
  func.func @transform_5(%arg0: i32) -> (i32, i32, i32, i32) {
    %c0_i32 = arith.constant 0 : i32
    %c0_i32_0 = arith.constant 0 : i32
    %c0_i32_1 = arith.constant 0 : i32
    %c0_i32_2 = arith.constant 0 : i32
    %c0_i32_3 = arith.constant 0 : i32
    return %c0_i32, %c0_i32_0, %c0_i32_1, %c0_i32_2 : i32, i32, i32, i32
  }
  func.func @transform_6(%arg0: i32) -> (i32, i32, i32, i32) {
    %c0_i32 = arith.constant 0 : i32
    %c0_i32_0 = arith.constant 0 : i32
    %c0_i32_1 = arith.constant 0 : i32
    %c0_i32_2 = arith.constant 0 : i32
    %c0_i32_3 = arith.constant 0 : i32
    return %c0_i32, %c0_i32_0, %c0_i32_1, %c0_i32_2 : i32, i32, i32, i32
  }
  func.func @transform_7(%arg0: i32) -> (i32, i32, i32, i32) {
    %c0_i32 = arith.constant 0 : i32
    %c0_i32_0 = arith.constant 0 : i32
    %c0_i32_1 = arith.constant 0 : i32
    %c0_i32_2 = arith.constant 0 : i32
    %c0_i32_3 = arith.constant 0 : i32
    return %c0_i32, %c0_i32_0, %c0_i32_1, %c0_i32_2 : i32, i32, i32, i32
  }
  func.func @transform_8(%arg0: i32) -> (i32, i32, i32, i32) {
    %c0_i32 = arith.constant 0 : i32
    %c0_i32_0 = arith.constant 0 : i32
    %c0_i32_1 = arith.constant 0 : i32
    %c0_i32_2 = arith.constant 0 : i32
    %c0_i32_3 = arith.constant 0 : i32
    return %c0_i32, %c0_i32_0, %c0_i32_1, %c0_i32_2 : i32, i32, i32, i32
  }
  func.func @transform_9(%arg0: i32) -> (i32, i32, i32) {
    %c0_i32 = arith.constant 0 : i32
    %c0_i32_0 = arith.constant 0 : i32
    %c0_i32_1 = arith.constant 0 : i32
    %c0_i32_2 = arith.constant 0 : i32
    return %c0_i32, %c0_i32_0, %c0_i32_1 : i32, i32, i32
  }
  func.func @transform_10(%arg0: i32) -> (i32, i32, i32) {
    %c0_i32 = arith.constant 0 : i32
    %c0_i32_0 = arith.constant 0 : i32
    %c0_i32_1 = arith.constant 0 : i32
    %c0_i32_2 = arith.constant 0 : i32
    return %c0_i32, %c0_i32_0, %c0_i32_1 : i32, i32, i32
  }
  func.func @transform_11(%arg0: i32) -> (i32, i32, i32) {
    %c0_i32 = arith.constant 0 : i32
    %c0_i32_0 = arith.constant 0 : i32
    %c0_i32_1 = arith.constant 0 : i32
    %c0_i32_2 = arith.constant 0 : i32
    return %c0_i32, %c0_i32_0, %c0_i32_1 : i32, i32, i32
  }
  func.func @transform_12(%arg0: i32) -> (i32, i32, i32) {
    %c0_i32 = arith.constant 0 : i32
    %c0_i32_0 = arith.constant 0 : i32
    %c0_i32_1 = arith.constant 0 : i32
    %c0_i32_2 = arith.constant 0 : i32
    return %c0_i32, %c0_i32_0, %c0_i32_1 : i32, i32, i32
  }
  func.func @transform_13(%arg0: i32) -> (i32, i32, i32) {
    %c0_i32 = arith.constant 0 : i32
    %c0_i32_0 = arith.constant 0 : i32
    %c0_i32_1 = arith.constant 0 : i32
    %c0_i32_2 = arith.constant 0 : i32
    return %c0_i32, %c0_i32_0, %c0_i32_1 : i32, i32, i32
  }
  func.func @transform_14(%arg0: i32) -> (i32, i32, i32) {
    %c0_i32 = arith.constant 0 : i32
    %c0_i32_0 = arith.constant 0 : i32
    %c0_i32_1 = arith.constant 0 : i32
    %c0_i32_2 = arith.constant 0 : i32
    return %c0_i32, %c0_i32_0, %c0_i32_1 : i32, i32, i32
  }
  func.func @transform_15(%arg0: i32) -> (i32, i32, i32) {
    %c0_i32 = arith.constant 0 : i32
    %c0_i32_0 = arith.constant 0 : i32
    %c0_i32_1 = arith.constant 0 : i32
    %c0_i32_2 = arith.constant 0 : i32
    return %c0_i32, %c0_i32_0, %c0_i32_1 : i32, i32, i32
  }
  func.func @transform_16(%arg0: i32) -> (i32, i32, i32) {
    %c0_i32 = arith.constant 0 : i32
    %c0_i32_0 = arith.constant 0 : i32
    %c0_i32_1 = arith.constant 0 : i32
    %c0_i32_2 = arith.constant 0 : i32
    return %c0_i32, %c0_i32_0, %c0_i32_1 : i32, i32, i32
  }
  func.func @transform_17(%arg0: i32) -> (i32, i32, i32) {
    %c0_i32 = arith.constant 0 : i32
    %c0_i32_0 = arith.constant 0 : i32
    %c0_i32_1 = arith.constant 0 : i32
    %c0_i32_2 = arith.constant 0 : i32
    return %c0_i32, %c0_i32_0, %c0_i32_1 : i32, i32, i32
  }
  func.func @transform_18(%arg0: i32) -> (i32, i32) {
    %c0_i32 = arith.constant 0 : i32
    %c0_i32_0 = arith.constant 0 : i32
    %c0_i32_1 = arith.constant 0 : i32
    return %c0_i32, %c0_i32_0 : i32, i32
  }
  func.func @transform_19(%arg0: i32) -> (i32, i32) {
    %c0_i32 = arith.constant 0 : i32
    %c0_i32_0 = arith.constant 0 : i32
    %c0_i32_1 = arith.constant 0 : i32
    return %c0_i32, %c0_i32_0 : i32, i32
  }
  func.func @transform_20(%arg0: i32) -> (i32, i32) {
    %c0_i32 = arith.constant 0 : i32
    %c0_i32_0 = arith.constant 0 : i32
    return %arg0, %c0_i32 : i32, i32
  }
}

</mosaic_0001>

<bundles_post_ra>
// kernel: tpu_custom_call.1
= control target key start
LH: loop header
LB: loop body
LE: loop exit
PB: predicated region body
PF: predicated region fallthrough
CT: control target
= control target key end

     0   :  { %s7474_s0 = inlined_call_operand.vmem [shape: f32[16,32], index: 0, kind: input, shape index: {}]   ;;  %s7475_s1 = inlined_call_operand.vmem [shape: f32[2,4,8,8], index: 1, kind: input, shape index: {}]   ;;  %s7476_s2 = inlined_call_operand.vmem [shape: f32[2,4,32,8], index: 2, kind: input, shape index: {}]   ;;  %s7477_s3 = inlined_call_operand.vmem [shape: f32[2,4,1,8], index: 3, kind: input, shape index: {}]   ;;  %s7478_s4 = inlined_call_operand.vmem [shape: f32[2,4,32,8], index: 4, kind: input, shape index: {}]   ;;  %s7479_s5 = inlined_call_operand.vmem [shape: f32[2,4,1,8], index: 5, kind: input, shape index: {}]   ;;  %s7480_s6 = inlined_call_operand.vmem [shape: f32[2,4,32,8], index: 6, kind: input, shape index: {}]   ;;  %s7481_s7 = inlined_call_operand.vmem [shape: f32[2,4,1,8], index: 7, kind: input, shape index: {}]   ;;  %s7482_s8 = inlined_call_operand.vmem [shape: f32[2,4,8,32], index: 8, kind: input, shape index: {}]   ;;  %s7483_s9 = inlined_call_operand.vmem [shape: f32[2,1,32], index: 9, kind: input, shape index: {}]   ;;  %s7484_s10 = inlined_call_operand.vmem [shape: f32[2,1,32], index: 10, kind: input, shape index: {}]   ;;  %s7485_s11 = inlined_call_operand.vmem [shape: f32[2,1,32], index: 11, kind: input, shape index: {}]   ;;  %s7486_s12 = inlined_call_operand.vmem [shape: f32[2,32,64], index: 12, kind: input, shape index: {}]   ;;  %s7487_s13 = inlined_call_operand.vmem [shape: f32[2,1,64], index: 13, kind: input, shape index: {}]   ;;  %s7488_s14 = inlined_call_operand.vmem [shape: f32[2,64,32], index: 14, kind: input, shape index: {}]   ;;  %s7489_s15 = inlined_call_operand.vmem [shape: f32[2,1,32], index: 15, kind: input, shape index: {}]   ;;  %s7490_s16 = inlined_call_operand.vmem [shape: f32[2,1,32], index: 16, kind: input, shape index: {}]   ;;  %s7491_s17 = inlined_call_operand.vmem [shape: f32[2,1,32], index: 17, kind: input, shape index: {}]   ;;  %s7492_s18 = inlined_call_operand.vmem [shape: f32[1,32], index: 18, kind: input, shape index: {}]   ;;  %s7493_s19 = inlined_call_operand.vmem [shape: f32[1,32], index: 19, kind: input, shape index: {}]   ;;  %s7494_s20 = inlined_call_operand.hbm [shape: f32[16,32], index: 20, kind: output, shape index: {}]  }
   0x1   :  { %7506 = sst [smem:[#allocation11_spill]] %s7474_s0 }
   0x2   :  { %7507 = sst [smem:[#allocation12_spill]] %s7475_s1 }
   0x3   :  { %7508 = sst [smem:[#allocation13_spill]] %s7476_s2 }
   0x4   :  { %7509 = sst [smem:[#allocation14_spill]] %s7477_s3 }
   0x5   :  { %7510 = sst [smem:[#allocation15_spill]] %s7478_s4 }
   0x6   :  { %7511 = sst [smem:[#allocation16_spill]] %s7479_s5 }
   0x7   :  { %7512 = sst [smem:[#allocation17_spill]] %s7480_s6 }
   0x8   :  { %7513 = sst [smem:[#allocation18_spill]] %s7494_s20 }
   0x9   :  { %25 = vsyncpa [#allocation3], 0 }
   0xa   :  { %27 = vsyncpa [#allocation3 + $0x1], 0  ;;  %s6526_s1 = smov 0   ;;  %s6528_s22 = smov 0  }
   0xb   :  { %s6530_s23 = smov 0   ;;  %s6532_s24 = smov 0  }
   0xc LB: > { %7514 = sst [smem:[#allocation5_spill]] %s6403_s1  ;;  %s6547_s2 = sadd.s32 4294967295, %s6415_s24   ;;  %s6415_s24 = sphi %s6532_s24, %s7534_s24   ;;  %s6411_s23 = sphi %s6530_s23, %s7536_s23   ;;  %s6407_s22 = sphi %s6528_s22, %s7538_s22   ;;  %s6403_s1 = sphi %s6526_s1, %s7537_s1  }
   0xd   : > { %7515 = sst [smem:[#allocation6_spill]] %s6411_s23  ;;  %s5196_s25 = sadd.s32 4294967294, %s6415_s24  }
   0xe   : > { %7516 = sst [smem:[#allocation7_spill]] %s6415_s24  ;;  %s6551_s3 = sadd.s32 1, %s6415_s24  }
   0xf   : > { %7517 = sst [smem:[#allocation8_spill]] %s6551_s3  ;;  %s470_s26 = sadd.s32 1, %s6411_s23 }
  0x10   : > { %s467_s27 = ssub.s32 %s6415_s24, %s6551_s3  ;;  %p480_p0 = scmp.ne.s32.totalorder %s6411_s23, %s6407_s22 }
  0x11   : > { %p468_p1 = scmp.eq.s32.totalorder %s467_s27, 0  ;;  %p481_p2 = scmp.eq.s32.totalorder %s6547_s2, 1 }
  0x12   : > { %p486_p3 = scmp.ne.s32.totalorder %s6407_s22, %s6403_s1  ;;  %p487_p4 = scmp.eq.s32.totalorder %s5196_s25, 1 }
  0x13   : > { %s6562_s28 = scalar_select %p468_p1, %s6411_s23, %s470_s26  }
  0x14   : > { %p6564_p5 = por %p481_p2, %p480_p0  ;;  %p6568_p6 = por %p487_p4, %p486_p3 }
  0x15   : > { %7518 = sst [smem:[#allocation9_spill]] %s6562_s28  ;;  %p5199_p7 = scmp.ge.s32.totalorder %s6415_s24, 1 }
  0x16   : > { %s7520_s29 = scalar_select %p6568_p6, 1, 0 }
  0x17   : > { %p574_p8 = scmp.lt.s32.totalorder %s6415_s24, 3 }
  0x18   : > { %7521 = sst [smem:[#allocation10_spill]] %s7520_s29 }
  0x19   : > { %p575_p9 = pnand %p5199_p7, %p574_p8 }
  0x1a   : > { %s7522_s21 = sld [smem:[#allocation15_spill]] (!%p575_p9)  ;;  %s7523_s23 = sld [smem:[#allocation13_spill]] (!%p575_p9)  ;;  %v6417_v3 = vmov (!%p575_p9), 0.0|0.0   ;;  %vm6418_vm0 = vmmov (!%p575_p9), 0   ;;  %v6419_v11 = vmov (!%p575_p9), 0.0   ;;  %vm657_vm1 = vcmask (!%p575_p9), 261120  }
  0x1b   : > { %578 = sbr.rel (%p575_p9) target bundleno = 10277 (0x2825), region = 100  ;;  %6091 = vmatprep.subr.bf16.mxu1 (!%p575_p9), %v6417_v3  ;;  %6085 = vmatprep.subr.bf16.mxu0 (!%p575_p9), %v6417_v3  ;;  %p636_p10 = scmp.lt.s32.totalorder (!%p575_p9), %s6547_s2, 1  ;;  %vm894_vm2 = vcmask (!%p575_p9), 64512   ;;  %v5208_v29 = vld [vmem:[%s7481_s7] ss:$0 sm:$0xff] (!%p575_p9)  ;;  %vm2757_vm3 = vcmask (!%p575_p9), 523264  }
  0x1c   : > { %5660 = vmatprep.mubr.msk.f32.mxu1 (!%p575_p9), %vm6418_vm0, %v6419_v11  ;;  %5649 = vmatprep.mubr.msk.f32.mxu0 (!%p575_p9), %vm6418_vm0, %v6419_v11  ;;  %s7525_s6 = sld [smem:[#allocation17_spill]] (!%p575_p9)  ;;  %s7526_s28 = sld [smem:[#allocation11_spill]] (!%p575_p9) }
  0x1d   : > { %s7527_s5 = sld [smem:[#allocation16_spill]] (!%p575_p9)  ;;  %s7529_s26 = sld [smem:[#allocation12_spill]] (!%p575_p9) }
  0x20   : > { %v731_v0 = vld [vmem:[%s7522_s21] sm:$0xff] (!%p575_p9)  ;;  %v732_v1 = vld [vmem:[%s7522_s21 + $0x8] sm:$0xff] (!%p575_p9)  ;;  %s7524_s3 = smov (!%p575_p9), %s7523_s23  ;;  %v733_v6 = vld [vmem:[%s7522_s21 + $0x10] sm:$0xff] (!%p575_p9) }
  0x21   : > { %v646_v2 = vld [vmem:[%s7523_s23] sm:$0xff] (!%p575_p9)  ;;  %v6092_v4 = vpack.c.bf16 (!%p575_p9), %v732_v1, %v731_v0  ;;  %v647_v5 = vld [vmem:[%s7524_s3 + $0x8] sm:$0xff] (!%p575_p9)  ;;  %v734_v7 = vld [vmem:[%s7522_s21 + $0x18] sm:$0xff] (!%p575_p9) }
  0x22   : > { %v6086_v8 = vpack.c.bf16 %v647_v5, %v646_v2  ;;  %v648_v9 = vld [vmem:[%s7524_s3 + $0x10] sm:$0xff]  ;;  %v649_v10 = vld [vmem:[%s7524_s3 + $0x18] sm:$0xff]  ;;  %v6095_v12 = vpack.c.bf16 %v734_v7, %v733_v6  ;;  %s6606_s1 = scalar_select %p636_p10, %s6547_s2, 1  ;;  %v812_v14 = vld [vmem:[%s7525_s6] sm:$0xff] }
  0x23   : > { %6093 = vmatpush3.bf16.msra.mxu1 %v6092_v4  ;;  %v6089_v13 = vpack.c.bf16 %v649_v10, %v648_v9  ;;  %v813_v15 = vld [vmem:[%s7525_s6 + $0x8] sm:$0xff]  ;;  %v814_v18 = vld [vmem:[%s7525_s6 + $0x10] sm:$0xff]  ;;  %v815_v19 = vld [vmem:[%s7525_s6 + $0x18] sm:$0xff] }
  0x24   : > { %6087 = vmatpush3.bf16.msra.mxu0 %v6086_v8  ;;  %6094 = vmatprep.subr.bf16.mxu1 %v6417_v3  ;;  %s5201_s24 = sshll.u32 %s6606_s1, 3  ;;  %v6098_v17 = vpack.c.bf16 %v813_v15, %v812_v14  ;;  %v6101_v20 = vpack.c.bf16 %v815_v19, %v814_v18  ;;  %v5206_v21 = vld [vmem:[%s7527_s5] ss:$0 sm:$0xff]  ;;  %s5444_s0 = sshll.u32 %s6606_s1, 5  ;;  %v5214_v44 = vld [vmem:[%s7524_s3 + $0x28] sm:$0xff]  ;;  %v5215_v46 = vld [vmem:[%s7524_s3 + $0x30] sm:$0xff] }
  0x25   : > { %6088 = vmatprep.subr.bf16.mxu0 %v6417_v3  ;;  %s639_s27 = scalar_lea.vmem %s7526_s28, %s5201_s24  ;;  %s6663_s23 = scalar_lea.vmem %s7529_s26, %s5444_s0  ;;  %v5213_v43 = vld [vmem:[%s7524_s3 + $0x20] sm:$0xff]  ;;  %v5216_v47 = vld [vmem:[%s7524_s3 + $0x38] sm:$0xff]  ;;  %v5221_v51 = vld [vmem:[%s7522_s21 + $0x28] sm:$0xff] }
  0x26   : > { %v6620_v16 = vld [vmem:[%s639_s27] sm:$0xff]  ;;  %s7528_s27 = sld [smem:[#allocation14_spill]]  ;;  %v6104_v45 = vpack.c.bf16 %v5214_v44, %v5213_v43  ;;  %v6107_v48 = vpack.c.bf16 %v5216_v47, %v5215_v46  ;;  %v5222_v55 = vld [vmem:[%s7522_s21 + $0x30] sm:$0xff]  ;;  %v5223_v56 = vld [vmem:[%s7522_s21 + $0x38] sm:$0xff]  ;;  %s633_s1 = sand.u32 1, %s6407_s22  }
  0x27   : > { %6096 = vmatpush3.bf16.msra.mxu1 %v6095_v12  ;;  %v6666_v33 = vld [vmem:[%s6663_s23] sm:$0xff]  ;;  %v6113_v57 = vpack.c.bf16 %v5223_v56, %v5222_v55  ;;  %v5228_v6 = vld [vmem:[%s7525_s6 + $0x28] sm:$0xff]  ;;  %v5229_v7 = vld [vmem:[%s7525_s6 + $0x30] sm:$0xff]  ;;  %s5200_s28 = sshll.u32 %s633_s1, 3  ;;  %s5441_s24 = sshll.u32 %s6547_s2, 7 }
  0x28   : > { %6090 = vmatpush3.bf16.msra.mxu0 %v6089_v13  ;;  %5679 = vmatprep.subr.mxu1 %v6419_v11  ;;  %v5220_v50 = vld [vmem:[%s7522_s21 + $0x20] sm:$0xff]  ;;  %v5230_v9 = vld [vmem:[%s7525_s6 + $0x38] sm:$0xff]  ;;  %v6740_v12 = vld [vmem:[%s6663_s23 + $0x8] sm:$0xff]  ;;  %s635_s26 = scalar_lea.vmem [#allocation2], %s5200_s28  ;;  %s5112_s29 = scalar_lea.sflag [#allocation3], %s633_s1 }
  0x29   : > { %6097 = vmatprep.subr.bf16.mxu0 %v6417_v3  ;;  %v6110_v53 = vpack.c.bf16 %v5221_v51, %v5220_v50  ;;  %v5225_v62 = vld [vmem:[%s7527_s5 + $0x1] ss:$0 sm:$0xff]  ;;  %v6119_v10 = vpack.c.bf16 %v5230_v9, %v5229_v7  ;;  %v5244_v43 = vld [vmem:[%s7524_s3 + $0x58] sm:$0xff]  ;;  %s5125_s20 = sshll.u32 %s635_s26, 4  ;;  %s6420_s2 = smov [#allocation2]   ;;  %s7433_s20 = int_to_ptr.vmem [resolvable:$true] %s5125_s20 }
  0x2a   : > { %5661 = vmatmul.mubr.msk.f32.vlgmr.msra.gmra.mrb[0].mxu1 %vm657_vm1, %v6620_v16  ;;  %v5227_v5 = vld [vmem:[%s7525_s6 + $0x20] sm:$0xff]  ;;  %s6353_s30 = scalar_lea.vmem %s7433_s20, 128  ;;  %s6357_s28 = sshll.u32 %s6420_s2, 4  ;;  %s6358_s28 = int_to_ptr.vmem [resolvable:$false] %s6357_s28 }
  0x2b   : > { %5650 = vmatmul.mubr.msk.f32.vlgmr.msra.gmra.mrb[0].mxu0 %vm657_vm1, %v6620_v16  ;;  %5681 = vmatprep.mubr.msk.f32.mxu1 %vm6418_vm0, %v6419_v11  ;;  %v6116_v8 = vpack.c.bf16 %v5228_v6, %v5227_v5  ;;  %p6354_p11 = scmp.ne.s32.totalorder %s7433_s20, %s6353_s30  ;;  %s6359_s0 = scalar_lea.vmem %s6358_s28, 256 }
  0x2c   : > { %6099 = vmatpush3.bf16.msra.mxu0 %v6098_v17  ;;  %5671 = vmatprep.mubr.msk.f32.mxu0 %vm6418_vm0, %v6419_v11  ;;  %v5204_v22 = vld [vmem:[%s7528_s27] ss:$0 sm:$0xff]  ;;  %v5218_v63 = vld [vmem:[%s7528_s27 + $0x1] ss:$0 sm:$0xff]  ;;  %v5246_v56 = vld [vmem:[%s7528_s27 + $0x2] ss:$0 sm:$0xff]  ;;  %p6360_p0 = scmp.lt.s32.totalorder %s7433_s20, %s6358_s28  ;;  %p6361_p1 = scmp.lt.s32.totalorder %s6359_s0, %s6353_s30 }
  0x2d   : > { %6100 = vmatprep.subr.bf16.mxu0 %v6417_v3  ;;  %p6355_p12 = pnand %p6354_p11, %p6564_p5 }
  0x2e   : > { %p6362_p2 = por %p6361_p1, %p6360_p0 }
  0x2f   : > { %p6356_p13 = pneg %p6355_p12 }
  0x30   : > { %6102 = vmatpush3.bf16.msra.mxu0 %v6101_v20 }
  0x31   : > { %5674 = vmatprep.subr.mxu0 %v6419_v11  ;;  %p6363_p3 = pnand %p6362_p2, %p6356_p13 }
  0x33   : > { %5672 = vmatmul.mubr.msk.f32.vlgmr.msra.gmra.mrb[2].mxu0 %vm657_vm1, %v6620_v16 }
  0x34   : > { %5676 = vmatprep.mubr.msk.f32.mxu0 %vm6418_vm0, %v6419_v11 }
  0xfd   : > { %v808_v23 = vpop.f32.mrb[0].mxu1 }
  0xfe   : > { %v809_v24 = vadd.f32 %v5206_v21, %v808_v23  ;;  %v5662_v25 = vpop.f32.mrb[1].mxu1  ;;  %v727_v26 = vpop.f32.mrb[0].mxu0 }
  0xff   : > { %v728_v27 = vadd.f32 %v5204_v22, %v727_v26  ;;  %v5651_v28 = vpop.f32.mrb[1].mxu0 }
 0x100   : > { %5675 = vmatpush3.xpose.msk.msra.mxu0 %vm894_vm2, %v809_v24  ;;  %v5232_v24 = vld [vmem:[%s7481_s7 + $0x1] ss:$0 sm:$0xff] }
 0x101   : > { %6103 = vmatprep.subr.bf16.mxu0 %v6417_v3 }
 0x103   : > { %5677 = vmatmul.mubr.msk.f32.vlgmr.msra.gmra.mrb[4].mxu0 %vm894_vm2, %v728_v27  ;;  %v5238_v27 = vld [vmem:[%s7482_s8 + $0x8] sm:$0xff] }
 0x104   : > { %5692 = vmatprep.mubr.msk.f32.mxu0 %vm6418_vm0, %v6419_v11  ;;  %6105 = vmatpush3.bf16.msra.mxu0 %v6104_v45 }
 0x105   : > { %6106 = vmatprep.subr.bf16.mxu0 %v6417_v3 }
 0x106   : > { %v889_v30 = vpop.f32.mrb[2].mxu0 }
 0x107   : > { %v890_v31 = vadd.f32 %v5208_v29, %v889_v30  ;;  %v5673_v32 = vpop.f32.mrb[3].mxu0 }
 0x108   : > { %6108 = vmatpush3.bf16.msra.mxu0 %v6107_v48  ;;  %v5248_v32 = vld [vmem:[%s7522_s21 + $0x40] sm:$0xff] }
 0x109   : > { %5680 = vmatpush3.msra.mxu1 %v890_v31  ;;  %6115 = vmatprep.subr.bf16.mxu0 %v6417_v3  ;;  %v1055_v31 = vld [vmem:[%s7482_s8] sm:$0xff] }
 0x10a   : > { %6109 = vmatprep.subr.bf16.mxu1 %v6417_v3 }
 0x10b   : > { %5693 = vmatmul.mubr.msk.f32.vlgmr.msra.gmra.mrb[6].mxu0 %vm657_vm1, %v6620_v16 }
 0x10c   : > { %5714 = vmatprep.mubr.msk.f32.mxu0 %vm6418_vm0, %v6419_v11  ;;  %6117 = vmatpush3.bf16.msra.mxu0 %v6116_v8 }
 0x10d   : > { %6118 = vmatprep.subr.bf16.mxu0 %v6417_v3 }
 0x110   : > { %6120 = vmatpush3.bf16.msra.mxu0 %v6119_v10 }
 0x111   : > { %5727 = vmatprep.subr.mxu0 %v6419_v11 }
 0x113   : > { %5715 = vmatmul.mubr.msk.f32.vlgmr.msra.gmra.mrb[8].mxu0 %vm657_vm1, %v6620_v16 }
 0x114   : > { %5729 = vmatprep.mubr.msk.f32.mxu0 %vm6418_vm0, %v6419_v11  ;;  %5728 = vmatpush3.msra.mxu0 %v5238_v27  ;;  %v5270_v27 = vld [vmem:[%s7524_s3 + $0x70] sm:$0xff] }
 0x115   : > { %6121 = vmatprep.subr.bf16.mxu0 %v6417_v3 }
 0x1d6   : > { %v967_v34 = vpop.f32.mrb[4].mxu0 }
 0x1d7   : > { %v968_v35 = vadd.f32 %v967_v34, %v6666_v33  ;;  %v5678_v36 = vpop.f32.mrb[5].mxu0  ;;  %v5249_v34 = vld [vmem:[%s7522_s21 + $0x48] sm:$0xff] }
 0x1d8   : > { %v5250_v36 = vld [vmem:[%s7522_s21 + $0x50] sm:$0xff] }
 0x1d9   : > { %v971_v37 = vsel %vm894_vm2, %v968_v35, -inf }
 0x1da   : > { %972 = vmax.xlane.f32.xlu0 %v971_v37  ;;  %v5251_v37 = vld [vmem:[%s7522_s21 + $0x58] sm:$0xff] }
 0x1de   : > { %v1135_v58 = vpop.f32.mrb[6].mxu0 }
 0x1df   : > { %v5694_v59 = vpop.f32.mrb[7].mxu0  ;;  %v1136_v4 = vadd.f32 %v5218_v63, %v1135_v58 }
 0x1e6   : > { %v1301_v23 = vpop.f32.mrb[8].mxu0 }
 0x1e7   : > { %v5716_v25 = vpop.f32.mrb[9].mxu0  ;;  %v1302_v26 = vadd.f32 %v5232_v24, %v1301_v23  ;;  %v5268_v24 = vld [vmem:[%s7524_s3 + $0x60] sm:$0xff] }
 0x1e8   : > { %v5269_v25 = vld [vmem:[%s7524_s3 + $0x68] sm:$0xff] }
 0x267   : > { %v973_v38 = vpop.xlane.xlu0 %972 }
 0x268   : > { %v974_v39 = vsub.f32 %v968_v35, %v973_v38  ;;  %v6128_v35 = vpack.c.bf16 %v5249_v34, %v5248_v32  ;;  %v6131_v38 = vpack.c.bf16 %v5251_v37, %v5250_v36  ;;  %v5277_v34 = vld [vmem:[%s7522_s21 + $0x70] sm:$0xff] }
 0x26a   : > { %v975_v40 = vmul.f32 1.442695, %v974_v39  ;;  %v5241_v39 = vld [vmem:[%s7524_s3 + $0x40] sm:$0xff] }
 0x26c   : > { %6307 = vpow2.f32 %v975_v40  ;;  %v5242_v40 = vld [vmem:[%s7524_s3 + $0x48] sm:$0xff] }
 0x276   : > { %v6308_v41 = vpop.eup %6307 }
 0x277   : > { %v977_v42 = vsel %vm894_vm2, %v6308_v41, 0.0 }
 0x278   : > { %978 = vadd.xlane.f32.xlu0 %v977_v42  ;;  %v5243_v42 = vld [vmem:[%s7524_s3 + $0x50] sm:$0xff] }
 0x279   : > { %v6125_v46 = vpack.c.bf16 %v5244_v43, %v5243_v42 }
 0x305   : > { %v979_v49 = vpop.xlane.xlu0 %978 }
 0x306   : > { %6309 = vrcp.f32 %v979_v49  ;;  %v5253_v49 = vld [vmem:[%s7527_s5 + $0x2] ss:$0 sm:$0xff] }
 0x310   : > { %v6310_v52 = vpop.eup %6309 }
 0x311   : > { %v981_v54 = vmul.f32 %v6310_v52, %v6308_v41  ;;  %v6122_v41 = vpack.c.bf16 %v5242_v40, %v5241_v39 }
 0x313   : > { %5682 = vmatmul.mubr.msk.f32.vlgmr.msra.gmra.mrb[2].mxu1 %vm894_vm2, %v981_v54 }
 0x314   : > { %6111 = vmatpush3.bf16.msra.mxu1 %v6110_v53  ;;  %5703 = vmatprep.mubr.msk.f32.mxu1 %vm6418_vm0, %v6419_v11 }
 0x315   : > { %6112 = vmatprep.subr.bf16.mxu1 %v6417_v3 }
 0x318   : > { %6114 = vmatpush3.bf16.msra.mxu1 %v6113_v57 }
 0x319   : > { %5717 = vmatprep.subr.mxu1 %v6419_v11 }
 0x31b   : > { %5704 = vmatmul.mubr.msk.f32.vlgmr.msra.gmra.mrb[4].mxu1 %vm657_vm1, %v6620_v16 }
 0x31c   : > { %5719 = vmatprep.mubr.msk.f32.mxu1 %vm6418_vm0, %v6419_v11 }
 0x3e6   : > { %v1051_v60 = vpop.f32.mrb[2].mxu1 }
 0x3e7   : > { %v5683_v61 = vpop.f32.mrb[3].mxu1 }
 0x3e8   : > { %v5256_v61 = vld [vmem:[%s7525_s6 + $0x48] sm:$0xff] }
 0x3ee   : > { %v1218_v0 = vpop.f32.mrb[4].mxu1 }
 0x3ef   : > { %v1219_v1 = vadd.f32 %v5225_v62, %v1218_v0  ;;  %v5705_v2 = vpop.f32.mrb[5].mxu1  ;;  %v5257_v62 = vld [vmem:[%s7525_s6 + $0x50] sm:$0xff]  ;;  %v5258_v0 = vld [vmem:[%s7525_s6 + $0x58] sm:$0xff] }
 0x3f0   : > { %v6834_v2 = vld [vmem:[%s6663_s23 + $0x10] sm:$0xff] }
 0x3f1   : > { %5718 = vmatpush3.xpose.msk.msra.mxu1 %vm894_vm2, %v1219_v1  ;;  %v6137_v1 = vpack.c.bf16 %v5258_v0, %v5257_v62 }
 0x3f2   : > { %5722 = vmatprep.subr.mxu1 %v6419_v11 }
 0x3f4   : > { %5720 = vmatmul.mubr.msk.f32.vlgmr.msra.gmra.mrb[6].mxu1 %vm894_vm2, %v1136_v4 }
 0x3f5   : > { %5724 = vmatprep.mubr.msk.f32.mxu1 %vm6418_vm0, %v6419_v11  ;;  %5723 = vmatpush3.msra.mxu1 %v1302_v26  ;;  %v6140_v26 = vpack.c.bf16 %v5269_v25, %v5268_v24 }
 0x3f6   : > { %5732 = vmatprep.subr.mxu1 %v6419_v11 }
 0x4c7   : > { %v1379_v13 = vpop.f32.mrb[6].mxu1 }
 0x4c8   : > { %v1380_v14 = vadd.f32 %v6740_v12, %v1379_v13  ;;  %v5721_v15 = vpop.f32.mrb[7].mxu1 }
 0x4ca   : > { %v1383_v17 = vsel %vm894_vm2, %v1380_v14, -inf }
 0x4cb   : > { %1384 = vmax.xlane.f32.xlu1 %v1383_v17  ;;  %v5260_v17 = vld [vmem:[%s7481_s7 + $0x2] ss:$0 sm:$0xff] }
 0x558   : > { %v1385_v18 = vpop.xlane.xlu1 %1384 }
 0x559   : > { %v1386_v19 = vsub.f32 %v1380_v14, %v1385_v18 }
 0x55b   : > { %v1387_v20 = vmul.f32 1.442695, %v1386_v19 }
 0x55d   : > { %6311 = vpow2.f32 %v1387_v20  ;;  %v5266_v20 = vld [vmem:[%s7482_s8 + $0x10] sm:$0xff] }
 0x567   : > { %v6312_v21 = vpop.eup %6311 }
 0x568   : > { %v1389_v22 = vsel %vm894_vm2, %v6312_v21, 0.0 }
 0x569   : > { %1390 = vadd.xlane.f32.xlu1 %v1389_v22 }
 0x5f6   : > { %v1391_v28 = vpop.xlane.xlu1 %1390 }
 0x5f7   : > { %6313 = vrcp.f32 %v1391_v28  ;;  %v5271_v28 = vld [vmem:[%s7524_s3 + $0x78] sm:$0xff] }
 0x601   : > { %v6314_v29 = vpop.eup %6313 }
 0x602   : > { %v1393_v30 = vmul.f32 %v6314_v29, %v6312_v21  ;;  %v6143_v29 = vpack.c.bf16 %v5271_v28, %v5270_v27 }
 0x604   : > { %5725 = vmatmul.mubr.msk.f32.vlgmr.msra.gmra.mrb[8].mxu1 %vm894_vm2, %v1393_v30  ;;  %v5275_v30 = vld [vmem:[%s7522_s21 + $0x60] sm:$0xff] }
 0x605   : > { %5733 = vmatpush3.msra.mxu1 %v1055_v31  ;;  %5734 = vmatprep.mubr.msk.f32.mxu1 %vm6418_vm0, %v6419_v11  ;;  %v5276_v31 = vld [vmem:[%s7522_s21 + $0x68] sm:$0xff] }
 0x606   : > { %6127 = vmatprep.subr.bf16.mxu1 %v6417_v3  ;;  %v6146_v32 = vpack.c.bf16 %v5276_v31, %v5275_v30  ;;  %v2629_v30 = vld [vmem:[%s7486_s12 + $0x8] sm:$0xff]  ;;  %v2630_v31 = vld [vmem:[%s7486_s12 + $0x10] sm:$0xff] }
 0x608   : > { %5735 = vmatmul.mubr.msk.f32.vlgmr.msra.gmra.mrb[10].mxu1 %vm894_vm2, %v1051_v60  ;;  %v5255_v60 = vld [vmem:[%s7525_s6 + $0x40] sm:$0xff] }
 0x609   : > { %6129 = vmatpush3.bf16.msra.mxu1 %v6128_v35  ;;  %5756 = vmatprep.mubr.msk.f32.mxu1 %vm6418_vm0, %v6419_v11  ;;  %v6134_v63 = vpack.c.bf16 %v5256_v61, %v5255_v60  ;;  %v5278_v35 = vld [vmem:[%s7522_s21 + $0x78] sm:$0xff] }
 0x60a   : > { %6130 = vmatprep.subr.bf16.mxu1 %v6417_v3 }
 0x60d   : > { %6132 = vmatpush3.bf16.msra.mxu1 %v6131_v38  ;;  %v6149_v38 = vpack.c.bf16 %v5278_v35, %v5277_v34 }
 0x60e   : > { %5770 = vmatprep.subr.mxu1 %v6419_v11 }
 0x610   : > { %5757 = vmatmul.mubr.msk.f32.vlgmr.msra.gmra.mrb[12].mxu1 %vm657_vm1, %v6620_v16 }
 0x611   : > { %5772 = vmatprep.mubr.msk.f32.mxu1 %vm6418_vm0, %v6419_v11 }
 0x6d7   : > { %v1463_v44 = vpop.f32.mrb[8].mxu1 }
 0x6d8   : > { %v5726_v45 = vpop.f32.mrb[9].mxu1  ;;  %5730 = vmatmul.mubr.msk.f32.vlgmr.msra.gmra.mrb[10].mxu0 %vm894_vm2, %v1463_v44  ;;  %v5280_v44 = vld [vmem:[%s7527_s5 + $0x3] ss:$0 sm:$0xff] }
 0x6d9   : > { %6123 = vmatpush3.bf16.msra.mxu0 %v6122_v41  ;;  %5745 = vmatprep.mubr.msk.f32.mxu0 %vm6418_vm0, %v6419_v11  ;;  %v5273_v45 = vld [vmem:[%s7528_s27 + $0x3] ss:$0 sm:$0xff] }
 0x6da   : > { %6124 = vmatprep.subr.bf16.mxu0 %v6417_v3 }
 0x6db   : > { %v1611_v47 = vpop.f32.mrb[10].mxu1 }
 0x6dc   : > { %v5736_v48 = vpop.f32.mrb[11].mxu1 }
 0x6dd   : > { %6126 = vmatpush3.bf16.msra.mxu0 %v6125_v46 }
 0x6de   : > { %6133 = vmatprep.subr.bf16.mxu0 %v6417_v3 }
 0x6e0   : > { %5746 = vmatmul.mubr.msk.f32.vlgmr.msra.gmra.mrb[12].mxu0 %vm657_vm1, %v6620_v16 }
 0x6e1   : > { %5767 = vmatprep.mubr.msk.f32.mxu0 %vm6418_vm0, %v6419_v11  ;;  %6135 = vmatpush3.bf16.msra.mxu0 %v6134_v63 }
 0x6e2   : > { %6136 = vmatprep.subr.bf16.mxu0 %v6417_v3 }
 0x6e3   : > { %v1777_v50 = vpop.f32.mrb[12].mxu1 }
 0x6e4   : > { %v1778_v51 = vadd.f32 %v5253_v49, %v1777_v50  ;;  %v5758_v52 = vpop.f32.mrb[13].mxu1  ;;  %v5282_v50 = vld [vmem:[%s7525_s6 + $0x60] sm:$0xff] }
 0x6e5   : > { %6138 = vmatpush3.bf16.msra.mxu0 %v6137_v1  ;;  %v5284_v52 = vld [vmem:[%s7525_s6 + $0x70] sm:$0xff] }
 0x6e6   : > { %5771 = vmatpush3.xpose.msk.msra.mxu1 %vm894_vm2, %v1778_v51  ;;  %5780 = vmatprep.subr.mxu0 %v6419_v11  ;;  %v5283_v51 = vld [vmem:[%s7525_s6 + $0x68] sm:$0xff] }
 0x6e7   : > { %5775 = vmatprep.subr.mxu1 %v6419_v11 }
 0x6e8   : > { %5768 = vmatmul.mubr.msk.f32.vlgmr.msra.gmra.mrb[14].mxu0 %vm657_vm1, %v6620_v16 }
 0x6e9   : > { %5782 = vmatprep.mubr.msk.f32.mxu0 %vm6418_vm0, %v6419_v11  ;;  %5781 = vmatpush3.msra.mxu0 %v5266_v20  ;;  %v5295_v20 = vld [vmem:[%s7483_s9] ss:$0 sm:$0xff] }
 0x6ea   : > { %6145 = vmatprep.subr.bf16.mxu0 %v6417_v3 }
 0x7ab   : > { %v1538_v53 = vpop.f32.mrb[10].mxu0 }
 0x7ac   : > { %v6807_v54 = vadd.f32 %v1611_v47, %v1538_v53  ;;  %v5731_v55 = vpop.f32.mrb[11].mxu0  ;;  %v6152_v53 = vpack.c.bf16 %v5283_v51, %v5282_v50  ;;  %v2746_v50 = vld [vmem:[%s7488_s14 + $0x20] sm:$0xff]  ;;  %v2747_v51 = vld [vmem:[%s7488_s14 + $0x28] sm:$0xff] }
 0x7b3   : > { %v1694_v57 = vpop.f32.mrb[12].mxu0 }
 0x7b4   : > { %v1695_v58 = vadd.f32 %v5246_v56, %v1694_v57  ;;  %v5747_v59 = vpop.f32.mrb[13].mxu0  ;;  %v6920_v56 = vld [vmem:[%s6663_s23 + $0x18] sm:$0xff] }
 0x7b6   : > { %5773 = vmatmul.mubr.msk.f32.vlgmr.msra.gmra.mrb[14].mxu1 %vm894_vm2, %v1695_v58 }
 0x7b7   : > { %5777 = vmatprep.mubr.msk.f32.mxu1 %vm6418_vm0, %v6419_v11 }
 0x7bb   : > { %v1860_v15 = vpop.f32.mrb[14].mxu0 }
 0x7bc   : > { %v5769_v18 = vpop.f32.mrb[15].mxu0  ;;  %v1861_v19 = vadd.f32 %v5260_v17, %v1860_v15 }
 0x7be   : > { %5776 = vmatpush3.msra.mxu1 %v1861_v19 }
 0x7bf   : > { %6139 = vmatprep.subr.bf16.mxu1 %v6417_v3 }
 0x889   : > { %v1938_v4 = vpop.f32.mrb[14].mxu1 }
 0x88a   : > { %v1939_v5 = vadd.f32 %v6834_v2, %v1938_v4  ;;  %v5774_v6 = vpop.f32.mrb[15].mxu1 }
 0x88c   : > { %v1942_v7 = vsel %vm894_vm2, %v1939_v5, -inf }
 0x88d   : > { %1943 = vmax.xlane.f32.xlu0 %v1942_v7 }
 0x91a   : > { %v1944_v8 = vpop.xlane.xlu0 %1943 }
 0x91b   : > { %v1945_v9 = vsub.f32 %v1939_v5, %v1944_v8  ;;  %v5287_v5 = vld [vmem:[%s7481_s7 + $0x3] ss:$0 sm:$0xff]  ;;  %v5293_v8 = vld [vmem:[%s7482_s8 + $0x18] sm:$0xff] }
 0x91d   : > { %v1946_v10 = vmul.f32 1.442695, %v1945_v9 }
 0x91f   : > { %6315 = vpow2.f32 %v1946_v10 }
 0x929   : > { %v6316_v13 = vpop.eup %6315 }
 0x92a   : > { %v1948_v14 = vsel %vm894_vm2, %v6316_v13, 0.0 }
 0x92b   : > { %1949 = vadd.xlane.f32.xlu1 %v1948_v14 }
 0x9b8   : > { %v1950_v21 = vpop.xlane.xlu1 %1949 }
 0x9b9   : > { %6317 = vrcp.f32 %v1950_v21 }
 0x9c3   : > { %v6318_v22 = vpop.eup %6317 }
 0x9c4   : > { %v1952_v23 = vmul.f32 %v6318_v22, %v6316_v13 }
 0x9c6   : > { %5778 = vmatmul.mubr.msk.f32.vlgmr.msra.gmra.mrb[16].mxu1 %vm894_vm2, %v1952_v23 }
 0x9c7   : > { %5793 = vmatprep.mubr.msk.f32.mxu1 %vm6418_vm0, %v6419_v11  ;;  %6141 = vmatpush3.bf16.msra.mxu1 %v6140_v26 }
 0x9c8   : > { %6142 = vmatprep.subr.bf16.mxu1 %v6417_v3 }
 0x9cb   : > { %6144 = vmatpush3.bf16.msra.mxu1 %v6143_v29  ;;  %v2628_v29 = vld [vmem:[%s7486_s12] sm:$0xff] }
 0x9cc   : > { %6151 = vmatprep.subr.bf16.mxu1 %v6417_v3 }
 0x9ce   : > { %5794 = vmatmul.mubr.msk.f32.vlgmr.msra.gmra.mrb[18].mxu1 %vm657_vm1, %v6620_v16 }
 0x9cf   : > { %5815 = vmatprep.mubr.msk.f32.mxu1 %vm6418_vm0, %v6419_v11  ;;  %6153 = vmatpush3.bf16.msra.mxu1 %v6152_v53  ;;  %v2748_v53 = vld [vmem:[%s7488_s14 + $0x30] sm:$0xff] }
 0x9d0   : > { %6154 = vmatprep.subr.bf16.mxu1 %v6417_v3 }
 0xa99   : > { %v2022_v36 = vpop.f32.mrb[16].mxu1 }
 0xa9a   : > { %v5779_v37 = vpop.f32.mrb[17].mxu1  ;;  %5783 = vmatmul.mubr.msk.f32.vlgmr.msra.gmra.mrb[16].mxu0 %vm894_vm2, %v2022_v36 }
 0xa9b   : > { %6147 = vmatpush3.bf16.msra.mxu0 %v6146_v32  ;;  %5804 = vmatprep.mubr.msk.f32.mxu0 %vm6418_vm0, %v6419_v11  ;;  %v2631_v32 = vld [vmem:[%s7486_s12 + $0x18] sm:$0xff] }
 0xa9c   : > { %6148 = vmatprep.subr.bf16.mxu0 %v6417_v3  ;;  %v6161_v34 = vpack.c.bf16 %v2631_v32, %v2630_v31 }
 0xa9f   : > { %6150 = vmatpush3.bf16.msra.mxu0 %v6149_v38 }
 0xaa0   : > { %5818 = vmatprep.subr.mxu0 %v6419_v11 }
 0xaa1   : > { %v2181_v39 = vpop.f32.mrb[18].mxu1 }
 0xaa2   : > { %5805 = vmatmul.mubr.msk.f32.vlgmr.msra.gmra.mrb[18].mxu0 %vm657_vm1, %v6620_v16  ;;  %v5795_v40 = vpop.f32.mrb[19].mxu1  ;;  %v2182_v49 = vadd.f32 %v5273_v45, %v2181_v39  ;;  %v5296_v39 = vld [vmem:[%s7484_s10] ss:$0 sm:$0xff]  ;;  %v2743_v45 = vld [vmem:[%s7488_s14 + $0x8] sm:$0xff] }
 0xaa3   : > { %5820 = vmatprep.mubr.msk.f32.mxu0 %vm6418_vm0, %v6419_v11 }
 0xb6d   : > { %v2097_v41 = vpop.f32.mrb[16].mxu0 }
 0xb6e   : > { %v2101_v42 = vadd.f32 %v2097_v41, %v6807_v54  ;;  %v5784_v43 = vpop.f32.mrb[17].mxu0  ;;  %v5285_v54 = vld [vmem:[%s7525_s6 + $0x78] sm:$0xff]  ;;  %v5297_v41 = vld [vmem:[%s7485_s11] ss:$0 sm:$0xff] }
 0xb6f   : > { %v6155_v55 = vpack.c.bf16 %v5285_v54, %v5284_v52  ;;  %v6170_v52 = vpack.c.bf16 %v2747_v51, %v2746_v50  ;;  %v2749_v54 = vld [vmem:[%s7488_s14 + $0x38] sm:$0xff]  ;;  %v5321_v51 = vld [vmem:[%s7525_s6 + $0x90] sm:$0xff] }
 0xb71   : > { %6156 = vmatpush3.bf16.msra.mxu1 %v6155_v55  ;;  %v6173_v55 = vpack.c.bf16 %v2749_v54, %v2748_v53 }
 0xb72   : > { %5828 = vmatprep.subr.mxu1 %v6419_v11 }
 0xb74   : > { %5816 = vmatmul.mubr.msk.f32.vlgmr.msra.gmra.mrb[20].mxu1 %vm657_vm1, %v6620_v16 }
 0xb75   : > { %v2264_v46 = vpop.f32.mrb[18].mxu0  ;;  %5830 = vmatprep.mubr.msk.f32.mxu1 %vm6418_vm0, %v6419_v11  ;;  %5829 = vmatpush3.msra.mxu1 %v5293_v8 }
 0xb76   : > { %v2265_v47 = vadd.f32 %v5280_v44, %v2264_v46  ;;  %v5806_v48 = vpop.f32.mrb[19].mxu0  ;;  %6163 = vmatprep.subr.bf16.mxu1 %v6417_v3  ;;  %v2742_v44 = vld [vmem:[%s7488_s14] sm:$0xff] }
 0xb77   : > { %v6164_v46 = vpack.c.bf16 %v2743_v45, %v2742_v44  ;;  %v2745_v48 = vld [vmem:[%s7488_s14 + $0x18] sm:$0xff]  ;;  %v5306_v44 = vld [vmem:[%s7524_s3 + $0x88] sm:$0xff] }
 0xb78   : > { %5819 = vmatpush3.xpose.msk.msra.mxu0 %vm894_vm2, %v2265_v47  ;;  %v2744_v47 = vld [vmem:[%s7488_s14 + $0x10] sm:$0xff] }
 0xb79   : > { %5823 = vmatprep.subr.mxu0 %v6419_v11 }
 0xb7b   : > { %5821 = vmatmul.mubr.msk.f32.vlgmr.msra.gmra.mrb[20].mxu0 %vm894_vm2, %v2182_v49  ;;  %v6167_v49 = vpack.c.bf16 %v2745_v48, %v2744_v47  ;;  %v5307_v48 = vld [vmem:[%s7524_s3 + $0x90] sm:$0xff] }
 0xb7c   : > { %5825 = vmatprep.mubr.msk.f32.mxu0 %vm6418_vm0, %v6419_v11 }
 0xc47   : > { %v2347_v4 = vpop.f32.mrb[20].mxu1 }
 0xc48   : > { %v5817_v6 = vpop.f32.mrb[21].mxu1  ;;  %v2348_v7 = vadd.f32 %v5287_v5, %v2347_v4 }
 0xc4a   : > { %5824 = vmatpush3.msra.mxu0 %v2348_v7 }
 0xc4b   : > { %6157 = vmatprep.subr.bf16.mxu0 %v6417_v3 }
 0xc4e   : > { %v2425_v57 = vpop.f32.mrb[20].mxu0 }
 0xc4f   : > { %v2426_v58 = vadd.f32 %v6920_v56, %v2425_v57  ;;  %v5822_v59 = vpop.f32.mrb[21].mxu0  ;;  %v5298_v57 = vld [vmem:[%s7487_s13] ss:$0 sm:$0xff] }
 0xc51   : > { %v2429_v60 = vsel %vm894_vm2, %v2426_v58, -inf }
 0xc52   : > { %2430 = vmax.xlane.f32.xlu0 %v2429_v60 }
 0xcdf   : > { %v2431_v61 = vpop.xlane.xlu0 %2430 }
 0xce0   : > { %v2432_v62 = vsub.f32 %v2426_v58, %v2431_v61 }
 0xce2   : > { %v2433_v63 = vmul.f32 1.442695, %v2432_v62 }
 0xce4   : > { %6319 = vpow2.f32 %v2433_v63 }
 0xcee   : > { %v6320_v0 = vpop.eup %6319 }
 0xcef   : > { %v2435_v1 = vsel %vm894_vm2, %v6320_v0, 0.0 }
 0xcf0   : > { %2436 = vadd.xlane.f32.xlu1 %v2435_v1 }
 0xd7d   : > { %v2437_v9 = vpop.xlane.xlu1 %2436 }
 0xd7e   : > { %6321 = vrcp.f32 %v2437_v9 }
 0xd88   : > { %v6322_v10 = vpop.eup %6321 }
 0xd89   : > { %v2439_v13 = vmul.f32 %v6322_v10, %v6320_v0 }
 0xd8b   : > { %5826 = vmatmul.mubr.msk.f32.vlgmr.msra.gmra.mrb[22].mxu0 %vm894_vm2, %v2439_v13 }
 0xd8c   : > { %5841 = vmatprep.mubr.msk.f32.mxu0 %vm6418_vm0, %v6419_v11 }
 0xe5e   : > { %v2509_v14 = vpop.f32.mrb[22].mxu0 }
 0xe5f   : > { %v5827_v15 = vpop.f32.mrb[23].mxu0  ;;  %5831 = vmatmul.mubr.msk.f32.vlgmr.msra.gmra.mrb[22].mxu1 %vm894_vm2, %v2509_v14 }
 0xe60   : > { %5860 = vmatprep.mubr.msk.f32.mxu1 %vm6418_vm0, %v6419_v11  ;;  %6165 = vmatpush3.bf16.msra.mxu1 %v6164_v46  ;;  %v5320_v46 = vld [vmem:[%s7525_s6 + $0x88] sm:$0xff] }
 0xe61   : > { %6166 = vmatprep.subr.bf16.mxu1 %v6417_v3 }
 0xe64   : > { %6168 = vmatpush3.bf16.msra.mxu1 %v6167_v49  ;;  %v5308_v49 = vld [vmem:[%s7524_s3 + $0x98] sm:$0xff] }
 0xe65   : > { %6169 = vmatprep.subr.bf16.mxu1 %v6417_v3  ;;  %v6179_v50 = vpack.c.bf16 %v5308_v49, %v5307_v48  ;;  %v5338_v49 = vld [vmem:[%s7522_s21 + $0xa8] sm:$0xff] }
 0xe68   : > { %6171 = vmatpush3.bf16.msra.mxu1 %v6170_v52  ;;  %v5322_v52 = vld [vmem:[%s7525_s6 + $0x98] sm:$0xff] }
 0xe69   : > { %6172 = vmatprep.subr.bf16.mxu1 %v6417_v3  ;;  %v6191_v53 = vpack.c.bf16 %v5322_v52, %v5321_v51 }
 0xe6c   : > { %6174 = vmatpush3.bf16.msra.mxu1 %v6173_v55 }
 0xe6d   : > { %6187 = vmatprep.subr.bf16.mxu1 %v6417_v3 }
 0xf32   : > { %v2584_v17 = vpop.f32.mrb[22].mxu1 }
 0xf33   : > { %v2588_v18 = vadd.f32 %v2584_v17, %v2101_v42  ;;  %v5832_v19 = vpop.f32.mrb[23].mxu1 }
 0xf35   : > { %v2589_v21 = vadd.f32 %v2588_v18, %v6620_v16  ;;  %v6158_v16 = vpack.c.bf16 %v2629_v30, %v2628_v29 }
 0xf37   : > { %v2597_v22 = vadd.f32 %v5295_v20, %v2589_v21  ;;  %6159 = vmatpush3.bf16.msra.mxu0 %v6158_v16  ;;  %v5301_v16 = vld [vmem:[%s7489_s15] ss:$0 sm:$0xff] }
 0xf38   : > { %6160 = vmatprep.subr.bf16.mxu0 %v6417_v3 }
 0xf39   : > { %v2600_v23 = vsel %vm657_vm1, %v2597_v22, 0.0 }
 0xf3a   : > { %2601 = vadd.xlane.f32.xlu0 %v2600_v23 }
 0xf3b   : > { %6162 = vmatpush3.bf16.msra.mxu0 %v6161_v34 }
 0xf3c   : > { %6175 = vmatprep.subr.bf16.mxu0 %v6417_v3 }
 0xfc7   : > { %v2602_v24 = vpop.xlane.xlu0 %2601 }
 0xfc8   : > { %v2604_v25 = vmul.f32 0.03125, %v2602_v24 }
 0xfca   : > { %v2605_v26 = vsub.f32 %v2597_v22, %v2604_v25 }
 0xfcc   : > { %v2606_v27 = vmul.f32 %v2605_v26, %v2605_v26 }
 0xfce   : > { %v2607_v28 = vsel %vm657_vm1, %v2606_v27, 0.0 }
 0xfcf   : > { %2608 = vadd.xlane.f32.xlu1 %v2607_v28 }
0x105c   : > { %v2609_v35 = vpop.xlane.xlu1 %2608 }
0x105d   : > { %v2610_v36 = vmul.f32 0.03125, %v2609_v35 }
0x105f   : > { %v2611_v37 = vadd.f32 1e-05, %v2610_v36 }
0x1061   : > { %6323 = vrsqrt.f32 %v2611_v37 }
0x106b   : > { %v6324_v38 = vpop.eup %6323 }
0x106c   : > { %v2613_v40 = vmul.f32 %v6324_v38, %v2605_v26 }
0x106e   : > { %v2620_v42 = vmul.f32 %v5296_v39, %v2613_v40 }
0x1070   : > { %v6965_v43 = vadd.f32 %v5297_v41, %v2620_v42  ;;  %v5305_v42 = vld [vmem:[%s7524_s3 + $0x80] sm:$0xff] }
0x1071   : > { %v6176_v45 = vpack.c.bf16 %v5306_v44, %v5305_v42 }
0x1072   : > { %5842 = vmatmul.mubr.msk.f32.vlgmr.msra.gmra.mrb[24].mxu0 %vm657_vm1, %v6965_v43 }
0x1073   : > { %5871 = vmatprep.mubr.msk.f32.mxu0 %vm6418_vm0, %v6419_v11  ;;  %6177 = vmatpush3.bf16.msra.mxu0 %v6176_v45 }
0x1074   : > { %6178 = vmatprep.subr.bf16.mxu0 %v6417_v3 }
0x1077   : > { %6180 = vmatpush3.bf16.msra.mxu0 %v6179_v50 }
0x1078   : > { %6181 = vmatprep.subr.bf16.mxu0 %v6417_v3 }
0x1145   : > { %v2708_v58 = vpop.f32.mrb[24].mxu0 }
0x1146   : > { %v2709_v59 = vadd.f32 %v5298_v57, %v2708_v58  ;;  %v5843_v60 = vpop.f32.mrb[25].mxu0 }
0x1148   : > { %v2713_v61 = vmul.f32 0.70710677, %v2709_v59  ;;  %v2712_v28 = vmul.f32 0.5, %v2709_v59  ;;  %v5303_v59 = vld [vmem:[%s7490_s16] ss:$0 sm:$0xff] }
0x114a   : > { %v5300_v62 = vclamps-f32 %v2713_v61, 4.0  ;;  %v5312_v61 = vld [vmem:[%s7522_s21 + $0x80] sm:$0xff] }
0x114c   : > { %v2716_v63 = vmul.f32 %v5300_v62, %v5300_v62 }
0x114e   : > { %v2717_v0 = vmul.f32 -2.7261424e-10, %v2716_v63  ;;  %v2730_v1 = vmul.f32 -1.45660715e-05, %v2716_v63 }
0x1150   : > { %v2718_v4 = vadd.f32 2.7706815e-08, %v2717_v0  ;;  %v2731_v5 = vadd.f32 -0.00021337405, %v2730_v1 }
0x1152   : > { %v2719_v6 = vmul.f32 %v2718_v4, %v2716_v63  ;;  %v2732_v7 = vmul.f32 %v2731_v5, %v2716_v63  ;;  %v5314_v5 = vld [vmem:[%s7522_s21 + $0x90] sm:$0xff] }
0x1154   : > { %v2720_v8 = vadd.f32 -2.101024e-06, %v2719_v6  ;;  %v2733_v9 = vadd.f32 -0.001682827, %v2732_v7  ;;  %v5315_v6 = vld [vmem:[%s7522_s21 + $0x98] sm:$0xff] }
0x1155   : > { %v6185_v7 = vpack.c.bf16 %v5315_v6, %v5314_v5 }
0x1156   : > { %v2721_v10 = vmul.f32 %v2720_v8, %v2716_v63  ;;  %v2734_v13 = vmul.f32 %v2733_v9, %v2716_v63  ;;  %v5324_v8 = vld [vmem:[%s7481_s7 + $0x4] ss:$0 sm:$0xff] }
0x1158   : > { %v2722_v14 = vadd.f32 -5.6925062e-05, %v2721_v10  ;;  %v2735_v15 = vadd.f32 -0.0073733293, %v2734_v13 }
0x115a   : > { %v2723_v17 = vmul.f32 %v2722_v14, %v2716_v63  ;;  %v2736_v18 = vmul.f32 %v2735_v15, %v2716_v63 }
0x115c   : > { %v2724_v19 = vadd.f32 -0.00073499064, %v2723_v17  ;;  %v2737_v20 = vadd.f32 -0.014264739, %v2736_v18  ;;  %v5317_v17 = vld [vmem:[%s7527_s5 + $0x4] ss:$0 sm:$0xff] }
0x115e   : > { %v2725_v21 = vmul.f32 %v2724_v19, %v2716_v63  ;;  %6325 = vrcp.f32 %v2737_v20  ;;  %v5330_v19 = vld [vmem:[%s7524_s3 + $0xa0] sm:$0xff]  ;;  %v5331_v20 = vld [vmem:[%s7524_s3 + $0xa8] sm:$0xff] }
0x1160   : > { %v2726_v22 = vadd.f32 -0.0029546, %v2725_v21  ;;  %v5310_v21 = vld [vmem:[%s7528_s27 + $0x4] ss:$0 sm:$0xff] }
0x1162   : > { %v2727_v23 = vmul.f32 %v2726_v22, %v2716_v63  ;;  %v5304_v63 = vld [vmem:[%s7491_s17] ss:$0 sm:$0xff] }
0x1164   : > { %v2728_v24 = vadd.f32 -0.016096033, %v2727_v23 }
0x1166   : > { %v2729_v25 = vmul.f32 %v5300_v62, %v2728_v24  ;;  %v5313_v62 = vld [vmem:[%s7522_s21 + $0x88] sm:$0xff]  ;;  %v6194_v24 = vpack.c.bf16 %v5331_v20, %v5330_v19 }
0x1167   : > { %v6182_v1 = vpack.c.bf16 %v5313_v62, %v5312_v61  ;;  %v5335_v61 = vld [vmem:[%s7528_s27 + $0x5] ss:$0 sm:$0xff] }
0x1168   : > { %v6326_v26 = vpop.eup %6325 }
0x1169   : > { %v2739_v27 = vmul.f32 %v6326_v26, %v2729_v25  ;;  %v5332_v26 = vld [vmem:[%s7524_s3 + $0xb0] sm:$0xff] }
0x116b   : > { %v2740_v29 = vadd.f32 1.0, %v2739_v27  ;;  %v5333_v27 = vld [vmem:[%s7524_s3 + $0xb8] sm:$0xff] }
0x116d   : > { %v2741_v30 = vmul.f32 %v2740_v29, %v2712_v28  ;;  %v6197_v28 = vpack.c.bf16 %v5333_v27, %v5332_v26  ;;  %v5344_v29 = vld [vmem:[%s7525_s6 + $0xa0] sm:$0xff]  ;;  %v5367_v26 = vld [vmem:[%s7522_s21 + $0xd8] sm:$0xff] }
0x116f   : > { %5861 = vmatmul.mubr.msk.f32.vlgmr.msra.gmra.mrb[24].mxu1 %vm2757_vm3, %v2741_v30  ;;  %v5345_v30 = vld [vmem:[%s7525_s6 + $0xa8] sm:$0xff] }
0x1170   : > { %5893 = vmatprep.mubr.msk.f32.mxu1 %vm6418_vm0, %v6419_v11 }
0x1242   : > { %v2827_v31 = vpop.f32.mrb[24].mxu1 }
0x1243   : > { %v2828_v32 = vadd.f32 %v5301_v16, %v2827_v31  ;;  %v5862_v34 = vpop.f32.mrb[25].mxu1  ;;  %v6206_v16 = vpack.c.bf16 %v5345_v30, %v5344_v29  ;;  %v5346_v31 = vld [vmem:[%s7525_s6 + $0xb0] sm:$0xff]  ;;  %v5358_v29 = vld [vmem:[%s7524_s3 + $0xc8] sm:$0xff] }
0x1245   : > { %v2831_v35 = vadd.f32 %v2828_v32, %v6965_v43  ;;  %v5319_v43 = vld [vmem:[%s7525_s6 + $0x80] sm:$0xff]  ;;  %v5347_v32 = vld [vmem:[%s7525_s6 + $0xb8] sm:$0xff] }
0x1246   : > { %v6188_v47 = vpack.c.bf16 %v5320_v46, %v5319_v43  ;;  %v6209_v34 = vpack.c.bf16 %v5347_v32, %v5346_v31  ;;  %v5360_v31 = vld [vmem:[%s7524_s3 + $0xd8] sm:$0xff] }
0x1247   : > { %v2834_v36 = vsel %vm657_vm1, %v2831_v35, 0.0 }
0x1248   : > { %2835 = vadd.xlane.f32.xlu0 %v2834_v36  ;;  %6189 = vmatpush3.bf16.msra.mxu1 %v6188_v47 }
0x1249   : > { %6190 = vmatprep.subr.bf16.mxu1 %v6417_v3 }
0x124c   : > { %6192 = vmatpush3.bf16.msra.mxu1 %v6191_v53  ;;  %v5339_v53 = vld [vmem:[%s7522_s21 + $0xb0] sm:$0xff] }
0x124d   : > { %5901 = vmatprep.subr.mxu1 %v6419_v11 }
0x12d5   : > { %v2836_v37 = vpop.xlane.xlu0 %2835 }
0x12d6   : > { %v2837_v38 = vmul.f32 0.03125, %v2836_v37 }
0x12d8   : > { %v2838_v39 = vsub.f32 %v2831_v35, %v2837_v38 }
0x12da   : > { %v2839_v40 = vmul.f32 %v2838_v39, %v2838_v39 }
0x12dc   : > { %v2840_v41 = vsel %vm657_vm1, %v2839_v40, 0.0 }
0x12dd   : > { %2841 = vadd.xlane.f32.xlu1 %v2840_v41 }
0x136a   : > { %v2842_v54 = vpop.xlane.xlu1 %2841 }
0x136b   : > { %v2843_v55 = vmul.f32 0.03125, %v2842_v54  ;;  %v5340_v54 = vld [vmem:[%s7522_s21 + $0xb8] sm:$0xff] }
0x136d   : > { %v2844_v57 = vadd.f32 1e-05, %v2843_v55  ;;  %v6203_v55 = vpack.c.bf16 %v5340_v54, %v5339_v53  ;;  %v5376_v54 = vld [vmem:[%s7481_s7 + $0x6] ss:$0 sm:$0xff] }
0x136f   : > { %6327 = vrsqrt.f32 %v2844_v57 }
0x1379   : > { %v6328_v58 = vpop.eup %6327 }
0x137a   : > { %v2846_v60 = vmul.f32 %v6328_v58, %v2838_v39 }
0x137c   : > { %v2853_v0 = vmul.f32 %v5303_v59, %v2846_v60  ;;  %v5342_v59 = vld [vmem:[%s7527_s5 + $0x5] ss:$0 sm:$0xff] }
0x137e   : > { %v7051_v4 = vadd.f32 %v5304_v63, %v2853_v0  ;;  %v5349_v0 = vld [vmem:[%s7481_s7 + $0x5] ss:$0 sm:$0xff] }
0x1380   : > { %5872 = vmatmul.mubr.msk.f32.vlgmr.msra.gmra.mrb[26].mxu0 %vm657_vm1, %v7051_v4  ;;  %5894 = vmatmul.mubr.msk.f32.vlgmr.msra.gmra.mrb[26].mxu1 %vm657_vm1, %v7051_v4 }
0x1381   : > { %6183 = vmatpush3.bf16.msra.mxu0 %v6182_v1  ;;  %5882 = vmatprep.mubr.msk.f32.mxu0 %vm6418_vm0, %v6419_v11 }
0x1382   : > { %6184 = vmatprep.subr.bf16.mxu0 %v6417_v3  ;;  %5903 = vmatprep.mubr.msk.f32.mxu1 %vm6418_vm0, %v6419_v11 }
0x1385   : > { %6186 = vmatpush3.bf16.msra.mxu0 %v6185_v7 }
0x1386   : > { %5896 = vmatprep.subr.mxu0 %v6419_v11 }
0x1388   : > { %5883 = vmatmul.mubr.msk.f32.vlgmr.msra.gmra.mrb[28].mxu0 %vm657_vm1, %v7051_v4 }
0x1389   : > { %5898 = vmatprep.mubr.msk.f32.mxu0 %vm6418_vm0, %v6419_v11 }
0x1453   : > { %v2943_v9 = vpop.f32.mrb[26].mxu0  ;;  %v3109_v10 = vpop.f32.mrb[26].mxu1 }
0x1454   : > { %v3110_v13 = vadd.f32 %v5324_v8, %v3109_v10  ;;  %v5873_v14 = vpop.f32.mrb[27].mxu0  ;;  %v5895_v15 = vpop.f32.mrb[27].mxu1  ;;  %v2944_v25 = vadd.f32 %v5310_v21, %v2943_v9  ;;  %v5329_v21 = vld [vmem:[%s7482_s8 + $0x20] sm:$0xff] }
0x1456   : > { %5902 = vmatpush3.msra.mxu1 %v3110_v13 }
0x1457   : > { %6199 = vmatprep.subr.bf16.mxu1 %v6417_v3 }
0x145b   : > { %v3026_v18 = vpop.f32.mrb[28].mxu0 }
0x145c   : > { %v3027_v22 = vadd.f32 %v5317_v17, %v3026_v18  ;;  %v5884_v23 = vpop.f32.mrb[29].mxu0  ;;  %v5354_v18 = vld [vmem:[%s7482_s8 + $0x28] sm:$0xff] }
0x145d   : > { %v5365_v23 = vld [vmem:[%s7522_s21 + $0xc8] sm:$0xff] }
0x145e   : > { %5897 = vmatpush3.xpose.msk.msra.mxu0 %vm894_vm2, %v3027_v22  ;;  %v5364_v22 = vld [vmem:[%s7522_s21 + $0xc0] sm:$0xff] }
0x145f   : > { %6193 = vmatprep.subr.bf16.mxu0 %v6417_v3 }
0x1461   : > { %5899 = vmatmul.mubr.msk.f32.vlgmr.msra.gmra.mrb[30].mxu0 %vm894_vm2, %v2944_v25  ;;  %v5366_v25 = vld [vmem:[%s7522_s21 + $0xd0] sm:$0xff] }
0x1462   : > { %6195 = vmatpush3.bf16.msra.mxu0 %v6194_v24  ;;  %5914 = vmatprep.mubr.msk.f32.mxu0 %vm6418_vm0, %v6419_v11  ;;  %v6218_v24 = vpack.c.bf16 %v5365_v23, %v5364_v22  ;;  %v6221_v27 = vpack.c.bf16 %v5367_v26, %v5366_v25  ;;  %v5400_v22 = vld [vmem:[%s7525_s6 + $0xf8] sm:$0xff]  ;;  %v5391_v25 = vld [vmem:[%s7522_s21 + $0xe8] sm:$0xff] }
0x1463   : > { %6196 = vmatprep.subr.bf16.mxu0 %v6417_v3 }
0x1466   : > { %6198 = vmatpush3.bf16.msra.mxu0 %v6197_v28  ;;  %v5357_v28 = vld [vmem:[%s7524_s3 + $0xc0] sm:$0xff] }
0x1467   : > { %6205 = vmatprep.subr.bf16.mxu0 %v6417_v3  ;;  %v6212_v30 = vpack.c.bf16 %v5358_v29, %v5357_v28  ;;  %v5393_v28 = vld [vmem:[%s7522_s21 + $0xf8] sm:$0xff] }
0x1469   : > { %5915 = vmatmul.mubr.msk.f32.vlgmr.msra.gmra.mrb[32].mxu0 %vm657_vm1, %v7051_v4 }
0x146a   : > { %6207 = vmatpush3.bf16.msra.mxu0 %v6206_v16  ;;  %5936 = vmatprep.mubr.msk.f32.mxu0 %vm6418_vm0, %v6419_v11  ;;  %v5359_v16 = vld [vmem:[%s7524_s3 + $0xd0] sm:$0xff] }
0x146b   : > { %6208 = vmatprep.subr.bf16.mxu0 %v6417_v3 }
0x146e   : > { %6210 = vmatpush3.bf16.msra.mxu0 %v6209_v34 }
0x146f   : > { %5949 = vmatprep.subr.mxu0 %v6419_v11 }
0x1471   : > { %5937 = vmatmul.mubr.msk.f32.vlgmr.msra.gmra.mrb[34].mxu0 %vm657_vm1, %v7051_v4 }
0x1472   : > { %5951 = vmatprep.mubr.msk.f32.mxu0 %vm6418_vm0, %v6419_v11  ;;  %5950 = vmatpush3.msra.mxu0 %v5354_v18 }
0x1473   : > { %6211 = vmatprep.subr.bf16.mxu0 %v6417_v3 }
0x1534   : > { %v3185_v35 = vpop.f32.mrb[30].mxu0 }
0x1535   : > { %v3186_v36 = vadd.f32 %v3185_v35, %v6666_v33  ;;  %v5900_v37 = vpop.f32.mrb[31].mxu0  ;;  %v5337_v33 = vld [vmem:[%s7522_s21 + $0xa0] sm:$0xff]  ;;  %v6215_v35 = vpack.c.bf16 %v5360_v31, %v5359_v16 }
0x1536   : > { %v6200_v51 = vpack.c.bf16 %v5338_v49, %v5337_v33  ;;  %v5372_v37 = vld [vmem:[%s7525_s6 + $0xc8] sm:$0xff] }
0x1537   : > { %v3189_v38 = vsel %vm894_vm2, %v3186_v36, -inf }
0x1538   : > { %3190 = vmax.xlane.f32.xlu0 %v3189_v38 }
0x153c   : > { %v3354_v39 = vpop.f32.mrb[32].mxu0 }
0x153d   : > { %v5916_v40 = vpop.f32.mrb[33].mxu0  ;;  %v3355_v1 = vadd.f32 %v5335_v61, %v3354_v39 }
0x1544   : > { %v3520_v41 = vpop.f32.mrb[34].mxu0 }
0x1545   : > { %v5938_v42 = vpop.f32.mrb[35].mxu0  ;;  %v3521_v5 = vadd.f32 %v5349_v0, %v3520_v41  ;;  %v5373_v41 = vld [vmem:[%s7525_s6 + $0xd0] sm:$0xff] }
0x1546   : > { %v5374_v42 = vld [vmem:[%s7525_s6 + $0xd8] sm:$0xff] }
0x15c5   : > { %v3191_v44 = vpop.xlane.xlu0 %3190 }
0x15c6   : > { %v3192_v45 = vsub.f32 %v3186_v36, %v3191_v44  ;;  %v5371_v36 = vld [vmem:[%s7525_s6 + $0xc0] sm:$0xff] }
0x15c7   : > { %v6224_v40 = vpack.c.bf16 %v5372_v37, %v5371_v36  ;;  %v5369_v44 = vld [vmem:[%s7527_s5 + $0x6] ss:$0 sm:$0xff] }
0x15c8   : > { %v3193_v43 = vmul.f32 1.442695, %v3192_v45  ;;  %v6227_v45 = vpack.c.bf16 %v5374_v42, %v5373_v41  ;;  %v5388_v41 = vld [vmem:[%s7528_s27 + $0x7] ss:$0 sm:$0xff] }
0x15ca   : > { %6329 = vpow2.f32 %v3193_v43 }
0x15d4   : > { %v6330_v46 = vpop.eup %6329 }
0x15d5   : > { %v3195_v47 = vsel %vm894_vm2, %v6330_v46, 0.0 }
0x15d6   : > { %3196 = vadd.xlane.f32.xlu1 %v3195_v47 }
0x1663   : > { %v3197_v48 = vpop.xlane.xlu1 %3196 }
0x1664   : > { %6331 = vrcp.f32 %v3197_v48 }
0x166e   : > { %v6332_v50 = vpop.eup %6331 }
0x166f   : > { %v3199_v52 = vmul.f32 %v6332_v50, %v6330_v46  ;;  %v5362_v50 = vld [vmem:[%s7528_s27 + $0x6] ss:$0 sm:$0xff] }
0x1671   : > { %5904 = vmatmul.mubr.msk.f32.vlgmr.msra.gmra.mrb[28].mxu1 %vm894_vm2, %v3199_v52 }
0x1672   : > { %6201 = vmatpush3.bf16.msra.mxu1 %v6200_v51  ;;  %5925 = vmatprep.mubr.msk.f32.mxu1 %vm6418_vm0, %v6419_v11 }
0x1673   : > { %6202 = vmatprep.subr.bf16.mxu1 %v6417_v3 }
0x1676   : > { %6204 = vmatpush3.bf16.msra.mxu1 %v6203_v55 }
0x1677   : > { %5939 = vmatprep.subr.mxu1 %v6419_v11 }
0x1679   : > { %5926 = vmatmul.mubr.msk.f32.vlgmr.msra.gmra.mrb[30].mxu1 %vm657_vm1, %v7051_v4 }
0x167a   : > { %5941 = vmatprep.mubr.msk.f32.mxu1 %vm6418_vm0, %v6419_v11 }
0x1744   : > { %v3269_v57 = vpop.f32.mrb[28].mxu1 }
0x1745   : > { %v5905_v58 = vpop.f32.mrb[29].mxu1 }
0x174c   : > { %v3437_v60 = vpop.f32.mrb[30].mxu1 }
0x174d   : > { %v3438_v62 = vadd.f32 %v5342_v59, %v3437_v60  ;;  %v5927_v63 = vpop.f32.mrb[31].mxu1 }
0x174f   : > { %5940 = vmatpush3.xpose.msk.msra.mxu1 %vm894_vm2, %v3438_v62 }
0x1750   : > { %5944 = vmatprep.subr.mxu1 %v6419_v11 }
0x1752   : > { %5942 = vmatmul.mubr.msk.f32.vlgmr.msra.gmra.mrb[32].mxu1 %vm894_vm2, %v3355_v1 }
0x1753   : > { %5945 = vmatpush3.msra.mxu1 %v3521_v5  ;;  %5946 = vmatprep.mubr.msk.f32.mxu1 %vm6418_vm0, %v6419_v11 }
0x1754   : > { %5954 = vmatprep.subr.mxu1 %v6419_v11 }
0x1825   : > { %v3596_v6 = vpop.f32.mrb[32].mxu1 }
0x1826   : > { %v3597_v7 = vadd.f32 %v6740_v12, %v3596_v6  ;;  %v5943_v8 = vpop.f32.mrb[33].mxu1 }
0x1827   : > { %v5383_v8 = vld [vmem:[%s7524_s3 + $0xe0] sm:$0xff] }
0x1828   : > { %v3600_v9 = vsel %vm894_vm2, %v3597_v7, -inf }
0x1829   : > { %3601 = vmax.xlane.f32.xlu0 %v3600_v9  ;;  %v5384_v9 = vld [vmem:[%s7524_s3 + $0xe8] sm:$0xff] }
0x18b6   : > { %v3602_v10 = vpop.xlane.xlu0 %3601 }
0x18b7   : > { %v3603_v13 = vsub.f32 %v3597_v7, %v3602_v10  ;;  %v5381_v7 = vld [vmem:[%s7482_s8 + $0x30] sm:$0xff] }
0x18b9   : > { %v3604_v14 = vmul.f32 1.442695, %v3603_v13  ;;  %v6230_v13 = vpack.c.bf16 %v5384_v9, %v5383_v8 }
0x18bb   : > { %6333 = vpow2.f32 %v3604_v14 }
0x18c5   : > { %v6334_v15 = vpop.eup %6333 }
0x18c6   : > { %v3606_v17 = vsel %vm894_vm2, %v6334_v15, 0.0 }
0x18c7   : > { %3607 = vadd.xlane.f32.xlu1 %v3606_v17  ;;  %v5386_v17 = vld [vmem:[%s7524_s3 + $0xf8] sm:$0xff] }
0x1954   : > { %v3608_v12 = vpop.xlane.xlu1 %3607 }
0x1955   : > { %6335 = vrcp.f32 %v3608_v12  ;;  %v5397_v12 = vld [vmem:[%s7525_s6 + $0xe0] sm:$0xff] }
0x195f   : > { %v6336_v19 = vpop.eup %6335 }
0x1960   : > { %v3610_v20 = vmul.f32 %v6336_v19, %v6334_v15  ;;  %v5385_v15 = vld [vmem:[%s7524_s3 + $0xf0] sm:$0xff]  ;;  %v5398_v19 = vld [vmem:[%s7525_s6 + $0xe8] sm:$0xff] }
0x1961   : > { %v6233_v18 = vpack.c.bf16 %v5386_v17, %v5385_v15  ;;  %v5418_v15 = vld [vmem:[%s7486_s12 + $0x38] sm:$0xff] }
0x1962   : > { %5947 = vmatmul.mubr.msk.f32.vlgmr.msra.gmra.mrb[34].mxu1 %vm894_vm2, %v3610_v20  ;;  %v6242_v20 = vpack.c.bf16 %v5398_v19, %v5397_v12 }
0x1963   : > { %5955 = vmatpush3.msra.mxu1 %v5329_v21  ;;  %5956 = vmatprep.mubr.msk.f32.mxu1 %vm6418_vm0, %v6419_v11  ;;  %v5399_v21 = vld [vmem:[%s7525_s6 + $0xf0] sm:$0xff] }
0x1964   : > { %6217 = vmatprep.subr.bf16.mxu1 %v6417_v3  ;;  %v6245_v23 = vpack.c.bf16 %v5400_v22, %v5399_v21  ;;  %v5413_v21 = vld [vmem:[%s7484_s10 + $0x1] ss:$0 sm:$0xff] }
0x1966   : > { %5957 = vmatmul.mubr.msk.f32.vlgmr.msra.gmra.mrb[36].mxu1 %vm894_vm2, %v3269_v57 }
0x1967   : > { %6219 = vmatpush3.bf16.msra.mxu1 %v6218_v24  ;;  %5978 = vmatprep.mubr.msk.f32.mxu1 %vm6418_vm0, %v6419_v11  ;;  %v5390_v24 = vld [vmem:[%s7522_s21 + $0xe0] sm:$0xff] }
0x1968   : > { %6220 = vmatprep.subr.bf16.mxu1 %v6417_v3  ;;  %v6236_v26 = vpack.c.bf16 %v5391_v25, %v5390_v24 }
0x196b   : > { %6222 = vmatpush3.bf16.msra.mxu1 %v6221_v27  ;;  %v5392_v27 = vld [vmem:[%s7522_s21 + $0xf0] sm:$0xff] }
0x196c   : > { %5992 = vmatprep.subr.mxu1 %v6419_v11  ;;  %v6239_v16 = vpack.c.bf16 %v5393_v28, %v5392_v27  ;;  %v5424_v27 = vld [vmem:[%s7488_s14 + $0x48] sm:$0xff] }
0x196e   : > { %5979 = vmatmul.mubr.msk.f32.vlgmr.msra.gmra.mrb[38].mxu1 %vm657_vm1, %v7051_v4 }
0x196f   : > { %5994 = vmatprep.mubr.msk.f32.mxu1 %vm6418_vm0, %v6419_v11 }
0x1a35   : > { %v3680_v32 = vpop.f32.mrb[34].mxu1 }
0x1a36   : > { %v5948_v34 = vpop.f32.mrb[35].mxu1  ;;  %5952 = vmatmul.mubr.msk.f32.vlgmr.msra.gmra.mrb[36].mxu0 %vm894_vm2, %v3680_v32 }
0x1a37   : > { %6213 = vmatpush3.bf16.msra.mxu0 %v6212_v30  ;;  %5967 = vmatprep.mubr.msk.f32.mxu0 %vm6418_vm0, %v6419_v11 }
0x1a38   : > { %6214 = vmatprep.subr.bf16.mxu0 %v6417_v3 }
0x1a39   : > { %v3828_v38 = vpop.f32.mrb[36].mxu1 }
0x1a3a   : > { %v5958_v39 = vpop.f32.mrb[37].mxu1 }
0x1a3b   : > { %6216 = vmatpush3.bf16.msra.mxu0 %v6215_v35  ;;  %v5395_v39 = vld [vmem:[%s7527_s5 + $0x7] ss:$0 sm:$0xff]  ;;  %s7530_s5 = sld [smem:[#allocation18_spill]] }
0x1a3c   : > { %6223 = vmatprep.subr.bf16.mxu0 %v6417_v3 }
0x1a3e   : > { %5968 = vmatmul.mubr.msk.f32.vlgmr.msra.gmra.mrb[38].mxu0 %vm657_vm1, %v7051_v4 }
0x1a3f   : > { %6225 = vmatpush3.bf16.msra.mxu0 %v6224_v40  ;;  %5989 = vmatprep.mubr.msk.f32.mxu0 %vm6418_vm0, %v6419_v11 }
0x1a40   : > { %6226 = vmatprep.subr.bf16.mxu0 %v6417_v3 }
0x1a41   : > { %v3994_v43 = vpop.f32.mrb[38].mxu1  ;;  %s7431_s6 = scalar_lea.hbm %s7530_s5, %s5441_s24 }
0x1a42   : > { %v3995_v46 = vadd.f32 %v5369_v44, %v3994_v43  ;;  %v5980_v47 = vpop.f32.mrb[39].mxu1 }
0x1a43   : > { %6228 = vmatpush3.bf16.msra.mxu0 %v6227_v45  ;;  %v5402_v45 = vld [vmem:[%s7481_s7 + $0x7] ss:$0 sm:$0xff] }
0x1a44   : > { %5993 = vmatpush3.xpose.msk.msra.mxu1 %vm894_vm2, %v3995_v46  ;;  %6002 = vmatprep.subr.mxu0 %v6419_v11 }
0x1a45   : > { %5997 = vmatprep.subr.mxu1 %v6419_v11 }
0x1a46   : > { %5990 = vmatmul.mubr.msk.f32.vlgmr.msra.gmra.mrb[40].mxu0 %vm657_vm1, %v7051_v4 }
0x1a47   : > { %6004 = vmatprep.mubr.msk.f32.mxu0 %vm6418_vm0, %v6419_v11  ;;  %6003 = vmatpush3.msra.mxu0 %v5381_v7 }
0x1a48   : > { %6235 = vmatprep.subr.bf16.mxu0 %v6417_v3 }
0x1b09   : > { %v3755_v48 = vpop.f32.mrb[36].mxu0 }
0x1b0a   : > { %v7242_v33 = vadd.f32 %v3828_v38, %v3755_v48  ;;  %v5953_v49 = vpop.f32.mrb[37].mxu0 }
0x1b11   : > { %v3911_v51 = vpop.f32.mrb[38].mxu0 }
0x1b12   : > { %v3912_v52 = vadd.f32 %v5362_v50, %v3911_v51  ;;  %v5969_v53 = vpop.f32.mrb[39].mxu0 }
0x1b14   : > { %5995 = vmatmul.mubr.msk.f32.vlgmr.msra.gmra.mrb[40].mxu1 %vm894_vm2, %v3912_v52 }
0x1b15   : > { %5999 = vmatprep.mubr.msk.f32.mxu1 %vm6418_vm0, %v6419_v11 }
0x1b19   : > { %v4077_v55 = vpop.f32.mrb[40].mxu0 }
0x1b1a   : > { %v4078_v57 = vadd.f32 %v5376_v54, %v4077_v55  ;;  %v5991_v58 = vpop.f32.mrb[41].mxu0  ;;  %v5407_v55 = vld [vmem:[%s7482_s8 + $0x38] sm:$0xff] }
0x1b1c   : > { %5998 = vmatpush3.msra.mxu1 %v4078_v57 }
0x1b1d   : > { %6229 = vmatprep.subr.bf16.mxu1 %v6417_v3 }
0x1be7   : > { %v4153_v59 = vpop.f32.mrb[40].mxu1 }
0x1be8   : > { %v4154_v60 = vadd.f32 %v6834_v2, %v4153_v59  ;;  %v5996_v61 = vpop.f32.mrb[41].mxu1 }
0x1bea   : > { %v4157_v62 = vsel %vm894_vm2, %v4154_v60, -inf }
0x1beb   : > { %4158 = vmax.xlane.f32.xlu0 %v4157_v62 }
0x1c78   : > { %v4159_v63 = vpop.xlane.xlu0 %4158 }
0x1c79   : > { %v4160_v0 = vsub.f32 %v4154_v60, %v4159_v63 }
0x1c7b   : > { %v4161_v1 = vmul.f32 1.442695, %v4160_v0  ;;  %v5410_v0 = vld [vmem:[%s7483_s9 + $0x1] ss:$0 sm:$0xff] }
0x1c7d   : > { %6337 = vpow2.f32 %v4161_v1 }
0x1c87   : > { %v6338_v5 = vpop.eup %6337 }
0x1c88   : > { %v4163_v6 = vsel %vm894_vm2, %v6338_v5, 0.0 }
0x1c89   : > { %4164 = vadd.xlane.f32.xlu1 %v4163_v6 }
0x1d16   : > { %v4165_v2 = vpop.xlane.xlu1 %4164 }
0x1d17   : > { %6339 = vrcp.f32 %v4165_v2 }
0x1d21   : > { %v6340_v10 = vpop.eup %6339 }
0x1d22   : > { %v4167_v14 = vmul.f32 %v6340_v10, %v6338_v5 }
0x1d24   : > { %6000 = vmatmul.mubr.msk.f32.vlgmr.msra.gmra.mrb[42].mxu1 %vm894_vm2, %v4167_v14  ;;  %v5417_v14 = vld [vmem:[%s7486_s12 + $0x30] sm:$0xff] }
0x1d25   : > { %6231 = vmatpush3.bf16.msra.mxu1 %v6230_v13  ;;  %6015 = vmatprep.mubr.msk.f32.mxu1 %vm6418_vm0, %v6419_v11  ;;  %v5416_v13 = vld [vmem:[%s7486_s12 + $0x28] sm:$0xff]  ;;  %v6251_v17 = vpack.c.bf16 %v5418_v15, %v5417_v14 }
0x1d26   : > { %6232 = vmatprep.subr.bf16.mxu1 %v6417_v3 }
0x1d29   : > { %6234 = vmatpush3.bf16.msra.mxu1 %v6233_v18 }
0x1d2a   : > { %6241 = vmatprep.subr.bf16.mxu1 %v6417_v3 }
0x1d2c   : > { %6016 = vmatmul.mubr.msk.f32.vlgmr.msra.gmra.mrb[44].mxu1 %vm657_vm1, %v7051_v4 }
0x1d2d   : > { %6243 = vmatpush3.bf16.msra.mxu1 %v6242_v20  ;;  %6037 = vmatprep.mubr.msk.f32.mxu1 %vm6418_vm0, %v6419_v11 }
0x1d2e   : > { %6244 = vmatprep.subr.bf16.mxu1 %v6417_v3 }
0x1d31   : > { %6246 = vmatpush3.bf16.msra.mxu1 %v6245_v23  ;;  %v5414_v23 = vld [vmem:[%s7485_s11 + $0x1] ss:$0 sm:$0xff] }
0x1d32   : > { %6050 = vmatprep.subr.mxu1 %v6419_v11 }
0x1d34   : > { %6038 = vmatmul.mubr.msk.f32.vlgmr.msra.gmra.mrb[46].mxu1 %vm657_vm1, %v7051_v4 }
0x1d35   : > { %6052 = vmatprep.mubr.msk.f32.mxu1 %vm6418_vm0, %v6419_v11  ;;  %6051 = vmatpush3.msra.mxu1 %v5407_v55 }
0x1d36   : > { %6253 = vmatprep.subr.bf16.mxu1 %v6417_v3 }
0x1df7   : > { %v4237_v29 = vpop.f32.mrb[42].mxu1 }
0x1df8   : > { %v6001_v30 = vpop.f32.mrb[43].mxu1  ;;  %6005 = vmatmul.mubr.msk.f32.vlgmr.msra.gmra.mrb[42].mxu0 %vm894_vm2, %v4237_v29  ;;  %v5425_v29 = vld [vmem:[%s7488_s14 + $0x50] sm:$0xff] }
0x1df9   : > { %6237 = vmatpush3.bf16.msra.mxu0 %v6236_v26  ;;  %6026 = vmatprep.mubr.msk.f32.mxu0 %vm6418_vm0, %v6419_v11  ;;  %v5423_v26 = vld [vmem:[%s7488_s14 + $0x40] sm:$0xff]  ;;  %v5426_v30 = vld [vmem:[%s7488_s14 + $0x58] sm:$0xff] }
0x1dfa   : > { %6238 = vmatprep.subr.bf16.mxu0 %v6417_v3  ;;  %v6254_v28 = vpack.c.bf16 %v5424_v27, %v5423_v26 }
0x1dfd   : > { %6240 = vmatpush3.bf16.msra.mxu0 %v6239_v16  ;;  %v6257_v16 = vpack.c.bf16 %v5426_v30, %v5425_v29 }
0x1dfe   : > { %6040 = vmatprep.subr.mxu0 %v6419_v11 }
0x1dff   : > { %v4396_v31 = vpop.f32.mrb[44].mxu1 }
0x1e00   : > { %v6017_v32 = vpop.f32.mrb[45].mxu1  ;;  %6027 = vmatmul.mubr.msk.f32.vlgmr.msra.gmra.mrb[44].mxu0 %vm657_vm1, %v7051_v4  ;;  %v4397_v43 = vadd.f32 %v5388_v41, %v4396_v31  ;;  %v5427_v31 = vld [vmem:[%s7488_s14 + $0x60] sm:$0xff] }
0x1e01   : > { %6042 = vmatprep.mubr.msk.f32.mxu0 %vm6418_vm0, %v6419_v11  ;;  %v5428_v32 = vld [vmem:[%s7488_s14 + $0x68] sm:$0xff] }
0x1e07   : > { %v4562_v34 = vpop.f32.mrb[46].mxu1 }
0x1e08   : > { %v6039_v35 = vpop.f32.mrb[47].mxu1  ;;  %v4563_v46 = vadd.f32 %v5402_v45, %v4562_v34  ;;  %v6260_v34 = vpack.c.bf16 %v5428_v32, %v5427_v31 }
0x1e09   : > { %v5429_v35 = vld [vmem:[%s7488_s14 + $0x70] sm:$0xff] }
0x1ecb   : > { %v4312_v36 = vpop.f32.mrb[42].mxu0 }
0x1ecc   : > { %v4316_v37 = vadd.f32 %v4312_v36, %v7242_v33  ;;  %v6006_v38 = vpop.f32.mrb[43].mxu0  ;;  %v5430_v36 = vld [vmem:[%s7488_s14 + $0x78] sm:$0xff] }
0x1ecd   : > { %v5420_v38 = vld [vmem:[%s7487_s13 + $0x1] ss:$0 sm:$0xff] }
0x1ed3   : > { %v4479_v40 = vpop.f32.mrb[44].mxu0 }
0x1ed4   : > { %v4480_v42 = vadd.f32 %v5395_v39, %v4479_v40  ;;  %v6028_v44 = vpop.f32.mrb[45].mxu0 }
0x1ed6   : > { %6041 = vmatpush3.xpose.msk.msra.mxu0 %vm894_vm2, %v4480_v42 }
0x1ed7   : > { %6045 = vmatprep.subr.mxu0 %v6419_v11 }
0x1ed9   : > { %6043 = vmatmul.mubr.msk.f32.vlgmr.msra.gmra.mrb[46].mxu0 %vm894_vm2, %v4397_v43 }
0x1eda   : > { %6046 = vmatpush3.msra.mxu0 %v4563_v46  ;;  %6047 = vmatprep.mubr.msk.f32.mxu0 %vm6418_vm0, %v6419_v11 }
0x1edb   : > { %6247 = vmatprep.subr.bf16.mxu0 %v6417_v3 }
0x1fac   : > { %v4638_v47 = vpop.f32.mrb[46].mxu0 }
0x1fad   : > { %v4639_v48 = vadd.f32 %v6920_v56, %v4638_v47  ;;  %v6044_v33 = vpop.f32.mrb[47].mxu0 }
0x1faf   : > { %v4642_v49 = vsel %vm894_vm2, %v4639_v48, -inf }
0x1fb0   : > { %4643 = vmax.xlane.f32.xlu0 %v4642_v49 }
0x203d   : > { %v4644_v50 = vpop.xlane.xlu0 %4643 }
0x203e   : > { %v4645_v51 = vsub.f32 %v4639_v48, %v4644_v50 }
0x2040   : > { %v4646_v52 = vmul.f32 1.442695, %v4645_v51 }
0x2042   : > { %6341 = vpow2.f32 %v4646_v52 }
0x204c   : > { %v6342_v53 = vpop.eup %6341 }
0x204d   : > { %v4648_v54 = vsel %vm894_vm2, %v6342_v53, 0.0 }
0x204e   : > { %4649 = vadd.xlane.f32.xlu1 %v4648_v54 }
0x20db   : > { %v4650_v56 = vpop.xlane.xlu1 %4649 }
0x20dc   : > { %6343 = vrcp.f32 %v4650_v56 }
0x20e6   : > { %v6344_v57 = vpop.eup %6343 }
0x20e7   : > { %v4652_v58 = vmul.f32 %v6344_v57, %v6342_v53 }
0x20e9   : > { %6048 = vmatmul.mubr.msk.f32.vlgmr.msra.gmra.mrb[48].mxu0 %vm894_vm2, %v4652_v58 }
0x20ea   : > { %6063 = vmatprep.mubr.msk.f32.mxu0 %vm6418_vm0, %v6419_v11 }
0x21bc   : > { %v4722_v59 = vpop.f32.mrb[48].mxu0 }
0x21bd   : > { %v6049_v60 = vpop.f32.mrb[49].mxu0  ;;  %6053 = vmatmul.mubr.msk.f32.vlgmr.msra.gmra.mrb[48].mxu1 %vm894_vm2, %v4722_v59 }
0x21be   : > { %6082 = vmatprep.mubr.msk.f32.mxu1 %vm6418_vm0, %v6419_v11  ;;  %v5415_v11 = vld [vmem:[%s7486_s12 + $0x20] sm:$0xff]  ;;  %6255 = vmatpush3.bf16.msra.mxu1 %v6254_v28 }
0x21bf   : > { %6256 = vmatprep.subr.bf16.mxu1 %v6417_v3 }
0x21c2   : > { %6258 = vmatpush3.bf16.msra.mxu1 %v6257_v16 }
0x21c3   : > { %6259 = vmatprep.subr.bf16.mxu1 %v6417_v3 }
0x21c6   : > { %6261 = vmatpush3.bf16.msra.mxu1 %v6260_v34 }
0x21c7   : > { %6262 = vmatprep.subr.bf16.mxu1 %v6417_v3 }
0x2290   : > { %v4797_v61 = vpop.f32.mrb[48].mxu1 }
0x2291   : > { %v4801_v62 = vadd.f32 %v4797_v61, %v4316_v37  ;;  %v6054_v63 = vpop.f32.mrb[49].mxu1  ;;  %v6263_v37 = vpack.c.bf16 %v5430_v36, %v5429_v35 }
0x2293   : > { %v4802_v1 = vadd.f32 %v4801_v62, %v7051_v4  ;;  %v6248_v4 = vpack.c.bf16 %v5416_v13, %v5415_v11  ;;  %6264 = vmatpush3.bf16.msra.mxu1 %v6263_v37  ;;  %v5438_v37 = vld [vmem:[%s7492_s18] ss:$0 sm:$0xff] }
0x2295   : > { %v4811_v5 = vadd.f32 %v5410_v0, %v4802_v1  ;;  %6249 = vmatpush3.bf16.msra.mxu0 %v6248_v4 }
0x2296   : > { %6250 = vmatprep.subr.bf16.mxu0 %v6417_v3 }
0x2297   : > { %v4816_v6 = vsel %vm657_vm1, %v4811_v5, 0.0 }
0x2298   : > { %4817 = vadd.xlane.f32.xlu0 %v4816_v6 }
0x2299   : > { %6252 = vmatpush3.bf16.msra.mxu0 %v6251_v17 }
0x2325   : > { %v4818_v7 = vpop.xlane.xlu0 %4817 }
0x2326   : > { %v4819_v2 = vmul.f32 0.03125, %v4818_v7 }
0x2328   : > { %v4820_v8 = vsub.f32 %v4811_v5, %v4819_v2  ;;  %v5432_v2 = vld [vmem:[%s7489_s15 + $0x1] ss:$0 sm:$0xff] }
0x232a   : > { %v4821_v9 = vmul.f32 %v4820_v8, %v4820_v8 }
0x232c   : > { %v4822_v10 = vsel %vm657_vm1, %v4821_v9, 0.0 }
0x232d   : > { %4823 = vadd.xlane.f32.xlu1 %v4822_v10 }
0x23ba   : > { %v4824_v18 = vpop.xlane.xlu1 %4823 }
0x23bb   : > { %v4825_v12 = vmul.f32 0.03125, %v4824_v18 }
0x23bd   : > { %v4826_v19 = vadd.f32 1e-05, %v4825_v12 }
0x23bf   : > { %6345 = vrsqrt.f32 %v4826_v19 }
0x23c9   : > { %v6346_v20 = vpop.eup %6345 }
0x23ca   : > { %v4828_v22 = vmul.f32 %v6346_v20, %v4820_v8 }
0x23cc   : > { %v4835_v24 = vmul.f32 %v5413_v21, %v4828_v22  ;;  %v5436_v22 = vld [vmem:[%s7490_s16 + $0x1] ss:$0 sm:$0xff] }
0x23ce   : > { %v4842_v25 = vadd.f32 %v5414_v23, %v4835_v24  ;;  %v5437_v24 = vld [vmem:[%s7491_s17 + $0x1] ss:$0 sm:$0xff] }
0x23d0   : > { %6064 = vmatmul.mubr.msk.f32.vlgmr.msra.gmra.mrb[50].mxu0 %vm657_vm1, %v4842_v25 }
0x24a3   : > { %v4925_v39 = vpop.f32.mrb[50].mxu0 }
0x24a4   : > { %v4926_v40 = vadd.f32 %v5420_v38, %v4925_v39  ;;  %v6065_v41 = vpop.f32.mrb[51].mxu0  ;;  %v5439_v39 = vld [vmem:[%s7493_s19] ss:$0 sm:$0xff] }
0x24a6   : > { %v4930_v42 = vmul.f32 0.70710677, %v4926_v40  ;;  %v4929_v5 = vmul.f32 0.5, %v4926_v40 }
0x24a8   : > { %v5422_v44 = vclamps-f32 %v4930_v42, 4.0 }
0x24aa   : > { %v4933_v3 = vmul.f32 %v5422_v44, %v5422_v44 }
0x24ac   : > { %v4934_v45 = vmul.f32 -2.7261424e-10, %v4933_v3  ;;  %v4947_v43 = vmul.f32 -1.45660715e-05, %v4933_v3 }
0x24ae   : > { %v4935_v46 = vadd.f32 2.7706815e-08, %v4934_v45  ;;  %v4948_v47 = vadd.f32 -0.00021337405, %v4947_v43 }
0x24b0   : > { %v4936_v48 = vmul.f32 %v4935_v46, %v4933_v3  ;;  %v4949_v33 = vmul.f32 %v4948_v47, %v4933_v3 }
0x24b2   : > { %v4937_v49 = vadd.f32 -2.101024e-06, %v4936_v48  ;;  %v4950_v50 = vadd.f32 -0.001682827, %v4949_v33 }
0x24b4   : > { %v4938_v51 = vmul.f32 %v4937_v49, %v4933_v3  ;;  %v4951_v52 = vmul.f32 %v4950_v50, %v4933_v3 }
0x24b6   : > { %v4939_v53 = vadd.f32 -5.6925062e-05, %v4938_v51  ;;  %v4952_v54 = vadd.f32 -0.0073733293, %v4951_v52 }
0x24b8   : > { %v4940_v55 = vmul.f32 %v4939_v53, %v4933_v3  ;;  %v4953_v56 = vmul.f32 %v4952_v54, %v4933_v3 }
0x24ba   : > { %v4941_v57 = vadd.f32 -0.00073499064, %v4940_v55  ;;  %v4954_v58 = vadd.f32 -0.014264739, %v4953_v56 }
0x24bc   : > { %v4942_v59 = vmul.f32 %v4941_v57, %v4933_v3  ;;  %6347 = vrcp.f32 %v4954_v58 }
0x24be   : > { %v4943_v60 = vadd.f32 -0.0029546, %v4942_v59 }
0x24c0   : > { %v4944_v61 = vmul.f32 %v4943_v60, %v4933_v3 }
0x24c2   : > { %v4945_v62 = vadd.f32 -0.016096033, %v4944_v61 }
0x24c4   : > { %v4946_v63 = vmul.f32 %v5422_v44, %v4945_v62 }
0x24c6   : > { %v6348_v0 = vpop.eup %6347 }
0x24c7   : > { %v4956_v1 = vmul.f32 %v6348_v0, %v4946_v63 }
0x24c9   : > { %v4957_v6 = vadd.f32 1.0, %v4956_v1 }
0x24cb   : > { %v4958_v7 = vmul.f32 %v4957_v6, %v4929_v5 }
0x24cd   : > { %6083 = vmatmul.mubr.msk.f32.vlgmr.msra.gmra.mrb[50].mxu1 %vm2757_vm3, %v4958_v7 }
0x25a0   : > { %v5045_v8 = vpop.f32.mrb[50].mxu1 }
0x25a1   : > { %v5046_v9 = vadd.f32 %v5432_v2, %v5045_v8  ;;  %v6084_v10 = vpop.f32.mrb[51].mxu1 }
0x25a3   : > { %v5049_v11 = vadd.f32 %v5046_v9, %v4842_v25 }
0x25a5   : > { %v5054_v13 = vsel %vm657_vm1, %v5049_v11, 0.0 }
0x25a6   : > { %5055 = vadd.xlane.f32.xlu0 %v5054_v13 }
0x2633   : > { %v5056_v4 = vpop.xlane.xlu0 %5055 }
0x2634   : > { %v5057_v14 = vmul.f32 0.03125, %v5056_v4 }
0x2636   : > { %v5058_v15 = vsub.f32 %v5049_v11, %v5057_v14 }
0x2638   : > { %v5059_v17 = vmul.f32 %v5058_v15, %v5058_v15 }
0x263a   : > { %v5060_v18 = vsel %vm657_vm1, %v5059_v17, 0.0 }
0x263b   : > { %5061 = vadd.xlane.f32.xlu1 %v5060_v18 }
0x26c8   : > { %v5062_v12 = vpop.xlane.xlu1 %5061 }
0x26c9   : > { %v5063_v19 = vmul.f32 0.03125, %v5062_v12 }
0x26cb   : > { %v5064_v20 = vadd.f32 1e-05, %v5063_v19 }
0x26cd   : > { %6349 = vrsqrt.f32 %v5064_v20 }
0x26d7   : > { %v6350_v21 = vpop.eup %6349 }
0x26d8   : > { %v5066_v23 = vmul.f32 %v6350_v21, %v5058_v15 }
0x26da   : > { %v5073_v25 = vmul.f32 %v5436_v22, %v5066_v23 }
0x26dc   : > { %v5080_v26 = vadd.f32 %v5437_v24, %v5073_v25 }
0x26de   : > { %v5083_v27 = vsel %vm657_vm1, %v5080_v26, 0.0 }
0x26df   : > { %5084 = vadd.xlane.f32.xlu0 %v5083_v27 }
0x276c   : > { %v5085_v28 = vpop.xlane.xlu0 %5084 }
0x276d   : > { %v5086_v29 = vmul.f32 0.03125, %v5085_v28 }
0x276f   : > { %v5087_v30 = vsub.f32 %v5080_v26, %v5086_v29 }
0x2771   : > { %v5088_v16 = vmul.f32 %v5087_v30, %v5087_v30 }
0x2773   : > { %v5089_v31 = vsel %vm657_vm1, %v5088_v16, 0.0 }
0x2774   : > { %5090 = vadd.xlane.f32.xlu1 %v5089_v31 }
0x2801   : > { %v5091_v32 = vpop.xlane.xlu1 %5090 }
0x2802   : > { %v5092_v34 = vmul.f32 0.03125, %v5091_v32 }
0x2804   : > { %v5093_v35 = vadd.f32 1e-05, %v5092_v34 }
0x2806   : > { %6351 = vrsqrt.f32 %v5093_v35 }
0x2810   : > { %v6352_v36 = vpop.eup %6351 }
0x2811   : > { %v5095_v38 = vmul.f32 %v6352_v36, %v5087_v30 }
0x2813   : > { %v5102_v40 = vmul.f32 %v5438_v37, %v5095_v38 }
0x2815   : > { %v5109_v41 = vadd.f32 %v5439_v39, %v5102_v40 }
0x2817   : > { %5110 = vst.msk [vmem:[%s635_s26] sm:$0xff] %vm657_vm1, %v5109_v41 }
0x2818   : > { %6366 = shalt.err (!%p6363_p3)
}
0x2819   : > { %s6367_s3 = scalar_lea.hbm %s7431_s6, 128  ;;  %s6371_s24 = scalar_lea.hbm %s7530_s5, 256 }
0x281a   : > { %p6368_p4 = scmp.ne.s32.totalorder %s7431_s6, %s6367_s3  ;;  %p6372_p9 = scmp.lt.u32.totalorder %s7431_s6, %s7530_s5 }
0x281b   : > { %p6373_p10 = scmp.lt.u32.totalorder %s6371_s24, %s6367_s3  ;;  %p6375_p12 = scmp.lt.u32.totalorder %s6367_s3, %s7431_s6 }
0x281c   : > { %p6369_p7 = pnand %p6368_p4, %p6564_p5 }
0x281d   : > { %p6374_p11 = por %p6373_p10, %p6372_p9 }
0x281e   : > { %p6370_p8 = pneg %p6369_p7 }
0x281f   : > { %p6376_p13 = por %p6375_p12, %p6374_p11 }
0x2821   : > { %p6377_p0 = pnand %p6376_p13, %p6370_p8 }
0x2823   : > { %6380 = shalt.err (!%p6377_p0)
}
0x2824   : > { %6265 = dma.vmem_to_hbm [thread:$0]  (%p6564_p5), %s7433_s20, 128, %s7431_s6, %s5112_s29  }
0x2825 PF: > { %s7531_s30 = sld [smem:[#allocation7_spill]]  ;;  %s7532_s2 = sld [smem:[#allocation5_spill]] }
0x282b   : > { %p6271_p1 = scmp.ge.s32.totalorder %s7531_s30, 2  ;;  %s5137_s0 = sand.u32 1, %s7532_s2  }
0x282c   : > { %s5138_s1 = scalar_lea.sflag [#allocation3], %s5137_s0 }
0x282d   : > { %p6268_p2 = pnand %p6271_p1, %p6568_p6 }
0x282f   : > { %6398 = dma.done.wait (!%p6268_p2), %s5138_s1, 128  }
0x2830   : > { %6400 = vsyncadd (!%p6268_p2), %s5138_s1, 4294967168  ;;  %s7534_s24 = sld [smem:[#allocation8_spill]]  ;;  %s7535_s3 = sld [smem:[#allocation6_spill]] }
0x2831   : > { %s7536_s23 = sld [smem:[#allocation9_spill]]  ;;  %s7537_s1 = smov %s6407_s22 }
0x2836   : > { %p30_p3 = scmp.ge.s32.totalorder %s7534_s24, 4   ;;  %s7538_s22 = smov %s7535_s3 }
0x2838   :  { %32 = sbr.rel (!%p30_p3) target bundleno = 12 (0xc), region = 199 }
0x283f   :  { %5143 = vsyncpa [#allocation3], 1 }
0x2840   :  { %5145 = vsyncpa [#allocation3 + $0x1], 1 }

</bundles_post_ra>
